<compile_context>
chip_gen: v6e
topology: v6e:2x2x1
jax: 0.10.0
libtpu: 0.0.40
codegen_flags: <defaults>
</compile_context>

<pallas_src>
import math

import jax
import jax.numpy as jnp
from jax.experimental import pallas as pl
from jax.experimental.pallas import tpu as pltpu


# --------------------------------------------------------------------------
# Glue: trilinear x2 upsample with align_corners=True (separable linear interp)
# TODO(synk): gather-based interpolation stays in plain JAX; at real decoder
#             sizes it could be fused into the kernel as lane rolls + lerps.
# --------------------------------------------------------------------------
def trilinear_upsample_x2_align_corners(x):
    # x: (N, C, D, H, W)
    def upsample_axis(a, axis):
        n_in = a.shape[axis]
        n_out = 2 * n_in
        if n_in == 1:
            return jnp.repeat(a, 2, axis=axis)
        src = jnp.arange(n_out, dtype=jnp.float32) * (n_in - 1) / (n_out - 1)
        lo = jnp.clip(jnp.floor(src).astype(jnp.int32), 0, n_in - 2)
        frac = src - lo.astype(jnp.float32)
        a_lo = jnp.take(a, lo, axis=axis)
        a_hi = jnp.take(a, lo + 1, axis=axis)
        bshape = [1] * a.ndim
        bshape[axis] = n_out
        frac = frac.reshape(bshape)
        return a_lo * (1.0 - frac) + a_hi * frac

    x = upsample_axis(x, 2)
    x = upsample_axis(x, 3)
    x = upsample_axis(x, 4)
    return x


def _lane_coords(D, H, W):
    """(3, DHW) int32 rows: (d, h, w) coordinate of each flattened lane.

    Passed to the kernel (6 KB at 8^3) so tap-validity masks are built
    in-kernel from plain vector compares (no vector integer div/mod inside
    Mosaic, and no 27xDHW f32 mask stream from HBM).
    """
    p = jnp.arange(D * H * W, dtype=jnp.int32)
    return jnp.stack([p // (H * W), (p // W) % H, p % W]).astype(jnp.int32)


# --------------------------------------------------------------------------
# Fused decoder kernel: conv1(+bias+ReLU) on [x_up | skip] then conv2(+bias+ReLU)
# Tap order everywhere is tap = kd*9 + kh*3 + kw, matching the im2col weight
# layout (Cout, 27*Cin) with column index tap*Cin + ci.
# --------------------------------------------------------------------------
def _build_decoder_kernel(D, H, W, Cin, Cout):
    DHW = D * H * W
    taps = [(dd, dh, dw)
            for dd in (-1, 0, 1) for dh in (-1, 0, 1) for dw in (-1, 0, 1)]

    def kernel(x_ref, coord_ref, w1_ref, b1_ref, w2_ref, b2_ref, o_ref,
               col1_ref, col2_ref):
        # ---- tap validity masks, built once from lane coordinates ---------
        coords = coord_ref[...]                 # (3, DHW) int32
        d = coords[0:1, :]
        h = coords[1:2, :]
        w = coords[2:3, :]

        def axis_masks(c, n):
            # per-axis float masks for shifts -1 / 0 / +1 (0 -> no masking)
            return {
                -1: jnp.where(c >= 1, 1.0, 0.0),
                0: None,
                1: jnp.where(c <= n - 2, 1.0, 0.0),
            }

        dmask = axis_masks(d, D)
        hmask = axis_masks(h, H)
        wmask = axis_masks(w, W)

        tap_masks = []
        for (dd, dh, dw) in taps:
            fs = [m for m in (dmask[dd], hmask[dh], wmask[dw]) if m is not None]
            if not fs:
                tap_masks.append(None)          # center tap: always valid
            else:
                m = fs[0]
                for f in fs[1:]:
                    m = m * f                   # (1, DHW) f32
                tap_masks.append(m)

        # ---- im2col build: 27 lane-rolls, pre-masked, stacked on sublanes --
        def build_cols(v, c, col_ref):
            # v: (c, DHW) f32;  col_ref: (27*c, DHW) VMEM scratch
            for tap, (dd, dh, dw) in enumerate(taps):
                off = dd * H * W + dh * W + dw
                # out[:, p] = v[:, (p + off) mod DHW]; out-of-volume lanes
                # (including cross-wrap lanes) are zeroed by the tap mask.
                shifted = v if off == 0 else pltpu.roll(v, (-off) % DHW, 1)
                m = tap_masks[tap]
                if m is not None:
                    shifted = shifted * m       # (c,DHW) * (1,DHW) broadcast
                col_ref[pl.ds(tap * c, c), :] = shifted

        # ---- conv1 on the (already concatenated) [x_up | skip] channels ----
        x = x_ref[0]                            # (Cin, DHW) f32
        build_cols(x, Cin, col1_ref)
        y1 = jnp.dot(w1_ref[...], col1_ref[...],          # (Cout,27*Cin)@(27*Cin,DHW)
                     preferred_element_type=jnp.float32)
        y1 = jnp.maximum(y1 + b1_ref[...], 0.0)           # bias (Cout,1) broadcast

        # ---- conv2: intermediate stays on-core (no HBM round trip) ---------
        build_cols(y1, Cout, col2_ref)
        y2 = jnp.dot(w2_ref[...], col2_ref[...],          # (Cout,27*Cout)@(27*Cout,DHW)
                     preferred_element_type=jnp.float32)
        o_ref[0] = jnp.maximum(y2 + b2_ref[...], 0.0).astype(o_ref.dtype)

    return kernel


# --------------------------------------------------------------------------
# UNetDecoder forward (NCDHW in / NCDHW out, matching PyTorch semantics)
# --------------------------------------------------------------------------
@jax.jit
def unet_decoder_forward(x, skip, params):
    (w1, b1), (w2, b2) = params            # w*: (3,3,3,Cin,Cout) DHWIO, b*: (Cout,)
    x_up = trilinear_upsample_x2_align_corners(x)          # (N, C1, D, H, W)
    N, C1, D, H, W = x_up.shape
    C2 = skip.shape[1]
    Cin = C1 + C2
    Cout = w1.shape[4]
    DHW = D * H * W

    # Channel concat is ~16 KB/batch in the wrapper; the kernel then sees one
    # densely packed (Cin=8, DHW) sublane slab (NCDHW flattened, no transpose).
    x_cat = jnp.concatenate([x_up, skip], axis=1).reshape(N, Cin, DHW)

    # Weights relaid out host-side to lane-dense im2col form (Cout, 27*Cin),
    # column index = tap*Cin + ci with tap = kd*9 + kh*3 + kw.
    w1_m = jnp.transpose(w1.reshape(27, Cin, Cout), (2, 0, 1)).reshape(Cout, 27 * Cin)
    w2_m = jnp.transpose(w2.reshape(27, Cout, Cout), (2, 0, 1)).reshape(Cout, 27 * Cout)

    coords = _lane_coords(D, H, W)                          # (3, DHW) int32

    kernel = _build_decoder_kernel(D, H, W, Cin, Cout)

    # grid=(N,) "parallel": batch elements land on separate TensorCores on v7x;
    # on single-TC v5e/v6e this is a cheap 2-step serial loop.
    # TODO(synk): for real decoder volumes add a D-tile grid axis (halo of 1),
    #             size blocks + vmem_limit_bytes for v7x's 64 MiB VMEM, and on
    #             v5e/v6e optionally fold the batch along lanes (masks already
    #             zero cross-wrap lanes).
    out = pl.pallas_call(
        kernel,
        out_shape=jax.ShapeDtypeStruct((N, Cout, DHW), jnp.float32),
        grid=(N,),
        in_specs=[
            pl.BlockSpec((1, Cin, DHW), lambda n: (n, 0, 0)),      # [x_up | skip]
            pl.BlockSpec((3, DHW), lambda n: (0, 0)),              # lane coords
            pl.BlockSpec((Cout, 27 * Cin), lambda n: (0, 0)),      # conv1 weights
            pl.BlockSpec((Cout, 1), lambda n: (0, 0)),             # conv1 bias
            pl.BlockSpec((Cout, 27 * Cout), lambda n: (0, 0)),     # conv2 weights
            pl.BlockSpec((Cout, 1), lambda n: (0, 0)),             # conv2 bias
        ],
        out_specs=pl.BlockSpec((1, Cout, DHW), lambda n: (n, 0, 0)),
        scratch_shapes=[
            pltpu.VMEM((27 * Cin, DHW), jnp.float32),    # conv1 im2col stack
            pltpu.VMEM((27 * Cout, DHW), jnp.float32),   # conv2 im2col stack
        ],
        compiler_params=pltpu.CompilerParams(
            dimension_semantics=("parallel",),
        ),
    )(x_cat, coords, w1_m, b1.reshape(Cout, 1), w2_m, b2.reshape(Cout, 1))

    # (N, Cout, DHW) is NCDHW flattened: pure reshape, no final transpose pass.
    return out.reshape(N, Cout, D, H, W)


# --------------------------------------------------------------------------
# Pure-JAX reference (lax.conv) for correctness check
# --------------------------------------------------------------------------
@jax.jit
def unet_decoder_reference(x, skip, params):
    (w1, b1), (w2, b2) = params
    x_up = trilinear_upsample_x2_align_corners(x)
    x_cat = jnp.concatenate([x_up, skip], axis=1)
    xl = jnp.transpose(x_cat, (0, 2, 3, 4, 1))
    dn = ("NDHWC", "DHWIO", "NDHWC")
    y = jax.lax.conv_general_dilated(xl, w1, (1, 1, 1), "SAME",
                                     dimension_numbers=dn)
    y = jnp.maximum(y + b1, 0.0)
    y = jax.lax.conv_general_dilated(y, w2, (1, 1, 1), "SAME",
                                     dimension_numbers=dn)
    y = jnp.maximum(y + b2, 0.0)
    return jnp.transpose(y, (0, 4, 1, 2, 3))


def init_conv_params(key, cin, cout):
    k1, k2 = jax.random.split(key)
    fan_in = cin * 27
    bound = 1.0 / math.sqrt(fan_in)
    w = jax.random.uniform(k1, (3, 3, 3, cin, cout), jnp.float32, -bound, bound)
    b = jax.random.uniform(k2, (cout,), jnp.float32, -bound, bound)
    return w, b


if __name__ == "__main__":
    in_channels = 8      # channels after concat (x_up has 4, skip has 4)
    out_channels = 4

    key = jax.random.PRNGKey(0)
    kx, ks, kp1, kp2 = jax.random.split(key, 4)

    # x: (N, C, D, H, W) -> upsampled to (2, 4, 8, 8, 8); skip: (2, 4, 8, 8, 8)
    x = jax.random.normal(kx, (2, 4, 4, 4, 4), jnp.float32)
    skip = jax.random.normal(ks, (2, 4, 8, 8, 8), jnp.float32)

    params = (
        init_conv_params(kp1, in_channels, out_channels),
        init_conv_params(kp2, out_channels, out_channels),
    )

    out = jax.block_until_ready(unet_decoder_forward(x, skip, params))
    ref = jax.block_until_ready(unet_decoder_reference(x, skip, params))

    assert out.shape == (2, out_channels, 8, 8, 8), out.shape
    max_err = float(jnp.max(jnp.abs(out - ref)))
    # f32 everywhere; tolerance allows for MXU pass decomposition / summation
    # order differences vs. the XLA conv reference.
    assert jnp.allclose(out, ref, rtol=1e-4, atol=1e-4), max_err
    print("KERNEL_OK")
</pallas_src>

<mosaic_0001>
module attributes {stable_mosaic.version = 11 : i64} {
  func.func @kernel(%arg0: i32, %arg1: memref<1x8x512xf32, #tpu.memory_space<vmem>>, %arg2: memref<3x512xi32, #tpu.memory_space<vmem>>, %arg3: memref<4x216xf32, #tpu.memory_space<vmem>>, %arg4: memref<4x1xf32, #tpu.memory_space<vmem>>, %arg5: memref<4x108xf32, #tpu.memory_space<vmem>>, %arg6: memref<4x1xf32, #tpu.memory_space<vmem>>, %arg7: memref<1x4x512xf32, #tpu.memory_space<vmem>>, %arg8: memref<216x512xf32, #tpu.memory_space<vmem>>, %arg9: memref<108x512xf32, #tpu.memory_space<vmem>>) attributes {dimension_semantics = [#tpu.dimension_semantics<parallel>], iteration_bounds = array<i64: 2>, scalar_prefetch = 0 : i64, scratch_operands = 2 : i64, tpu.core_type = #tpu.core_type<tc>, window_params = [{transform_indices = @transform_0, window_bounds = array<i64: 1, 8, 512>}, {pipeline_mode = #tpu.pipeline_mode<synchronous>, transform_indices = @transform_1, window_bounds = array<i64: 3, 512>}, {pipeline_mode = #tpu.pipeline_mode<synchronous>, transform_indices = @transform_2, window_bounds = array<i64: 4, 216>}, {pipeline_mode = #tpu.pipeline_mode<synchronous>, transform_indices = @transform_3, window_bounds = array<i64: 4, 1>}, {pipeline_mode = #tpu.pipeline_mode<synchronous>, transform_indices = @transform_4, window_bounds = array<i64: 4, 108>}, {pipeline_mode = #tpu.pipeline_mode<synchronous>, transform_indices = @transform_5, window_bounds = array<i64: 4, 1>}, {transform_indices = @transform_6, window_bounds = array<i64: 1, 4, 512>}]} {
    %c0 = arith.constant 0 : index
    %c0_0 = arith.constant 0 : index
    %0 = vector.load %arg2[%c0, %c0_0] : memref<3x512xi32, #tpu.memory_space<vmem>>, vector<3x512xi32>
    %1 = vector.extract_strided_slice %0 {offsets = [0, 0], sizes = [1, 512], strides = [1, 1]} : vector<3x512xi32> to vector<1x512xi32>
    %2 = vector.extract_strided_slice %0 {offsets = [1, 0], sizes = [1, 512], strides = [1, 1]} : vector<3x512xi32> to vector<1x512xi32>
    %3 = vector.extract_strided_slice %0 {offsets = [2, 0], sizes = [1, 512], strides = [1, 1]} : vector<3x512xi32> to vector<1x512xi32>
    %c1_i32 = arith.constant 1 : i32
    %4 = vector.broadcast %c1_i32 : i32 to vector<1x512xi32>
    %5 = arith.cmpi sge, %1, %4 : vector<1x512xi32>
    %cst = arith.constant 1.000000e+00 : f32
    %cst_1 = arith.constant 0.000000e+00 : f32
    %6 = vector.broadcast %cst : f32 to vector<1x512xf32>
    %7 = vector.broadcast %cst_1 : f32 to vector<1x512xf32>
    %8 = arith.select %5, %6, %7 : vector<1x512xi1>, vector<1x512xf32>
    %c6_i32 = arith.constant 6 : i32
    %9 = vector.broadcast %c6_i32 : i32 to vector<1x512xi32>
    %10 = arith.cmpi sle, %1, %9 : vector<1x512xi32>
    %cst_2 = arith.constant 1.000000e+00 : f32
    %cst_3 = arith.constant 0.000000e+00 : f32
    %11 = vector.broadcast %cst_2 : f32 to vector<1x512xf32>
    %12 = vector.broadcast %cst_3 : f32 to vector<1x512xf32>
    %13 = arith.select %10, %11, %12 : vector<1x512xi1>, vector<1x512xf32>
    %c1_i32_4 = arith.constant 1 : i32
    %14 = vector.broadcast %c1_i32_4 : i32 to vector<1x512xi32>
    %15 = arith.cmpi sge, %2, %14 : vector<1x512xi32>
    %cst_5 = arith.constant 1.000000e+00 : f32
    %cst_6 = arith.constant 0.000000e+00 : f32
    %16 = vector.broadcast %cst_5 : f32 to vector<1x512xf32>
    %17 = vector.broadcast %cst_6 : f32 to vector<1x512xf32>
    %18 = arith.select %15, %16, %17 : vector<1x512xi1>, vector<1x512xf32>
    %c6_i32_7 = arith.constant 6 : i32
    %19 = vector.broadcast %c6_i32_7 : i32 to vector<1x512xi32>
    %20 = arith.cmpi sle, %2, %19 : vector<1x512xi32>
    %cst_8 = arith.constant 1.000000e+00 : f32
    %cst_9 = arith.constant 0.000000e+00 : f32
    %21 = vector.broadcast %cst_8 : f32 to vector<1x512xf32>
    %22 = vector.broadcast %cst_9 : f32 to vector<1x512xf32>
    %23 = arith.select %20, %21, %22 : vector<1x512xi1>, vector<1x512xf32>
    %c1_i32_10 = arith.constant 1 : i32
    %24 = vector.broadcast %c1_i32_10 : i32 to vector<1x512xi32>
    %25 = arith.cmpi sge, %3, %24 : vector<1x512xi32>
    %cst_11 = arith.constant 1.000000e+00 : f32
    %cst_12 = arith.constant 0.000000e+00 : f32
    %26 = vector.broadcast %cst_11 : f32 to vector<1x512xf32>
    %27 = vector.broadcast %cst_12 : f32 to vector<1x512xf32>
    %28 = arith.select %25, %26, %27 : vector<1x512xi1>, vector<1x512xf32>
    %c6_i32_13 = arith.constant 6 : i32
    %29 = vector.broadcast %c6_i32_13 : i32 to vector<1x512xi32>
    %30 = arith.cmpi sle, %3, %29 : vector<1x512xi32>
    %cst_14 = arith.constant 1.000000e+00 : f32
    %cst_15 = arith.constant 0.000000e+00 : f32
    %31 = vector.broadcast %cst_14 : f32 to vector<1x512xf32>
    %32 = vector.broadcast %cst_15 : f32 to vector<1x512xf32>
    %33 = arith.select %30, %31, %32 : vector<1x512xi1>, vector<1x512xf32>
    %34 = arith.mulf %8, %18 : vector<1x512xf32>
    %35 = arith.mulf %34, %28 : vector<1x512xf32>
    %36 = arith.mulf %8, %18 : vector<1x512xf32>
    %37 = arith.mulf %8, %18 : vector<1x512xf32>
    %38 = arith.mulf %37, %33 : vector<1x512xf32>
    %39 = arith.mulf %8, %28 : vector<1x512xf32>
    %40 = arith.mulf %8, %33 : vector<1x512xf32>
    %41 = arith.mulf %8, %23 : vector<1x512xf32>
    %42 = arith.mulf %41, %28 : vector<1x512xf32>
    %43 = arith.mulf %8, %23 : vector<1x512xf32>
    %44 = arith.mulf %8, %23 : vector<1x512xf32>
    %45 = arith.mulf %44, %33 : vector<1x512xf32>
    %46 = arith.mulf %18, %28 : vector<1x512xf32>
    %47 = arith.mulf %18, %33 : vector<1x512xf32>
    %48 = arith.mulf %23, %28 : vector<1x512xf32>
    %49 = arith.mulf %23, %33 : vector<1x512xf32>
    %50 = arith.mulf %13, %18 : vector<1x512xf32>
    %51 = arith.mulf %50, %28 : vector<1x512xf32>
    %52 = arith.mulf %13, %18 : vector<1x512xf32>
    %53 = arith.mulf %13, %18 : vector<1x512xf32>
    %54 = arith.mulf %53, %33 : vector<1x512xf32>
    %55 = arith.mulf %13, %28 : vector<1x512xf32>
    %56 = arith.mulf %13, %33 : vector<1x512xf32>
    %57 = arith.mulf %13, %23 : vector<1x512xf32>
    %58 = arith.mulf %57, %28 : vector<1x512xf32>
    %59 = arith.mulf %13, %23 : vector<1x512xf32>
    %60 = arith.mulf %13, %23 : vector<1x512xf32>
    %61 = arith.mulf %60, %33 : vector<1x512xf32>
    %c0_16 = arith.constant 0 : index
    %c0_17 = arith.constant 0 : index
    %c0_18 = arith.constant 0 : index
    %62 = vector.load %arg1[%c0_16, %c0_17, %c0_18] : memref<1x8x512xf32, #tpu.memory_space<vmem>>, vector<1x8x512xf32>
    %63 = vector.shape_cast %62 : vector<1x8x512xf32> to vector<8x512xf32>
    %c73_i32 = arith.constant 73 : i32
    %64 = tpu.dynamic_rotate %63 by %c73_i32 dim 1 : vector<8x512xf32>, i32 -> vector<8x512xf32>
    %65 = vector.broadcast %35 : vector<1x512xf32> to vector<8x512xf32>
    %66 = arith.mulf %64, %65 : vector<8x512xf32>
    %c0_19 = arith.constant 0 : index
    %c0_20 = arith.constant 0 : index
    %67 = vector.load %arg8[%c0_19, %c0_20] : memref<216x512xf32, #tpu.memory_space<vmem>>, vector<8x512xf32>
    tpu.vector_store %arg8[%c0_19, %c0_20], %66 {strides = array<i32>} : memref<216x512xf32, #tpu.memory_space<vmem>>, vector<8x512xf32>,
    %c72_i32 = arith.constant 72 : i32
    %68 = tpu.dynamic_rotate %63 by %c72_i32 dim 1 : vector<8x512xf32>, i32 -> vector<8x512xf32>
    %69 = vector.broadcast %36 : vector<1x512xf32> to vector<8x512xf32>
    %70 = arith.mulf %68, %69 : vector<8x512xf32>
    %c8 = arith.constant 8 : index
    %c0_21 = arith.constant 0 : index
    %71 = vector.load %arg8[%c8, %c0_21] : memref<216x512xf32, #tpu.memory_space<vmem>>, vector<8x512xf32>
    tpu.vector_store %arg8[%c8, %c0_21], %70 {strides = array<i32>} : memref<216x512xf32, #tpu.memory_space<vmem>>, vector<8x512xf32>,
    %c71_i32 = arith.constant 71 : i32
    %72 = tpu.dynamic_rotate %63 by %c71_i32 dim 1 : vector<8x512xf32>, i32 -> vector<8x512xf32>
    %73 = vector.broadcast %38 : vector<1x512xf32> to vector<8x512xf32>
    %74 = arith.mulf %72, %73 : vector<8x512xf32>
    %c16 = arith.constant 16 : index
    %c0_22 = arith.constant 0 : index
    %75 = vector.load %arg8[%c16, %c0_22] : memref<216x512xf32, #tpu.memory_space<vmem>>, vector<8x512xf32>
    tpu.vector_store %arg8[%c16, %c0_22], %74 {strides = array<i32>} : memref<216x512xf32, #tpu.memory_space<vmem>>, vector<8x512xf32>,
    %c65_i32 = arith.constant 65 : i32
    %76 = tpu.dynamic_rotate %63 by %c65_i32 dim 1 : vector<8x512xf32>, i32 -> vector<8x512xf32>
    %77 = vector.broadcast %39 : vector<1x512xf32> to vector<8x512xf32>
    %78 = arith.mulf %76, %77 : vector<8x512xf32>
    %c24 = arith.constant 24 : index
    %c0_23 = arith.constant 0 : index
    %79 = vector.load %arg8[%c24, %c0_23] : memref<216x512xf32, #tpu.memory_space<vmem>>, vector<8x512xf32>
    tpu.vector_store %arg8[%c24, %c0_23], %78 {strides = array<i32>} : memref<216x512xf32, #tpu.memory_space<vmem>>, vector<8x512xf32>,
    %c64_i32 = arith.constant 64 : i32
    %80 = tpu.dynamic_rotate %63 by %c64_i32 dim 1 : vector<8x512xf32>, i32 -> vector<8x512xf32>
    %81 = vector.broadcast %8 : vector<1x512xf32> to vector<8x512xf32>
    %82 = arith.mulf %80, %81 : vector<8x512xf32>
    %c32 = arith.constant 32 : index
    %c0_24 = arith.constant 0 : index
    %83 = vector.load %arg8[%c32, %c0_24] : memref<216x512xf32, #tpu.memory_space<vmem>>, vector<8x512xf32>
    tpu.vector_store %arg8[%c32, %c0_24], %82 {strides = array<i32>} : memref<216x512xf32, #tpu.memory_space<vmem>>, vector<8x512xf32>,
    %c63_i32 = arith.constant 63 : i32
    %84 = tpu.dynamic_rotate %63 by %c63_i32 dim 1 : vector<8x512xf32>, i32 -> vector<8x512xf32>
    %85 = vector.broadcast %40 : vector<1x512xf32> to vector<8x512xf32>
    %86 = arith.mulf %84, %85 : vector<8x512xf32>
    %c40 = arith.constant 40 : index
    %c0_25 = arith.constant 0 : index
    %87 = vector.load %arg8[%c40, %c0_25] : memref<216x512xf32, #tpu.memory_space<vmem>>, vector<8x512xf32>
    tpu.vector_store %arg8[%c40, %c0_25], %86 {strides = array<i32>} : memref<216x512xf32, #tpu.memory_space<vmem>>, vector<8x512xf32>,
    %c57_i32 = arith.constant 57 : i32
    %88 = tpu.dynamic_rotate %63 by %c57_i32 dim 1 : vector<8x512xf32>, i32 -> vector<8x512xf32>
    %89 = vector.broadcast %42 : vector<1x512xf32> to vector<8x512xf32>
    %90 = arith.mulf %88, %89 : vector<8x512xf32>
    %c48 = arith.constant 48 : index
    %c0_26 = arith.constant 0 : index
    %91 = vector.load %arg8[%c48, %c0_26] : memref<216x512xf32, #tpu.memory_space<vmem>>, vector<8x512xf32>
    tpu.vector_store %arg8[%c48, %c0_26], %90 {strides = array<i32>} : memref<216x512xf32, #tpu.memory_space<vmem>>, vector<8x512xf32>,
    %c56_i32 = arith.constant 56 : i32
    %92 = tpu.dynamic_rotate %63 by %c56_i32 dim 1 : vector<8x512xf32>, i32 -> vector<8x512xf32>
    %93 = vector.broadcast %43 : vector<1x512xf32> to vector<8x512xf32>
    %94 = arith.mulf %92, %93 : vector<8x512xf32>
    %c56 = arith.constant 56 : index
    %c0_27 = arith.constant 0 : index
    %95 = vector.load %arg8[%c56, %c0_27] : memref<216x512xf32, #tpu.memory_space<vmem>>, vector<8x512xf32>
    tpu.vector_store %arg8[%c56, %c0_27], %94 {strides = array<i32>} : memref<216x512xf32, #tpu.memory_space<vmem>>, vector<8x512xf32>,
    %c55_i32 = arith.constant 55 : i32
    %96 = tpu.dynamic_rotate %63 by %c55_i32 dim 1 : vector<8x512xf32>, i32 -> vector<8x512xf32>
    %97 = vector.broadcast %45 : vector<1x512xf32> to vector<8x512xf32>
    %98 = arith.mulf %96, %97 : vector<8x512xf32>
    %c64 = arith.constant 64 : index
    %c0_28 = arith.constant 0 : index
    %99 = vector.load %arg8[%c64, %c0_28] : memref<216x512xf32, #tpu.memory_space<vmem>>, vector<8x512xf32>
    tpu.vector_store %arg8[%c64, %c0_28], %98 {strides = array<i32>} : memref<216x512xf32, #tpu.memory_space<vmem>>, vector<8x512xf32>,
    %c9_i32 = arith.constant 9 : i32
    %100 = tpu.dynamic_rotate %63 by %c9_i32 dim 1 : vector<8x512xf32>, i32 -> vector<8x512xf32>
    %101 = vector.broadcast %46 : vector<1x512xf32> to vector<8x512xf32>
    %102 = arith.mulf %100, %101 : vector<8x512xf32>
    %c72 = arith.constant 72 : index
    %c0_29 = arith.constant 0 : index
    %103 = vector.load %arg8[%c72, %c0_29] : memref<216x512xf32, #tpu.memory_space<vmem>>, vector<8x512xf32>
    tpu.vector_store %arg8[%c72, %c0_29], %102 {strides = array<i32>} : memref<216x512xf32, #tpu.memory_space<vmem>>, vector<8x512xf32>,
    %c8_i32 = arith.constant 8 : i32
    %104 = tpu.dynamic_rotate %63 by %c8_i32 dim 1 : vector<8x512xf32>, i32 -> vector<8x512xf32>
    %105 = vector.broadcast %18 : vector<1x512xf32> to vector<8x512xf32>
    %106 = arith.mulf %104, %105 : vector<8x512xf32>
    %c80 = arith.constant 80 : index
    %c0_30 = arith.constant 0 : index
    %107 = vector.load %arg8[%c80, %c0_30] : memref<216x512xf32, #tpu.memory_space<vmem>>, vector<8x512xf32>
    tpu.vector_store %arg8[%c80, %c0_30], %106 {strides = array<i32>} : memref<216x512xf32, #tpu.memory_space<vmem>>, vector<8x512xf32>,
    %c7_i32 = arith.constant 7 : i32
    %108 = tpu.dynamic_rotate %63 by %c7_i32 dim 1 : vector<8x512xf32>, i32 -> vector<8x512xf32>
    %109 = vector.broadcast %47 : vector<1x512xf32> to vector<8x512xf32>
    %110 = arith.mulf %108, %109 : vector<8x512xf32>
    %c88 = arith.constant 88 : index
    %c0_31 = arith.constant 0 : index
    %111 = vector.load %arg8[%c88, %c0_31] : memref<216x512xf32, #tpu.memory_space<vmem>>, vector<8x512xf32>
    tpu.vector_store %arg8[%c88, %c0_31], %110 {strides = array<i32>} : memref<216x512xf32, #tpu.memory_space<vmem>>, vector<8x512xf32>,
    %c1_i32_32 = arith.constant 1 : i32
    %112 = tpu.dynamic_rotate %63 by %c1_i32_32 dim 1 : vector<8x512xf32>, i32 -> vector<8x512xf32>
    %113 = vector.broadcast %28 : vector<1x512xf32> to vector<8x512xf32>
    %114 = arith.mulf %112, %113 : vector<8x512xf32>
    %c96 = arith.constant 96 : index
    %c0_33 = arith.constant 0 : index
    %115 = vector.load %arg8[%c96, %c0_33] : memref<216x512xf32, #tpu.memory_space<vmem>>, vector<8x512xf32>
    tpu.vector_store %arg8[%c96, %c0_33], %114 {strides = array<i32>} : memref<216x512xf32, #tpu.memory_space<vmem>>, vector<8x512xf32>,
    %c104 = arith.constant 104 : index
    %c0_34 = arith.constant 0 : index
    %116 = vector.load %arg8[%c104, %c0_34] : memref<216x512xf32, #tpu.memory_space<vmem>>, vector<8x512xf32>
    tpu.vector_store %arg8[%c104, %c0_34], %63 {strides = array<i32>} : memref<216x512xf32, #tpu.memory_space<vmem>>, vector<8x512xf32>,
    %c511_i32 = arith.constant 511 : i32
    %117 = tpu.dynamic_rotate %63 by %c511_i32 dim 1 : vector<8x512xf32>, i32 -> vector<8x512xf32>
    %118 = vector.broadcast %33 : vector<1x512xf32> to vector<8x512xf32>
    %119 = arith.mulf %117, %118 : vector<8x512xf32>
    %c112 = arith.constant 112 : index
    %c0_35 = arith.constant 0 : index
    %120 = vector.load %arg8[%c112, %c0_35] : memref<216x512xf32, #tpu.memory_space<vmem>>, vector<8x512xf32>
    tpu.vector_store %arg8[%c112, %c0_35], %119 {strides = array<i32>} : memref<216x512xf32, #tpu.memory_space<vmem>>, vector<8x512xf32>,
    %c505_i32 = arith.constant 505 : i32
    %121 = tpu.dynamic_rotate %63 by %c505_i32 dim 1 : vector<8x512xf32>, i32 -> vector<8x512xf32>
    %122 = vector.broadcast %48 : vector<1x512xf32> to vector<8x512xf32>
    %123 = arith.mulf %121, %122 : vector<8x512xf32>
    %c120 = arith.constant 120 : index
    %c0_36 = arith.constant 0 : index
    %124 = vector.load %arg8[%c120, %c0_36] : memref<216x512xf32, #tpu.memory_space<vmem>>, vector<8x512xf32>
    tpu.vector_store %arg8[%c120, %c0_36], %123 {strides = array<i32>} : memref<216x512xf32, #tpu.memory_space<vmem>>, vector<8x512xf32>,
    %c504_i32 = arith.constant 504 : i32
    %125 = tpu.dynamic_rotate %63 by %c504_i32 dim 1 : vector<8x512xf32>, i32 -> vector<8x512xf32>
    %126 = vector.broadcast %23 : vector<1x512xf32> to vector<8x512xf32>
    %127 = arith.mulf %125, %126 : vector<8x512xf32>
    %c128 = arith.constant 128 : index
    %c0_37 = arith.constant 0 : index
    %128 = vector.load %arg8[%c128, %c0_37] : memref<216x512xf32, #tpu.memory_space<vmem>>, vector<8x512xf32>
    tpu.vector_store %arg8[%c128, %c0_37], %127 {strides = array<i32>} : memref<216x512xf32, #tpu.memory_space<vmem>>, vector<8x512xf32>,
    %c503_i32 = arith.constant 503 : i32
    %129 = tpu.dynamic_rotate %63 by %c503_i32 dim 1 : vector<8x512xf32>, i32 -> vector<8x512xf32>
    %130 = vector.broadcast %49 : vector<1x512xf32> to vector<8x512xf32>
    %131 = arith.mulf %129, %130 : vector<8x512xf32>
    %c136 = arith.constant 136 : index
    %c0_38 = arith.constant 0 : index
    %132 = vector.load %arg8[%c136, %c0_38] : memref<216x512xf32, #tpu.memory_space<vmem>>, vector<8x512xf32>
    tpu.vector_store %arg8[%c136, %c0_38], %131 {strides = array<i32>} : memref<216x512xf32, #tpu.memory_space<vmem>>, vector<8x512xf32>,
    %c457_i32 = arith.constant 457 : i32
    %133 = tpu.dynamic_rotate %63 by %c457_i32 dim 1 : vector<8x512xf32>, i32 -> vector<8x512xf32>
    %134 = vector.broadcast %51 : vector<1x512xf32> to vector<8x512xf32>
    %135 = arith.mulf %133, %134 : vector<8x512xf32>
    %c144 = arith.constant 144 : index
    %c0_39 = arith.constant 0 : index
    %136 = vector.load %arg8[%c144, %c0_39] : memref<216x512xf32, #tpu.memory_space<vmem>>, vector<8x512xf32>
    tpu.vector_store %arg8[%c144, %c0_39], %135 {strides = array<i32>} : memref<216x512xf32, #tpu.memory_space<vmem>>, vector<8x512xf32>,
    %c456_i32 = arith.constant 456 : i32
    %137 = tpu.dynamic_rotate %63 by %c456_i32 dim 1 : vector<8x512xf32>, i32 -> vector<8x512xf32>
    %138 = vector.broadcast %52 : vector<1x512xf32> to vector<8x512xf32>
    %139 = arith.mulf %137, %138 : vector<8x512xf32>
    %c152 = arith.constant 152 : index
    %c0_40 = arith.constant 0 : index
    %140 = vector.load %arg8[%c152, %c0_40] : memref<216x512xf32, #tpu.memory_space<vmem>>, vector<8x512xf32>
    tpu.vector_store %arg8[%c152, %c0_40], %139 {strides = array<i32>} : memref<216x512xf32, #tpu.memory_space<vmem>>, vector<8x512xf32>,
    %c455_i32 = arith.constant 455 : i32
    %141 = tpu.dynamic_rotate %63 by %c455_i32 dim 1 : vector<8x512xf32>, i32 -> vector<8x512xf32>
    %142 = vector.broadcast %54 : vector<1x512xf32> to vector<8x512xf32>
    %143 = arith.mulf %141, %142 : vector<8x512xf32>
    %c160 = arith.constant 160 : index
    %c0_41 = arith.constant 0 : index
    %144 = vector.load %arg8[%c160, %c0_41] : memref<216x512xf32, #tpu.memory_space<vmem>>, vector<8x512xf32>
    tpu.vector_store %arg8[%c160, %c0_41], %143 {strides = array<i32>} : memref<216x512xf32, #tpu.memory_space<vmem>>, vector<8x512xf32>,
    %c449_i32 = arith.constant 449 : i32
    %145 = tpu.dynamic_rotate %63 by %c449_i32 dim 1 : vector<8x512xf32>, i32 -> vector<8x512xf32>
    %146 = vector.broadcast %55 : vector<1x512xf32> to vector<8x512xf32>
    %147 = arith.mulf %145, %146 : vector<8x512xf32>
    %c168 = arith.constant 168 : index
    %c0_42 = arith.constant 0 : index
    %148 = vector.load %arg8[%c168, %c0_42] : memref<216x512xf32, #tpu.memory_space<vmem>>, vector<8x512xf32>
    tpu.vector_store %arg8[%c168, %c0_42], %147 {strides = array<i32>} : memref<216x512xf32, #tpu.memory_space<vmem>>, vector<8x512xf32>,
    %c448_i32 = arith.constant 448 : i32
    %149 = tpu.dynamic_rotate %63 by %c448_i32 dim 1 : vector<8x512xf32>, i32 -> vector<8x512xf32>
    %150 = vector.broadcast %13 : vector<1x512xf32> to vector<8x512xf32>
    %151 = arith.mulf %149, %150 : vector<8x512xf32>
    %c176 = arith.constant 176 : index
    %c0_43 = arith.constant 0 : index
    %152 = vector.load %arg8[%c176, %c0_43] : memref<216x512xf32, #tpu.memory_space<vmem>>, vector<8x512xf32>
    tpu.vector_store %arg8[%c176, %c0_43], %151 {strides = array<i32>} : memref<216x512xf32, #tpu.memory_space<vmem>>, vector<8x512xf32>,
    %c447_i32 = arith.constant 447 : i32
    %153 = tpu.dynamic_rotate %63 by %c447_i32 dim 1 : vector<8x512xf32>, i32 -> vector<8x512xf32>
    %154 = vector.broadcast %56 : vector<1x512xf32> to vector<8x512xf32>
    %155 = arith.mulf %153, %154 : vector<8x512xf32>
    %c184 = arith.constant 184 : index
    %c0_44 = arith.constant 0 : index
    %156 = vector.load %arg8[%c184, %c0_44] : memref<216x512xf32, #tpu.memory_space<vmem>>, vector<8x512xf32>
    tpu.vector_store %arg8[%c184, %c0_44], %155 {strides = array<i32>} : memref<216x512xf32, #tpu.memory_space<vmem>>, vector<8x512xf32>,
    %c441_i32 = arith.constant 441 : i32
    %157 = tpu.dynamic_rotate %63 by %c441_i32 dim 1 : vector<8x512xf32>, i32 -> vector<8x512xf32>
    %158 = vector.broadcast %58 : vector<1x512xf32> to vector<8x512xf32>
    %159 = arith.mulf %157, %158 : vector<8x512xf32>
    %c192 = arith.constant 192 : index
    %c0_45 = arith.constant 0 : index
    %160 = vector.load %arg8[%c192, %c0_45] : memref<216x512xf32, #tpu.memory_space<vmem>>, vector<8x512xf32>
    tpu.vector_store %arg8[%c192, %c0_45], %159 {strides = array<i32>} : memref<216x512xf32, #tpu.memory_space<vmem>>, vector<8x512xf32>,
    %c440_i32 = arith.constant 440 : i32
    %161 = tpu.dynamic_rotate %63 by %c440_i32 dim 1 : vector<8x512xf32>, i32 -> vector<8x512xf32>
    %162 = vector.broadcast %59 : vector<1x512xf32> to vector<8x512xf32>
    %163 = arith.mulf %161, %162 : vector<8x512xf32>
    %c200 = arith.constant 200 : index
    %c0_46 = arith.constant 0 : index
    %164 = vector.load %arg8[%c200, %c0_46] : memref<216x512xf32, #tpu.memory_space<vmem>>, vector<8x512xf32>
    tpu.vector_store %arg8[%c200, %c0_46], %163 {strides = array<i32>} : memref<216x512xf32, #tpu.memory_space<vmem>>, vector<8x512xf32>,
    %c439_i32 = arith.constant 439 : i32
    %165 = tpu.dynamic_rotate %63 by %c439_i32 dim 1 : vector<8x512xf32>, i32 -> vector<8x512xf32>
    %166 = vector.broadcast %61 : vector<1x512xf32> to vector<8x512xf32>
    %167 = arith.mulf %165, %166 : vector<8x512xf32>
    %c208 = arith.constant 208 : index
    %c0_47 = arith.constant 0 : index
    %168 = vector.load %arg8[%c208, %c0_47] : memref<216x512xf32, #tpu.memory_space<vmem>>, vector<8x512xf32>
    tpu.vector_store %arg8[%c208, %c0_47], %167 {strides = array<i32>} : memref<216x512xf32, #tpu.memory_space<vmem>>, vector<8x512xf32>,
    %c0_48 = arith.constant 0 : index
    %c0_49 = arith.constant 0 : index
    %169 = vector.load %arg3[%c0_48, %c0_49] : memref<4x216xf32, #tpu.memory_space<vmem>>, vector<4x216xf32>
    %c0_50 = arith.constant 0 : index
    %c0_51 = arith.constant 0 : index
    %170 = vector.load %arg8[%c0_50, %c0_51] : memref<216x512xf32, #tpu.memory_space<vmem>>, vector<216x512xf32>
    %cst_52 = arith.constant dense<0.000000e+00> : vector<4x512xf32>
    %171 = tpu.matmul %169, %170, %cst_52 {dimension_numbers = #tpu.dot_dimension_numbers<[1], [0], [0], [1], [0, 0, 1, 1], [], []>} : vector<4x216xf32>, vector<216x512xf32>, vector<4x512xf32> -> vector<4x512xf32>
    %c0_53 = arith.constant 0 : index
    %c0_54 = arith.constant 0 : index
    %172 = vector.load %arg4[%c0_53, %c0_54] : memref<4x1xf32, #tpu.memory_space<vmem>>, vector<4x1xf32>
    %173 = vector.broadcast %172 : vector<4x1xf32> to vector<4x512xf32>
    %174 = arith.addf %171, %173 : vector<4x512xf32>
    %cst_55 = arith.constant 0.000000e+00 : f32
    %175 = vector.broadcast %cst_55 : f32 to vector<4x512xf32>
    %176 = arith.maximumf %174, %175 : vector<4x512xf32>
    %c73_i32_56 = arith.constant 73 : i32
    %177 = tpu.dynamic_rotate %176 by %c73_i32_56 dim 1 : vector<4x512xf32>, i32 -> vector<4x512xf32>
    %178 = vector.broadcast %35 : vector<1x512xf32> to vector<4x512xf32>
    %179 = arith.mulf %177, %178 : vector<4x512xf32>
    %c0_57 = arith.constant 0 : index
    %c0_58 = arith.constant 0 : index
    %180 = vector.load %arg9[%c0_57, %c0_58] : memref<108x512xf32, #tpu.memory_space<vmem>>, vector<4x512xf32>
    tpu.vector_store %arg9[%c0_57, %c0_58], %179 {strides = array<i32>} : memref<108x512xf32, #tpu.memory_space<vmem>>, vector<4x512xf32>,
    %c72_i32_59 = arith.constant 72 : i32
    %181 = tpu.dynamic_rotate %176 by %c72_i32_59 dim 1 : vector<4x512xf32>, i32 -> vector<4x512xf32>
    %182 = vector.broadcast %36 : vector<1x512xf32> to vector<4x512xf32>
    %183 = arith.mulf %181, %182 : vector<4x512xf32>
    %c4 = arith.constant 4 : index
    %c0_60 = arith.constant 0 : index
    %184 = vector.load %arg9[%c4, %c0_60] : memref<108x512xf32, #tpu.memory_space<vmem>>, vector<4x512xf32>
    tpu.vector_store %arg9[%c4, %c0_60], %183 {strides = array<i32>} : memref<108x512xf32, #tpu.memory_space<vmem>>, vector<4x512xf32>,
    %c71_i32_61 = arith.constant 71 : i32
    %185 = tpu.dynamic_rotate %176 by %c71_i32_61 dim 1 : vector<4x512xf32>, i32 -> vector<4x512xf32>
    %186 = vector.broadcast %38 : vector<1x512xf32> to vector<4x512xf32>
    %187 = arith.mulf %185, %186 : vector<4x512xf32>
    %c8_62 = arith.constant 8 : index
    %c0_63 = arith.constant 0 : index
    %188 = vector.load %arg9[%c8_62, %c0_63] : memref<108x512xf32, #tpu.memory_space<vmem>>, vector<4x512xf32>
    tpu.vector_store %arg9[%c8_62, %c0_63], %187 {strides = array<i32>} : memref<108x512xf32, #tpu.memory_space<vmem>>, vector<4x512xf32>,
    %c65_i32_64 = arith.constant 65 : i32
    %189 = tpu.dynamic_rotate %176 by %c65_i32_64 dim 1 : vector<4x512xf32>, i32 -> vector<4x512xf32>
    %190 = vector.broadcast %39 : vector<1x512xf32> to vector<4x512xf32>
    %191 = arith.mulf %189, %190 : vector<4x512xf32>
    %c12 = arith.constant 12 : index
    %c0_65 = arith.constant 0 : index
    %192 = vector.load %arg9[%c12, %c0_65] : memref<108x512xf32, #tpu.memory_space<vmem>>, vector<4x512xf32>
    tpu.vector_store %arg9[%c12, %c0_65], %191 {strides = array<i32>} : memref<108x512xf32, #tpu.memory_space<vmem>>, vector<4x512xf32>,
    %c64_i32_66 = arith.constant 64 : i32
    %193 = tpu.dynamic_rotate %176 by %c64_i32_66 dim 1 : vector<4x512xf32>, i32 -> vector<4x512xf32>
    %194 = vector.broadcast %8 : vector<1x512xf32> to vector<4x512xf32>
    %195 = arith.mulf %193, %194 : vector<4x512xf32>
    %c16_67 = arith.constant 16 : index
    %c0_68 = arith.constant 0 : index
    %196 = vector.load %arg9[%c16_67, %c0_68] : memref<108x512xf32, #tpu.memory_space<vmem>>, vector<4x512xf32>
    tpu.vector_store %arg9[%c16_67, %c0_68], %195 {strides = array<i32>} : memref<108x512xf32, #tpu.memory_space<vmem>>, vector<4x512xf32>,
    %c63_i32_69 = arith.constant 63 : i32
    %197 = tpu.dynamic_rotate %176 by %c63_i32_69 dim 1 : vector<4x512xf32>, i32 -> vector<4x512xf32>
    %198 = vector.broadcast %40 : vector<1x512xf32> to vector<4x512xf32>
    %199 = arith.mulf %197, %198 : vector<4x512xf32>
    %c20 = arith.constant 20 : index
    %c0_70 = arith.constant 0 : index
    %200 = vector.load %arg9[%c20, %c0_70] : memref<108x512xf32, #tpu.memory_space<vmem>>, vector<4x512xf32>
    tpu.vector_store %arg9[%c20, %c0_70], %199 {strides = array<i32>} : memref<108x512xf32, #tpu.memory_space<vmem>>, vector<4x512xf32>,
    %c57_i32_71 = arith.constant 57 : i32
    %201 = tpu.dynamic_rotate %176 by %c57_i32_71 dim 1 : vector<4x512xf32>, i32 -> vector<4x512xf32>
    %202 = vector.broadcast %42 : vector<1x512xf32> to vector<4x512xf32>
    %203 = arith.mulf %201, %202 : vector<4x512xf32>
    %c24_72 = arith.constant 24 : index
    %c0_73 = arith.constant 0 : index
    %204 = vector.load %arg9[%c24_72, %c0_73] : memref<108x512xf32, #tpu.memory_space<vmem>>, vector<4x512xf32>
    tpu.vector_store %arg9[%c24_72, %c0_73], %203 {strides = array<i32>} : memref<108x512xf32, #tpu.memory_space<vmem>>, vector<4x512xf32>,
    %c56_i32_74 = arith.constant 56 : i32
    %205 = tpu.dynamic_rotate %176 by %c56_i32_74 dim 1 : vector<4x512xf32>, i32 -> vector<4x512xf32>
    %206 = vector.broadcast %43 : vector<1x512xf32> to vector<4x512xf32>
    %207 = arith.mulf %205, %206 : vector<4x512xf32>
    %c28 = arith.constant 28 : index
    %c0_75 = arith.constant 0 : index
    %208 = vector.load %arg9[%c28, %c0_75] : memref<108x512xf32, #tpu.memory_space<vmem>>, vector<4x512xf32>
    tpu.vector_store %arg9[%c28, %c0_75], %207 {strides = array<i32>} : memref<108x512xf32, #tpu.memory_space<vmem>>, vector<4x512xf32>,
    %c55_i32_76 = arith.constant 55 : i32
    %209 = tpu.dynamic_rotate %176 by %c55_i32_76 dim 1 : vector<4x512xf32>, i32 -> vector<4x512xf32>
    %210 = vector.broadcast %45 : vector<1x512xf32> to vector<4x512xf32>
    %211 = arith.mulf %209, %210 : vector<4x512xf32>
    %c32_77 = arith.constant 32 : index
    %c0_78 = arith.constant 0 : index
    %212 = vector.load %arg9[%c32_77, %c0_78] : memref<108x512xf32, #tpu.memory_space<vmem>>, vector<4x512xf32>
    tpu.vector_store %arg9[%c32_77, %c0_78], %211 {strides = array<i32>} : memref<108x512xf32, #tpu.memory_space<vmem>>, vector<4x512xf32>,
    %c9_i32_79 = arith.constant 9 : i32
    %213 = tpu.dynamic_rotate %176 by %c9_i32_79 dim 1 : vector<4x512xf32>, i32 -> vector<4x512xf32>
    %214 = vector.broadcast %46 : vector<1x512xf32> to vector<4x512xf32>
    %215 = arith.mulf %213, %214 : vector<4x512xf32>
    %c36 = arith.constant 36 : index
    %c0_80 = arith.constant 0 : index
    %216 = vector.load %arg9[%c36, %c0_80] : memref<108x512xf32, #tpu.memory_space<vmem>>, vector<4x512xf32>
    tpu.vector_store %arg9[%c36, %c0_80], %215 {strides = array<i32>} : memref<108x512xf32, #tpu.memory_space<vmem>>, vector<4x512xf32>,
    %c8_i32_81 = arith.constant 8 : i32
    %217 = tpu.dynamic_rotate %176 by %c8_i32_81 dim 1 : vector<4x512xf32>, i32 -> vector<4x512xf32>
    %218 = vector.broadcast %18 : vector<1x512xf32> to vector<4x512xf32>
    %219 = arith.mulf %217, %218 : vector<4x512xf32>
    %c40_82 = arith.constant 40 : index
    %c0_83 = arith.constant 0 : index
    %220 = vector.load %arg9[%c40_82, %c0_83] : memref<108x512xf32, #tpu.memory_space<vmem>>, vector<4x512xf32>
    tpu.vector_store %arg9[%c40_82, %c0_83], %219 {strides = array<i32>} : memref<108x512xf32, #tpu.memory_space<vmem>>, vector<4x512xf32>,
    %c7_i32_84 = arith.constant 7 : i32
    %221 = tpu.dynamic_rotate %176 by %c7_i32_84 dim 1 : vector<4x512xf32>, i32 -> vector<4x512xf32>
    %222 = vector.broadcast %47 : vector<1x512xf32> to vector<4x512xf32>
    %223 = arith.mulf %221, %222 : vector<4x512xf32>
    %c44 = arith.constant 44 : index
    %c0_85 = arith.constant 0 : index
    %224 = vector.load %arg9[%c44, %c0_85] : memref<108x512xf32, #tpu.memory_space<vmem>>, vector<4x512xf32>
    tpu.vector_store %arg9[%c44, %c0_85], %223 {strides = array<i32>} : memref<108x512xf32, #tpu.memory_space<vmem>>, vector<4x512xf32>,
    %c1_i32_86 = arith.constant 1 : i32
    %225 = tpu.dynamic_rotate %176 by %c1_i32_86 dim 1 : vector<4x512xf32>, i32 -> vector<4x512xf32>
    %226 = vector.broadcast %28 : vector<1x512xf32> to vector<4x512xf32>
    %227 = arith.mulf %225, %226 : vector<4x512xf32>
    %c48_87 = arith.constant 48 : index
    %c0_88 = arith.constant 0 : index
    %228 = vector.load %arg9[%c48_87, %c0_88] : memref<108x512xf32, #tpu.memory_space<vmem>>, vector<4x512xf32>
    tpu.vector_store %arg9[%c48_87, %c0_88], %227 {strides = array<i32>} : memref<108x512xf32, #tpu.memory_space<vmem>>, vector<4x512xf32>,
    %c52 = arith.constant 52 : index
    %c0_89 = arith.constant 0 : index
    %229 = vector.load %arg9[%c52, %c0_89] : memref<108x512xf32, #tpu.memory_space<vmem>>, vector<4x512xf32>
    tpu.vector_store %arg9[%c52, %c0_89], %176 {strides = array<i32>} : memref<108x512xf32, #tpu.memory_space<vmem>>, vector<4x512xf32>,
    %c511_i32_90 = arith.constant 511 : i32
    %230 = tpu.dynamic_rotate %176 by %c511_i32_90 dim 1 : vector<4x512xf32>, i32 -> vector<4x512xf32>
    %231 = vector.broadcast %33 : vector<1x512xf32> to vector<4x512xf32>
    %232 = arith.mulf %230, %231 : vector<4x512xf32>
    %c56_91 = arith.constant 56 : index
    %c0_92 = arith.constant 0 : index
    %233 = vector.load %arg9[%c56_91, %c0_92] : memref<108x512xf32, #tpu.memory_space<vmem>>, vector<4x512xf32>
    tpu.vector_store %arg9[%c56_91, %c0_92], %232 {strides = array<i32>} : memref<108x512xf32, #tpu.memory_space<vmem>>, vector<4x512xf32>,
    %c505_i32_93 = arith.constant 505 : i32
    %234 = tpu.dynamic_rotate %176 by %c505_i32_93 dim 1 : vector<4x512xf32>, i32 -> vector<4x512xf32>
    %235 = vector.broadcast %48 : vector<1x512xf32> to vector<4x512xf32>
    %236 = arith.mulf %234, %235 : vector<4x512xf32>
    %c60 = arith.constant 60 : index
    %c0_94 = arith.constant 0 : index
    %237 = vector.load %arg9[%c60, %c0_94] : memref<108x512xf32, #tpu.memory_space<vmem>>, vector<4x512xf32>
    tpu.vector_store %arg9[%c60, %c0_94], %236 {strides = array<i32>} : memref<108x512xf32, #tpu.memory_space<vmem>>, vector<4x512xf32>,
    %c504_i32_95 = arith.constant 504 : i32
    %238 = tpu.dynamic_rotate %176 by %c504_i32_95 dim 1 : vector<4x512xf32>, i32 -> vector<4x512xf32>
    %239 = vector.broadcast %23 : vector<1x512xf32> to vector<4x512xf32>
    %240 = arith.mulf %238, %239 : vector<4x512xf32>
    %c64_96 = arith.constant 64 : index
    %c0_97 = arith.constant 0 : index
    %241 = vector.load %arg9[%c64_96, %c0_97] : memref<108x512xf32, #tpu.memory_space<vmem>>, vector<4x512xf32>
    tpu.vector_store %arg9[%c64_96, %c0_97], %240 {strides = array<i32>} : memref<108x512xf32, #tpu.memory_space<vmem>>, vector<4x512xf32>,
    %c503_i32_98 = arith.constant 503 : i32
    %242 = tpu.dynamic_rotate %176 by %c503_i32_98 dim 1 : vector<4x512xf32>, i32 -> vector<4x512xf32>
    %243 = vector.broadcast %49 : vector<1x512xf32> to vector<4x512xf32>
    %244 = arith.mulf %242, %243 : vector<4x512xf32>
    %c68 = arith.constant 68 : index
    %c0_99 = arith.constant 0 : index
    %245 = vector.load %arg9[%c68, %c0_99] : memref<108x512xf32, #tpu.memory_space<vmem>>, vector<4x512xf32>
    tpu.vector_store %arg9[%c68, %c0_99], %244 {strides = array<i32>} : memref<108x512xf32, #tpu.memory_space<vmem>>, vector<4x512xf32>,
    %c457_i32_100 = arith.constant 457 : i32
    %246 = tpu.dynamic_rotate %176 by %c457_i32_100 dim 1 : vector<4x512xf32>, i32 -> vector<4x512xf32>
    %247 = vector.broadcast %51 : vector<1x512xf32> to vector<4x512xf32>
    %248 = arith.mulf %246, %247 : vector<4x512xf32>
    %c72_101 = arith.constant 72 : index
    %c0_102 = arith.constant 0 : index
    %249 = vector.load %arg9[%c72_101, %c0_102] : memref<108x512xf32, #tpu.memory_space<vmem>>, vector<4x512xf32>
    tpu.vector_store %arg9[%c72_101, %c0_102], %248 {strides = array<i32>} : memref<108x512xf32, #tpu.memory_space<vmem>>, vector<4x512xf32>,
    %c456_i32_103 = arith.constant 456 : i32
    %250 = tpu.dynamic_rotate %176 by %c456_i32_103 dim 1 : vector<4x512xf32>, i32 -> vector<4x512xf32>
    %251 = vector.broadcast %52 : vector<1x512xf32> to vector<4x512xf32>
    %252 = arith.mulf %250, %251 : vector<4x512xf32>
    %c76 = arith.constant 76 : index
    %c0_104 = arith.constant 0 : index
    %253 = vector.load %arg9[%c76, %c0_104] : memref<108x512xf32, #tpu.memory_space<vmem>>, vector<4x512xf32>
    tpu.vector_store %arg9[%c76, %c0_104], %252 {strides = array<i32>} : memref<108x512xf32, #tpu.memory_space<vmem>>, vector<4x512xf32>,
    %c455_i32_105 = arith.constant 455 : i32
    %254 = tpu.dynamic_rotate %176 by %c455_i32_105 dim 1 : vector<4x512xf32>, i32 -> vector<4x512xf32>
    %255 = vector.broadcast %54 : vector<1x512xf32> to vector<4x512xf32>
    %256 = arith.mulf %254, %255 : vector<4x512xf32>
    %c80_106 = arith.constant 80 : index
    %c0_107 = arith.constant 0 : index
    %257 = vector.load %arg9[%c80_106, %c0_107] : memref<108x512xf32, #tpu.memory_space<vmem>>, vector<4x512xf32>
    tpu.vector_store %arg9[%c80_106, %c0_107], %256 {strides = array<i32>} : memref<108x512xf32, #tpu.memory_space<vmem>>, vector<4x512xf32>,
    %c449_i32_108 = arith.constant 449 : i32
    %258 = tpu.dynamic_rotate %176 by %c449_i32_108 dim 1 : vector<4x512xf32>, i32 -> vector<4x512xf32>
    %259 = vector.broadcast %55 : vector<1x512xf32> to vector<4x512xf32>
    %260 = arith.mulf %258, %259 : vector<4x512xf32>
    %c84 = arith.constant 84 : index
    %c0_109 = arith.constant 0 : index
    %261 = vector.load %arg9[%c84, %c0_109] : memref<108x512xf32, #tpu.memory_space<vmem>>, vector<4x512xf32>
    tpu.vector_store %arg9[%c84, %c0_109], %260 {strides = array<i32>} : memref<108x512xf32, #tpu.memory_space<vmem>>, vector<4x512xf32>,
    %c448_i32_110 = arith.constant 448 : i32
    %262 = tpu.dynamic_rotate %176 by %c448_i32_110 dim 1 : vector<4x512xf32>, i32 -> vector<4x512xf32>
    %263 = vector.broadcast %13 : vector<1x512xf32> to vector<4x512xf32>
    %264 = arith.mulf %262, %263 : vector<4x512xf32>
    %c88_111 = arith.constant 88 : index
    %c0_112 = arith.constant 0 : index
    %265 = vector.load %arg9[%c88_111, %c0_112] : memref<108x512xf32, #tpu.memory_space<vmem>>, vector<4x512xf32>
    tpu.vector_store %arg9[%c88_111, %c0_112], %264 {strides = array<i32>} : memref<108x512xf32, #tpu.memory_space<vmem>>, vector<4x512xf32>,
    %c447_i32_113 = arith.constant 447 : i32
    %266 = tpu.dynamic_rotate %176 by %c447_i32_113 dim 1 : vector<4x512xf32>, i32 -> vector<4x512xf32>
    %267 = vector.broadcast %56 : vector<1x512xf32> to vector<4x512xf32>
    %268 = arith.mulf %266, %267 : vector<4x512xf32>
    %c92 = arith.constant 92 : index
    %c0_114 = arith.constant 0 : index
    %269 = vector.load %arg9[%c92, %c0_114] : memref<108x512xf32, #tpu.memory_space<vmem>>, vector<4x512xf32>
    tpu.vector_store %arg9[%c92, %c0_114], %268 {strides = array<i32>} : memref<108x512xf32, #tpu.memory_space<vmem>>, vector<4x512xf32>,
    %c441_i32_115 = arith.constant 441 : i32
    %270 = tpu.dynamic_rotate %176 by %c441_i32_115 dim 1 : vector<4x512xf32>, i32 -> vector<4x512xf32>
    %271 = vector.broadcast %58 : vector<1x512xf32> to vector<4x512xf32>
    %272 = arith.mulf %270, %271 : vector<4x512xf32>
    %c96_116 = arith.constant 96 : index
    %c0_117 = arith.constant 0 : index
    %273 = vector.load %arg9[%c96_116, %c0_117] : memref<108x512xf32, #tpu.memory_space<vmem>>, vector<4x512xf32>
    tpu.vector_store %arg9[%c96_116, %c0_117], %272 {strides = array<i32>} : memref<108x512xf32, #tpu.memory_space<vmem>>, vector<4x512xf32>,
    %c440_i32_118 = arith.constant 440 : i32
    %274 = tpu.dynamic_rotate %176 by %c440_i32_118 dim 1 : vector<4x512xf32>, i32 -> vector<4x512xf32>
    %275 = vector.broadcast %59 : vector<1x512xf32> to vector<4x512xf32>
    %276 = arith.mulf %274, %275 : vector<4x512xf32>
    %c100 = arith.constant 100 : index
    %c0_119 = arith.constant 0 : index
    %277 = vector.load %arg9[%c100, %c0_119] : memref<108x512xf32, #tpu.memory_space<vmem>>, vector<4x512xf32>
    tpu.vector_store %arg9[%c100, %c0_119], %276 {strides = array<i32>} : memref<108x512xf32, #tpu.memory_space<vmem>>, vector<4x512xf32>,
    %c439_i32_120 = arith.constant 439 : i32
    %278 = tpu.dynamic_rotate %176 by %c439_i32_120 dim 1 : vector<4x512xf32>, i32 -> vector<4x512xf32>
    %279 = vector.broadcast %61 : vector<1x512xf32> to vector<4x512xf32>
    %280 = arith.mulf %278, %279 : vector<4x512xf32>
    %c104_121 = arith.constant 104 : index
    %c0_122 = arith.constant 0 : index
    %281 = vector.load %arg9[%c104_121, %c0_122] : memref<108x512xf32, #tpu.memory_space<vmem>>, vector<4x512xf32>
    tpu.vector_store %arg9[%c104_121, %c0_122], %280 {strides = array<i32>} : memref<108x512xf32, #tpu.memory_space<vmem>>, vector<4x512xf32>,
    %c0_123 = arith.constant 0 : index
    %c0_124 = arith.constant 0 : index
    %282 = vector.load %arg5[%c0_123, %c0_124] : memref<4x108xf32, #tpu.memory_space<vmem>>, vector<4x108xf32>
    %c0_125 = arith.constant 0 : index
    %c0_126 = arith.constant 0 : index
    %283 = vector.load %arg9[%c0_125, %c0_126] : memref<108x512xf32, #tpu.memory_space<vmem>>, vector<108x512xf32>
    %cst_127 = arith.constant dense<0.000000e+00> : vector<4x512xf32>
    %284 = tpu.matmul %282, %283, %cst_127 {dimension_numbers = #tpu.dot_dimension_numbers<[1], [0], [0], [1], [0, 0, 1, 1], [], []>} : vector<4x108xf32>, vector<108x512xf32>, vector<4x512xf32> -> vector<4x512xf32>
    %c0_128 = arith.constant 0 : index
    %c0_129 = arith.constant 0 : index
    %285 = vector.load %arg6[%c0_128, %c0_129] : memref<4x1xf32, #tpu.memory_space<vmem>>, vector<4x1xf32>
    %286 = vector.broadcast %285 : vector<4x1xf32> to vector<4x512xf32>
    %287 = arith.addf %284, %286 : vector<4x512xf32>
    %cst_130 = arith.constant 0.000000e+00 : f32
    %288 = vector.broadcast %cst_130 : f32 to vector<4x512xf32>
    %289 = arith.maximumf %287, %288 : vector<4x512xf32>
    %c0_131 = arith.constant 0 : index
    %c0_132 = arith.constant 0 : index
    %c0_133 = arith.constant 0 : index
    %290 = vector.load %arg7[%c0_131, %c0_132, %c0_133] : memref<1x4x512xf32, #tpu.memory_space<vmem>>, vector<1x4x512xf32>
    %291 = vector.shape_cast %290 : vector<1x4x512xf32> to vector<4x512xf32>
    %292 = vector.shape_cast %289 : vector<4x512xf32> to vector<1x4x512xf32>
    tpu.vector_store %arg7[%c0_131, %c0_132, %c0_133], %292 {strides = array<i32>} : memref<1x4x512xf32, #tpu.memory_space<vmem>>, vector<1x4x512xf32>,
    return
  }
  func.func @transform_0(%arg0: i32) -> (i32, i32, i32) {
    %c0_i32 = arith.constant 0 : i32
    %c0_i32_0 = arith.constant 0 : i32
    %c0_i32_1 = arith.constant 0 : i32
    return %arg0, %c0_i32, %c0_i32_0 : i32, i32, i32
  }
  func.func @transform_1(%arg0: i32) -> (i32, i32) {
    %c0_i32 = arith.constant 0 : i32
    %c0_i32_0 = arith.constant 0 : i32
    %c0_i32_1 = arith.constant 0 : i32
    return %c0_i32, %c0_i32_0 : i32, i32
  }
  func.func @transform_2(%arg0: i32) -> (i32, i32) {
    %c0_i32 = arith.constant 0 : i32
    %c0_i32_0 = arith.constant 0 : i32
    %c0_i32_1 = arith.constant 0 : i32
    return %c0_i32, %c0_i32_0 : i32, i32
  }
  func.func @transform_3(%arg0: i32) -> (i32, i32) {
    %c0_i32 = arith.constant 0 : i32
    %c0_i32_0 = arith.constant 0 : i32
    %c0_i32_1 = arith.constant 0 : i32
    return %c0_i32, %c0_i32_0 : i32, i32
  }
  func.func @transform_4(%arg0: i32) -> (i32, i32) {
    %c0_i32 = arith.constant 0 : i32
    %c0_i32_0 = arith.constant 0 : i32
    %c0_i32_1 = arith.constant 0 : i32
    return %c0_i32, %c0_i32_0 : i32, i32
  }
  func.func @transform_5(%arg0: i32) -> (i32, i32) {
    %c0_i32 = arith.constant 0 : i32
    %c0_i32_0 = arith.constant 0 : i32
    %c0_i32_1 = arith.constant 0 : i32
    return %c0_i32, %c0_i32_0 : i32, i32
  }
  func.func @transform_6(%arg0: i32) -> (i32, i32, i32) {
    %c0_i32 = arith.constant 0 : i32
    %c0_i32_0 = arith.constant 0 : i32
    %c0_i32_1 = arith.constant 0 : i32
    return %arg0, %c0_i32, %c0_i32_0 : i32, i32, i32
  }
}

</mosaic_0001>

<bundles_post_ra>
// kernel: unet_decoder_forward.1
= control target key start
LH: loop header
LB: loop body
LE: loop exit
PB: predicated region body
PF: predicated region fallthrough
CT: control target
= control target key end

     0   :  { %s2971_s21 = smov 0   ;;  %s4612_s0 = inlined_call_operand.vmem [shape: f32[2,8,512], index: 0, kind: input, shape index: {}]   ;;  %s4613_s1 = inlined_call_operand.vmem [shape: s32[3,512], index: 1, kind: input, shape index: {}]   ;;  %s4614_s2 = inlined_call_operand.vmem [shape: f32[4,216], index: 2, kind: input, shape index: {}]   ;;  %s4615_s3 = inlined_call_operand.vmem [shape: f32[4,1], index: 3, kind: input, shape index: {}]   ;;  %s4616_s4 = inlined_call_operand.vmem [shape: f32[4,108], index: 4, kind: input, shape index: {}]   ;;  %s4617_s5 = inlined_call_operand.vmem [shape: f32[4,1], index: 5, kind: input, shape index: {}]   ;;  %s4618_s6 = inlined_call_operand.vmem [shape: f32[2,4,512], index: 6, kind: output, shape index: {}]  }
   0x1 LB: > { %s2858_s22 = sadd.s32 4294967295, %s2915_s21   ;;  %p2862_p0 = scmp.ge.s32.totalorder %s2915_s21, 1  ;;  %s2915_s21 = sphi %s2971_s21, %s16_s21  }
   0x2   : > { %p212_p1 = scmp.lt.s32.totalorder %s2915_s21, 3 }
   0x4   : > { %p213_p2 = pnand %p2862_p0, %p212_p1 }
   0x6   : > { %216 = sbr.rel (%p213_p2) target bundleno = 949 (0x3b5), region = 44 }
   0xb   : > { %p242_p3 = scmp.lt.s32.totalorder %s2858_s22, 1  ;;  %s2917_s27 = smov 121   ;;  %v3016_v4 = vld [vmem:[%s4613_s1] sm:$0x77]  ;;  %v4619_v5 = vmov 0.0   ;;  %v334_v24 = vlaneseq  ;;  %vm1846_vm7 = vcmask 719872  }
   0xc   : > { %s2918_s28 = smov 127   ;;  %s2919_s29 = smov 1   ;;  %vm258_vm0 = vcmp.le.s32.totalorder %v3016_v4, 6  ;;  %v3029_v7 = vld [vmem:[%s4613_s1 + $0x8] sm:$0x77]  ;;  %vm254_vm2 = vcmp.ge.s32.totalorder %v3016_v4, 1 }
   0xd   : > { %s4914_s22 = smov (!%p242_p3, %s2858_s22), 1  ;;  %v3024_v6 = vsel %vm258_vm0, 1.0, %v4619_v5  ;;  %vm259_vm1 = vcmp.le.s32.totalorder %v3029_v7, 6  ;;  %s2921_s10 = smov 7   ;;  %vm255_vm3 = vcmp.ge.s32.totalorder %v3029_v7, 1  ;;  %v3142_v21 = vsel %vm254_vm2, 1.0, %v4619_v5 }
   0xe   : > { %s2877_s23 = sshll.u32 %s4914_s22, 5  ;;  %v294_v8 = vrot.slane %v3024_v6, 5  ;;  %v3038_v9 = vsel %vm259_vm1, 1.0, %v4619_v5  ;;  %v282_v10 = vrot.slane %v3024_v6, 6  ;;  %s2922_s11 = smov 8   ;;  %v3145_v22 = vsel %vm255_vm3, 1.0, %v4619_v5 }
   0xf   : > { %s246_s26 = scalar_lea.vmem %s4612_s0, %s2877_s23  ;;  %v296_v12 = vrot.slane %v3038_v9, 5  ;;  %v284_v16 = vrot.slane %v3038_v9, 6  ;;  %s2923_s12 = smov 9   ;;  %v264_v23 = vrot.slane %v3142_v21, 5  ;;  %v266_v25 = vrot.slane %v3145_v22, 5 }
  0x10   : > { %v2985_v0 = vld [vmem:[%s246_s26 + $0x10] sm:$0xff]  ;;  %v2987_v1 = vld [vmem:[%s246_s26] sm:$0xff]  ;;  %v2993_v2 = vld [vmem:[%s246_s26 + $0x18] sm:$0xff]  ;;  %v3041_v11 = vrot.slane %v294_v8, 4  ;;  %v3048_v13 = vrot.slane %v282_v10, 4  ;;  %s2924_s13 = smov 55  }
  0x11   : > { %1150 = vrot.lane.b32.xlu1 %v2985_v0, %s2917_s27  ;;  %1146 = vrot.lane.b32.xlu0 %v2987_v1, %s2917_s27  ;;  %v2995_v3 = vld [vmem:[%s246_s26 + $0x8] sm:$0xff]  ;;  %v3054_v15 = vrot.slane %v296_v12, 4  ;;  %v3065_v18 = vrot.slane %v284_v16, 4  ;;  %s2925_s14 = smov 56   ;;  %s2926_s15 = smov 57   ;;  %v3153_v26 = vrot.slane %v264_v23, 4 }
  0x12   : > { %v3052_v14 = vmul.f32 %v3041_v11, %v3024_v6  ;;  %s2927_s16 = smov 63   ;;  %s2928_s17 = smov 64   ;;  %v3155_v27 = vshrl.u32 %v334_v24, 7  ;;  %v3161_v28 = vrot.slane %v266_v25, 4  ;;  %v3181_v33 = vand.u32 127, %v334_v24 }
  0x13   : > { %v3069_v19 = vmul.f32 %v3054_v15, %v3038_v9  ;;  %s2929_s18 = smov 65   ;;  %s2930_s19 = smov 71   ;;  %v3165_v29 = vmul.f32 %v3153_v26, %v3024_v6 }
  0x14   : > { %v3059_v17 = vmul.f32 %v3052_v14, %v3048_v13  ;;  %s2931_s20 = smov 72   ;;  %v3168_v30 = vsub.s32 5, %v3155_v27  ;;  %v3175_v31 = vsub.s32 1, %v3155_v27  ;;  %v3179_v32 = vmul.f32 %v3161_v28, %v3038_v9  ;;  %s2932_s23 = smov 73  }
  0x15   : > { %1152 = vrot.lane.b32.xlu1 %v2993_v2, %s2917_s27  ;;  %1148 = vrot.lane.b32.xlu0 %v2995_v3, %s2917_s27  ;;  %v3073_v20 = vmul.f32 %v3069_v19, %v3065_v18  ;;  %v3196_v40 = vsub.s32 6, %v3155_v27  ;;  %vm1154_vm4 = vcmp.lt.s32.totalorder %v3181_v33, 121  ;;  %v3216_v45 = vsub.s32 2, %v3155_v27  ;;  %s2933_s24 = smov 119   ;;  %s2934_s30 = smov 120  }
  0x16   : > { %v1168_v34 = vrot.slane %v3165_v29, %v3168_v30  ;;  %v1176_v35 = vrot.slane %v3179_v32, %v3168_v30  ;;  %v1164_v36 = vrot.slane %v3165_v29, %v3175_v31  ;;  %v1172_v37 = vrot.slane %v3179_v32, %v3175_v31 }
  0x17   : > { %v1109_v48 = vrot.slane %v3024_v6, %v3196_v40  ;;  %v1117_v49 = vrot.slane %v3038_v9, %v3196_v40  ;;  %v1113_v50 = vrot.slane %v3038_v9, %v3216_v45  ;;  %v1105_v59 = vrot.slane %v3024_v6, %v3216_v45 }
  0x18   : > { %v3200_v41 = vrot.slane %v1168_v34, %v3175_v31  ;;  %v3207_v42 = vrot.slane %v1176_v35, %v3175_v31  ;;  %v3210_v43 = vrot.slane %v1164_v36, %v3175_v31  ;;  %v3213_v44 = vrot.slane %v1172_v37, %v3175_v31  ;;  %v1729_v36 = vld [vmem:[%s4614_s2] sm:$0xff] }
  0x19   : > { %1091 = vrot.lane.b32.xlu1 %v2995_v3, %s2918_s28  ;;  %1089 = vrot.lane.b32.xlu0 %v2987_v1, %s2918_s28  ;;  %v1048_v62 = vrot.slane %v3142_v21, %v3196_v40  ;;  %vm1097_vm5 = vcmp.lt.s32.totalorder %v3181_v33, 127  ;;  %v3248_v63 = vrot.slane %v1109_v48, %v3216_v45  ;;  %v3251_v4 = vrot.slane %v1117_v49, %v3216_v45 }
  0x1a   : > { %4716 = vst [vmem:[#allocation4_spill] sm:$0xff] %v3200_v41  ;;  %4717 = vst [vmem:[#allocation5_spill] sm:$0xff] %v3207_v42  ;;  %v3254_v7 = vrot.slane %v1113_v50, %v3216_v45  ;;  %vm1036_vm6 = vcmp.lt.s32.totalorder %v3181_v33, 1  ;;  %v3260_v8 = vrot.slane %v1105_v59, %v3216_v45  ;;  %v1044_v10 = vrot.slane %v3142_v21, %v3216_v45 }
  0x1b   : > { %4718 = vst [vmem:[#allocation6_spill] sm:$0xff] %v3210_v43  ;;  %4719 = vst [vmem:[#allocation7_spill] sm:$0xff] %v3213_v44  ;;  %v1056_v12 = vrot.slane %v3145_v22, %v3196_v40  ;;  %v3269_v25 = vrot.slane %v1048_v62, %v3216_v45  ;;  %v1052_v34 = vrot.slane %v3145_v22, %v3216_v45  ;;  %vm979_vm8 = vcmp.lt.s32.totalorder %v3181_v33, 7 }
  0x1c   : > { %4720 = vst [vmem:[#allocation8_spill] sm:$0xff] %v3248_v63  ;;  %4721 = vst [vmem:[#allocation9_spill] sm:$0xff] %v3251_v4  ;;  %v3275_v35 = vmul.f32 %v3041_v11, %v3142_v21  ;;  %v1845_v40 = vcombine.high %v1729_v36, %v1729_v36  ;;  %vm4715_vm9 = vcmp.lt.s32.totalorder %v3181_v33, 8  ;;  %vm865_vm10 = vcmp.lt.s32.totalorder %v3181_v33, 9 }
  0x1d   : > { %1095 = vrot.lane.b32.xlu1 %v2993_v2, %s2918_s28  ;;  %1093 = vrot.lane.b32.xlu0 %v2985_v0, %s2918_s28  ;;  %4722 = vst [vmem:[#allocation10_spill] sm:$0xff] %v3254_v7  ;;  %4723 = vst [vmem:[#allocation11_spill] sm:$0xff] %v3260_v8  ;;  %vm806_vm11 = vcmp.lt.s32.totalorder %v3181_v33, 55  ;;  %vm747_vm12 = vcmp.lt.s32.totalorder %v3181_v33, 56  ;;  %vm688_vm13 = vcmp.lt.s32.totalorder %v3181_v33, 57  ;;  %vm629_vm14 = vcmp.lt.s32.totalorder %v3181_v33, 63 }
  0x1e   : > { %4724 = vst [vmem:[#allocation12_spill] sm:$0xff] %v3269_v25  ;;  %2867 = vmatprep.mubr.msk.f32.mxu0 %vm1846_vm7, %v1845_v40  ;;  %v987_v59 = vrot.slane %v3275_v35, %v3175_v31  ;;  %2868 = vmatprep.mubr.msk.f32.mxu1 %vm1846_vm7, %v1845_v40  ;;  %vm572_vm15 = vcmp.lt.s32.totalorder %v3181_v33, 64  ;;  %vm513_vm0 = vcmp.lt.s32.totalorder %v3181_v33, 65  ;;  %vm454_vm1 = vcmp.lt.s32.totalorder %v3181_v33, 71 }
  0x1f   : > { %vm395_vm2 = vcmp.lt.s32.totalorder %v3181_v33, 72  ;;  %vm336_vm3 = vcmp.lt.s32.totalorder %v3181_v33, 73  ;;  %vm1270_vm7 = vcmp.lt.s32.totalorder %v3181_v33, 119 }
  0x21   : > { %1030 = vrot.lane.b32.xlu1 %v2995_v3, %s2919_s29  ;;  %1028 = vrot.lane.b32.xlu0 %v2987_v1, %s2919_s29 }
  0x25   : > { %1034 = vrot.lane.b32.xlu1 %v2993_v2, %s2919_s29  ;;  %1032 = vrot.lane.b32.xlu0 %v2985_v0, %s2919_s29 }
  0x29   : > { %973 = vrot.lane.b32.xlu1 %v2995_v3, %s2921_s10  ;;  %971 = vrot.lane.b32.xlu0 %v2987_v1, %s2921_s10 }
  0x2d   : > { %977 = vrot.lane.b32.xlu1 %v2993_v2, %s2921_s10  ;;  %975 = vrot.lane.b32.xlu0 %v2985_v0, %s2921_s10 }
  0x31   : > { %916 = vrot.lane.b32.xlu1 %v2995_v3, %s2922_s11  ;;  %914 = vrot.lane.b32.xlu0 %v2987_v1, %s2922_s11 }
  0x35   : > { %920 = vrot.lane.b32.xlu1 %v2993_v2, %s2922_s11  ;;  %918 = vrot.lane.b32.xlu0 %v2985_v0, %s2922_s11 }
  0x39   : > { %859 = vrot.lane.b32.xlu1 %v2995_v3, %s2923_s12  ;;  %857 = vrot.lane.b32.xlu0 %v2987_v1, %s2923_s12 }
  0x3d   : > { %863 = vrot.lane.b32.xlu1 %v2993_v2, %s2923_s12  ;;  %861 = vrot.lane.b32.xlu0 %v2985_v0, %s2923_s12 }
  0x41   : > { %800 = vrot.lane.b32.xlu1 %v2995_v3, %s2924_s13  ;;  %798 = vrot.lane.b32.xlu0 %v2987_v1, %s2924_s13 }
  0x45   : > { %804 = vrot.lane.b32.xlu1 %v2993_v2, %s2924_s13  ;;  %802 = vrot.lane.b32.xlu0 %v2985_v0, %s2924_s13 }
  0x49   : > { %741 = vrot.lane.b32.xlu1 %v2995_v3, %s2925_s14  ;;  %739 = vrot.lane.b32.xlu0 %v2987_v1, %s2925_s14 }
  0x4d   : > { %745 = vrot.lane.b32.xlu1 %v2993_v2, %s2925_s14  ;;  %743 = vrot.lane.b32.xlu0 %v2985_v0, %s2925_s14 }
  0x51   : > { %682 = vrot.lane.b32.xlu1 %v2995_v3, %s2926_s15  ;;  %680 = vrot.lane.b32.xlu0 %v2987_v1, %s2926_s15 }
  0x55   : > { %686 = vrot.lane.b32.xlu1 %v2993_v2, %s2926_s15  ;;  %684 = vrot.lane.b32.xlu0 %v2985_v0, %s2926_s15 }
  0x59   : > { %623 = vrot.lane.b32.xlu1 %v2995_v3, %s2927_s16  ;;  %621 = vrot.lane.b32.xlu0 %v2987_v1, %s2927_s16 }
  0x5d   : > { %627 = vrot.lane.b32.xlu1 %v2993_v2, %s2927_s16  ;;  %625 = vrot.lane.b32.xlu0 %v2985_v0, %s2927_s16 }
  0x61   : > { %566 = vrot.lane.b32.xlu1 %v2995_v3, %s2928_s17  ;;  %564 = vrot.lane.b32.xlu0 %v2987_v1, %s2928_s17 }
  0x65   : > { %570 = vrot.lane.b32.xlu1 %v2993_v2, %s2928_s17  ;;  %568 = vrot.lane.b32.xlu0 %v2985_v0, %s2928_s17 }
  0x69   : > { %507 = vrot.lane.b32.xlu1 %v2995_v3, %s2929_s18  ;;  %505 = vrot.lane.b32.xlu0 %v2987_v1, %s2929_s18 }
  0x6d   : > { %511 = vrot.lane.b32.xlu1 %v2993_v2, %s2929_s18  ;;  %509 = vrot.lane.b32.xlu0 %v2985_v0, %s2929_s18 }
  0x71   : > { %448 = vrot.lane.b32.xlu1 %v2995_v3, %s2930_s19  ;;  %446 = vrot.lane.b32.xlu0 %v2987_v1, %s2930_s19 }
  0x75   : > { %452 = vrot.lane.b32.xlu1 %v2993_v2, %s2930_s19  ;;  %450 = vrot.lane.b32.xlu0 %v2985_v0, %s2930_s19 }
  0x79   : > { %389 = vrot.lane.b32.xlu1 %v2995_v3, %s2931_s20  ;;  %387 = vrot.lane.b32.xlu0 %v2987_v1, %s2931_s20 }
  0x7d   : > { %393 = vrot.lane.b32.xlu1 %v2993_v2, %s2931_s20  ;;  %391 = vrot.lane.b32.xlu0 %v2985_v0, %s2931_s20 }
  0x81   : > { %328 = vrot.lane.b32.xlu1 %v2995_v3, %s2932_s23  ;;  %326 = vrot.lane.b32.xlu0 %v2987_v1, %s2932_s23 }
  0x83   : > { %v1151_v38 = vpop.permute.xlu1 %1150  ;;  %v1147_v39 = vpop.permute.xlu0 %1146 }
  0x85   : > { %332 = vrot.lane.b32.xlu1 %v2993_v2, %s2932_s23  ;;  %330 = vrot.lane.b32.xlu0 %v2985_v0, %s2932_s23 }
  0x87   : > { %v1153_v46 = vpop.permute.xlu1 %1152  ;;  %v1149_v47 = vpop.permute.xlu0 %1148 }
  0x88   : > { %v1156_v51 = vsel %vm1154_vm4, %v1149_v47, %v1151_v38  ;;  %v1158_v52 = vsel %vm1154_vm4, %v1153_v46, %v1147_v39  ;;  %v1157_v53 = vsel %vm1154_vm4, %v1147_v39, %v1149_v47  ;;  %v1155_v54 = vsel %vm1154_vm4, %v1151_v38, %v1153_v46 }
  0x89   : > { %1264 = vrot.lane.b32.xlu1 %v2995_v3, %s2933_s24  ;;  %v1198_v55 = vmul.f32 %v3200_v41, %v1156_v51  ;;  %v1200_v56 = vmul.f32 %v3207_v42, %v1158_v52  ;;  %v1197_v57 = vmul.f32 %v3210_v43, %v1157_v53  ;;  %v1199_v58 = vmul.f32 %v3213_v44, %v1155_v54 }
  0x8a   : > { %1262 = vrot.lane.b32.xlu0 %v2987_v1, %s2933_s24  ;;  %v991_v51 = vrot.slane %v3275_v35, %v3168_v30  ;;  %v3299_v52 = vmul.f32 %v3054_v15, %v3145_v22  ;;  %v3304_v54 = vrot.slane %v1044_v10, %v3216_v45  ;;  %v3314_v15 = vrot.slane %v1052_v34, %v3216_v45 }
  0x8b   : > { %v1092_v60 = vpop.permute.xlu1 %1091  ;;  %1849 = vmatprep.subr.mxu0 %v1198_v55  ;;  %1920 = vmatprep.subr.mxu1 %v1200_v56  ;;  %v1090_v61 = vpop.permute.xlu0 %1089  ;;  %v3311_v56 = vrot.slane %v1056_v12, %v3216_v45  ;;  %v934_v34 = vrot.slane %v3142_v21, %v3168_v30 }
  0x8c   : > { %1850 = vmatpush1.msra.mxu0 %v1197_v57  ;;  %1921 = vmatpush1.msra.mxu1 %v1199_v58  ;;  %v1100_v16 = vsel %vm1097_vm5, %v1090_v61, %v1092_v60  ;;  %4725 = vst [vmem:[#allocation13_spill] sm:$0xff] %v3304_v54  ;;  %4727 = vst [vmem:[#allocation15_spill] sm:$0xff] %v3314_v15  ;;  %v999_v45 = vrot.slane %v3299_v52, %v3168_v30 }
  0x8d   : > { %1268 = vrot.lane.b32.xlu1 %v2993_v2, %s2933_s24  ;;  %v1138_v48 = vmul.f32 %v3260_v8, %v1100_v16  ;;  %4726 = vst [vmem:[#allocation14_spill] sm:$0xff] %v3311_v56  ;;  %v995_v12 = vrot.slane %v3299_v52, %v3175_v31  ;;  %v2935_v16 = vmov 0  }
  0x8e   : > { %1266 = vrot.lane.b32.xlu0 %v2985_v0, %s2933_s24 }
  0x8f   : > { %v1096_v23 = vpop.permute.xlu1 %1095  ;;  %v1094_v24 = vpop.permute.xlu0 %1093  ;;  %2906 = vset.pattern.permute.xlu0 %v2935_v16  ;;  %v3356_v40 = vrot.slane %v995_v12, %v3175_v31 }
  0x90   : > { %v1101_v37 = vsel %vm1097_vm5, %v1096_v23, %v1090_v61  ;;  %v1098_v38 = vsel %vm1097_vm5, %v1094_v24, %v1096_v23  ;;  %v1099_v39 = vsel %vm1097_vm5, %v1092_v60, %v1094_v24  ;;  %v1838_v23 = vld [vmem:[%s4615_s3] sm:$0xf] }
  0x91   : > { %1207 = vrot.lane.b32.xlu1 %v2995_v3, %s2934_s30  ;;  %v1139_v11 = vmul.f32 %v3248_v63, %v1099_v39  ;;  %v1141_v46 = vmul.f32 %v3251_v4, %v1101_v37  ;;  %v1140_v47 = vmul.f32 %v3254_v7, %v1098_v38  ;;  %v3350_v38 = vrot.slane %v987_v59, %v3175_v31 }
  0x92   : > { %1205 = vrot.lane.b32.xlu0 %v2987_v1, %s2934_s30  ;;  %v3353_v39 = vrot.slane %v999_v45, %v3175_v31  ;;  %4731 = vst [vmem:[#allocation19_spill] sm:$0xff] %v3356_v40 }
  0x93   : > { %v1031_v49 = vpop.permute.xlu1 %1030  ;;  %1851 = vmatprep.subr.mxu0 %v1139_v11  ;;  %1922 = vmatprep.subr.mxu1 %v1141_v46  ;;  %v1029_v50 = vpop.permute.xlu0 %1028  ;;  %4729 = vst [vmem:[#allocation17_spill] sm:$0xff] %v3350_v38 }
  0x94   : > { %v1039_v53 = vsel %vm1036_vm6, %v1029_v50, %v1031_v49  ;;  %1852 = vmatpush1.msra.mxu0 %v1138_v48  ;;  %1923 = vmatpush1.msra.mxu1 %v1140_v47  ;;  %4730 = vst [vmem:[#allocation18_spill] sm:$0xff] %v3353_v39  ;;  %v3360_v47 = vrot.slane %v934_v34, %v3175_v31 }
  0x95   : > { %1853 = vmatprep.subr.mxu0 %v2995_v3  ;;  %1211 = vrot.lane.b32.xlu1 %v2993_v2, %s2934_s30  ;;  %v1078_v55 = vmul.f32 %v3269_v25, %v1039_v53  ;;  %v3321_v3 = vrot.slane %v991_v51, %v3175_v31  ;;  %v930_v48 = vrot.slane %v3142_v21, %v3175_v31 }
  0x96   : > { %1854 = vmatpush1.msra.mxu0 %v2987_v1  ;;  %1924 = vmatprep.subr.mxu1 %v2993_v2  ;;  %4732 = vst [vmem:[#allocation20_spill] sm:$0xff] %v3360_v47 }
  0x97   : > { %v1035_v57 = vpop.permute.xlu1 %1034  ;;  %1855 = vmatprep.subr.mxu0 %v1078_v55  ;;  %v1033_v58 = vpop.permute.xlu0 %1032  ;;  %1209 = vrot.lane.b32.xlu0 %v2985_v0, %s2934_s30  ;;  %4728 = vst [vmem:[#allocation16_spill] sm:$0xff] %v3321_v3  ;;  %v942_v55 = vrot.slane %v3145_v22, %v3168_v30 }
  0x98   : > { %v1040_v1 = vsel %vm1036_vm6, %v1035_v57, %v1029_v50  ;;  %v1037_v2 = vsel %vm1036_vm6, %v1033_v58, %v1035_v57  ;;  %v1038_v60 = vsel %vm1036_vm6, %v1031_v49, %v1033_v58  ;;  %1925 = vmatpush1.msra.mxu1 %v2985_v0  ;;  %v3366_v49 = vmul.f32 %v3153_v26, %v3142_v21 }
  0x99   : > { %v1077_v61 = vmul.f32 %v3304_v54, %v1040_v1  ;;  %v1080_v62 = vmul.f32 %v3311_v56, %v1037_v2  ;;  %v1079_v10 = vmul.f32 %v3314_v15, %v1038_v60  ;;  %v938_v26 = vrot.slane %v3145_v22, %v3175_v31 }
  0x9a   : > { %v877_v2 = vrot.slane %v3366_v49, %v3168_v30  ;;  %v3394_v12 = vrot.slane %v942_v55, %v3175_v31  ;;  %v873_v34 = vrot.slane %v3366_v49, %v3175_v31  ;;  %v293_v15 = vmul.f32 %v3065_v18, %v3145_v22 }
  0x9b   : > { %v974_v0 = vpop.permute.xlu1 %973  ;;  %1856 = vmatpush1.msra.mxu0 %v1077_v61  ;;  %1926 = vmatprep.subr.mxu1 %v1080_v62  ;;  %v972_v24 = vpop.permute.xlu0 %971  ;;  %v3387_v61 = vmul.f32 %v3161_v28, %v3145_v22  ;;  %v3397_v16 = vrot.slane %v938_v26, %v3175_v31  ;;  %v3425_v26 = vsub.s32 0, %v3155_v27 }
  0x9c   : > { %v982_v36 = vsel %vm979_vm8, %v972_v24, %v974_v0  ;;  %1927 = vmatpush1.msra.mxu1 %v1079_v10  ;;  %1841 = vperm.xlu0 %2906, %v1838_v23   ;;  %v3391_v10 = vrot.slane %v930_v48, %v3175_v31  ;;  %4734 = vst [vmem:[#allocation22_spill] sm:$0xff] %v3394_v12  ;;  %v3400_v23 = vsub.s32 4, %v3155_v27 }
  0x9d   : > { %v1021_v37 = vmul.f32 %v3321_v3, %v982_v36  ;;  %4735 = vst [vmem:[#allocation23_spill] sm:$0xff] %v3397_v16  ;;  %v3404_v28 = vrot.slane %v877_v2, %v3175_v31  ;;  %v304_v36 = vmul.f32 %v3275_v35, %v3048_v13  ;;  %v885_v48 = vrot.slane %v3387_v61, %v3168_v30 }
  0x9e   : > { %4733 = vst [vmem:[#allocation21_spill] sm:$0xff] %v3391_v10  ;;  %v881_v55 = vrot.slane %v3387_v61, %v3175_v31  ;;  %v647_v7 = vrot.slane %v293_v15, %v3425_v26  ;;  %v1654_v41 = vrot.slane %v3069_v19, %v3400_v23  ;;  %v1650_v43 = vrot.slane %v3069_v19, %v3425_v26 }
  0x9f   : > { %v978_v11 = vpop.permute.xlu1 %977  ;;  %1857 = vmatprep.subr.mxu0 %v1021_v37  ;;  %v976_v46 = vpop.permute.xlu0 %975  ;;  %4736 = vst [vmem:[#allocation24_spill] sm:$0xff] %v3404_v28 }
  0xa0   : > { %v983_v50 = vsel %vm979_vm8, %v978_v11, %v972_v24  ;;  %v980_v51 = vsel %vm979_vm8, %v976_v46, %v978_v11  ;;  %v981_v53 = vsel %vm979_vm8, %v974_v0, %v976_v46 }
  0xa1   : > { %v1020_v57 = vmul.f32 %v3350_v38, %v983_v50  ;;  %v1023_v58 = vmul.f32 %v3353_v39, %v980_v51  ;;  %v1022_v59 = vmul.f32 %v3356_v40, %v981_v53  ;;  %v1700_v38 = vrot.slane %v3073_v20, %v3400_v23 }
  0xa3   : > { %v917_v45 = vpop.permute.xlu1 %916  ;;  %1858 = vmatpush1.msra.mxu0 %v1020_v57  ;;  %1928 = vmatprep.subr.mxu1 %v1023_v58  ;;  %v915_v1 = vpop.permute.xlu0 %914  ;;  %v3615_v42 = vrot.slane %v1700_v38, %v3425_v26 }
  0xa4   : > { %v925_v60 = vsel %vm4715_vm9, %v915_v1, %v917_v45  ;;  %1929 = vmatpush1.msra.mxu1 %v1022_v59  ;;  %v820_v59 = vrot.slane %v304_v36, %v3400_v23 }
  0xa5   : > { %v964_v62 = vmul.f32 %v3360_v47, %v925_v60  ;;  %v3433_v60 = vrot.slane %v873_v34, %v3175_v31 }
  0xa7   : > { %v921_v0 = vpop.permute.xlu1 %920  ;;  %1859 = vmatprep.subr.mxu0 %v964_v62  ;;  %v919_v24 = vpop.permute.xlu0 %918  ;;  %4737 = vst [vmem:[#allocation25_spill] sm:$0xff] %v3433_v60  ;;  %v3436_v62 = vrot.slane %v885_v48, %v3175_v31 }
  0xa8   : > { %v926_v37 = vsel %vm4715_vm9, %v921_v0, %v915_v1  ;;  %v923_v11 = vsel %vm4715_vm9, %v919_v24, %v921_v0  ;;  %v924_v46 = vsel %vm4715_vm9, %v917_v45, %v919_v24  ;;  %v305_v1 = vmul.f32 %v3299_v52, %v3065_v18 }
  0xa9   : > { %v963_v50 = vmul.f32 %v3391_v10, %v926_v37  ;;  %v966_v51 = vmul.f32 %v3394_v12, %v923_v11  ;;  %v965_v53 = vmul.f32 %v3397_v16, %v924_v46  ;;  %4738 = vst [vmem:[#allocation26_spill] sm:$0xff] %v3436_v62  ;;  %v3439_v0 = vrot.slane %v881_v55, %v3175_v31 }
  0xaa   : > { %v3443_v37 = vrot.slane %v820_v59, %v3425_v26  ;;  %v816_v11 = vrot.slane %v304_v36, %v3425_v26  ;;  %v272_v46 = vrot.slane %v3142_v21, 6  ;;  %v824_v36 = vrot.slane %v305_v1, %v3425_v26 }
  0xab   : > { %v860_v57 = vpop.permute.xlu1 %859  ;;  %1860 = vmatpush1.msra.mxu0 %v963_v50  ;;  %1930 = vmatprep.subr.mxu1 %v966_v51  ;;  %v858_v58 = vpop.permute.xlu0 %857  ;;  %4739 = vst [vmem:[#allocation27_spill] sm:$0xff] %v3439_v0  ;;  %v828_v51 = vrot.slane %v305_v1, %v3400_v23  ;;  %v765_v10 = vrot.slane %v3299_v52, %v3425_v26  ;;  %vm1213_vm9 = vcmp.lt.s32.totalorder %v3181_v33, 120 }
  0xac   : > { %v868_v45 = vsel %vm865_vm10, %v858_v58, %v860_v57  ;;  %1931 = vmatpush1.msra.mxu1 %v965_v53  ;;  %4740 = vst [vmem:[#allocation28_spill] sm:$0xff] %v3443_v37  ;;  %v3470_v1 = vrot.slane %v816_v11, %v3425_v26  ;;  %v769_v11 = vrot.slane %v3299_v52, %v3400_v23 }
  0xad   : > { %v907_v2 = vmul.f32 %v3404_v28, %v868_v45 }
  0xae   : > { %4741 = vst [vmem:[#allocation29_spill] sm:$0xff] %v3470_v1 }
  0xaf   : > { %v864_v27 = vpop.permute.xlu1 %863  ;;  %1861 = vmatprep.subr.mxu0 %v907_v2  ;;  %v862_v24 = vpop.permute.xlu0 %861  ;;  %v761_v2 = vrot.slane %v3275_v35, %v3400_v23 }
  0xb0   : > { %v869_v34 = vsel %vm865_vm10, %v864_v27, %v858_v58  ;;  %v866_v48 = vsel %vm865_vm10, %v862_v24, %v864_v27  ;;  %v867_v50 = vsel %vm865_vm10, %v860_v57, %v862_v24  ;;  %v3460_v27 = vrot.slane %v272_v46, 4 }
  0xb1   : > { %v906_v53 = vmul.f32 %v3433_v60, %v869_v34  ;;  %v909_v55 = vmul.f32 %v3436_v62, %v866_v48  ;;  %v908_v59 = vmul.f32 %v3439_v0, %v867_v50  ;;  %v274_v24 = vrot.slane %v3145_v22, 6 }
  0xb2   : > { %v3473_v48 = vrot.slane %v828_v51, %v3425_v26  ;;  %v3476_v50 = vrot.slane %v824_v36, %v3425_v26  ;;  %v302_v51 = vmul.f32 %v3275_v35, %v3460_v27 }
  0xb3   : > { %v801_v45 = vpop.permute.xlu1 %800  ;;  %1862 = vmatpush1.msra.mxu0 %v906_v53  ;;  %1932 = vmatprep.subr.mxu1 %v909_v55  ;;  %v799_v58 = vpop.permute.xlu0 %798  ;;  %v3480_v55 = vrot.slane %v761_v2, %v3425_v26  ;;  %v3500_v5 = vrot.slane %v274_v24, 4 }
  0xb4   : > { %v3464_v57 = vsel %vm806_vm11, %v799_v58, %v801_v45  ;;  %1933 = vmatpush1.msra.mxu1 %v908_v59  ;;  %4742 = vst [vmem:[#allocation30_spill] sm:$0xff] %v3473_v48  ;;  %4743 = vst [vmem:[#allocation31_spill] sm:$0xff] %v3476_v50  ;;  %v757_v59 = vrot.slane %v3275_v35, %v3425_v26 }
  0xb5   : > { %v850_v34 = vmul.f32 %v3443_v37, %v3464_v57  ;;  %4744 = vst [vmem:[#allocation32_spill] sm:$0xff] %v3480_v55  ;;  %v3693_v37 = vrot.slane %v1650_v43, %v3425_v26 }
  0xb6   : > { %v3520_v62 = vrot.slane %v757_v59, %v3425_v26  ;;  %v292_v59 = vmul.f32 %v3048_v13, %v3142_v21 }
  0xb7   : > { %v805_v46 = vpop.permute.xlu1 %804  ;;  %1863 = vmatprep.subr.mxu0 %v850_v34  ;;  %v803_v53 = vpop.permute.xlu0 %802 }
  0xb8   : > { %v3490_v36 = vsel %vm806_vm11, %v805_v46, %v799_v58  ;;  %v3494_v34 = vsel %vm806_vm11, %v803_v53, %v805_v46  ;;  %v3498_v2 = vsel %vm806_vm11, %v801_v45, %v803_v53  ;;  %v702_v45 = vrot.slane %v302_v51, %v3400_v23  ;;  %4745 = vst [vmem:[#allocation33_spill] sm:$0xff] %v3520_v62 }
  0xb9   : > { %v849_v12 = vmul.f32 %v3470_v1, %v3490_v36  ;;  %v852_v35 = vmul.f32 %v3473_v48, %v3494_v34  ;;  %v851_v58 = vmul.f32 %v3476_v50, %v3498_v2  ;;  %v303_v53 = vmul.f32 %v3299_v52, %v3500_v5 }
  0xba   : > { %v698_v52 = vrot.slane %v302_v51, %v3425_v26 }
  0xbb   : > { %v742_v46 = vpop.permute.xlu1 %741  ;;  %1864 = vmatpush1.msra.mxu0 %v849_v12  ;;  %1934 = vmatprep.subr.mxu1 %v852_v35  ;;  %v740_v16 = vpop.permute.xlu0 %739  ;;  %v3523_v12 = vrot.slane %v769_v11, %v3425_v26  ;;  %v3526_v35 = vrot.slane %v765_v10, %v3425_v26  ;;  %v706_v56 = vrot.slane %v303_v53, %v3425_v26 }
  0xbc   : > { %v3513_v24 = vsel %vm747_vm12, %v740_v16, %v742_v46  ;;  %1935 = vmatpush1.msra.mxu1 %v851_v58  ;;  %v3530_v58 = vrot.slane %v702_v45, %v3425_v26  ;;  %v710_v45 = vrot.slane %v303_v53, %v3400_v23  ;;  %v3565_v39 = vrot.slane %v698_v52, %v3425_v26 }
  0xbd   : > { %v791_v47 = vmul.f32 %v3480_v55, %v3513_v24  ;;  %4746 = vst [vmem:[#allocation34_spill] sm:$0xff] %v3523_v12  ;;  %4747 = vst [vmem:[#allocation35_spill] sm:$0xff] %v3526_v35  ;;  %v317_v55 = vmul.f32 %v3065_v18, %v3038_v9 }
  0xbe   : > { %4748 = vst [vmem:[#allocation36_spill] sm:$0xff] %v3530_v58  ;;  %4749 = vst [vmem:[#allocation37_spill] sm:$0xff] %v3565_v39  ;;  %v3568_v53 = vrot.slane %v710_v45, %v3425_v26  ;;  %v1696_v45 = vrot.slane %v3073_v20, %v3425_v26 }
  0xbf   : > { %v746_v60 = vpop.permute.xlu1 %745  ;;  %1865 = vmatprep.subr.mxu0 %v791_v47  ;;  %v744_v0 = vpop.permute.xlu0 %743 }
  0xc0   : > { %v3537_v11 = vsel %vm747_vm12, %v746_v60, %v740_v16  ;;  %v3541_v10 = vsel %vm747_vm12, %v744_v0, %v746_v60  ;;  %v3545_v47 = vsel %vm747_vm12, %v742_v46, %v744_v0  ;;  %v643_v0 = vrot.slane %v292_v59, %v3400_v23  ;;  %4750 = vst [vmem:[#allocation38_spill] sm:$0xff] %v3568_v53 }
  0xc1   : > { %v790_v51 = vmul.f32 %v3520_v62, %v3537_v11  ;;  %v793_v28 = vmul.f32 %v3523_v12, %v3541_v10  ;;  %v792_v16 = vmul.f32 %v3526_v35, %v3545_v47 }
  0xc2   : > { %v3581_v52 = vrot.slane %v643_v0, %v3425_v26  ;;  %v651_v0 = vrot.slane %v293_v15, %v3400_v23  ;;  %v1646_v15 = vrot.slane %v3052_v14, %v3400_v23 }
  0xc3   : > { %v683_v54 = vpop.permute.xlu1 %682  ;;  %1866 = vmatpush1.msra.mxu0 %v790_v51  ;;  %1936 = vmatprep.subr.mxu1 %v793_v28  ;;  %v681_v60 = vpop.permute.xlu0 %680  ;;  %v3571_v28 = vrot.slane %v706_v56, %v3425_v26  ;;  %v1692_v51 = vrot.slane %v3059_v17, %v3400_v23  ;;  %v639_v56 = vrot.slane %v292_v59, %v3425_v26 }
  0xc4   : > { %v3558_v46 = vsel %vm688_vm13, %v681_v60, %v683_v54  ;;  %1937 = vmatpush1.msra.mxu1 %v792_v16  ;;  %v1688_v16 = vrot.slane %v3059_v17, %v3425_v26  ;;  %4752 = vst [vmem:[#allocation40_spill] sm:$0xff] %v3581_v52  ;;  %v3680_v1 = vrot.slane %v1646_v15, %v3425_v26 }
  0xc5   : > { %v732_v25 = vmul.f32 %v3530_v58, %v3558_v46  ;;  %4751 = vst [vmem:[#allocation39_spill] sm:$0xff] %v3571_v28  ;;  %v3612_v8 = vrot.slane %v1692_v51, %v3425_v26  ;;  %v3631_v38 = vrot.slane %v639_v56, %v3425_v26 }
  0xc7   : > { %v687_v40 = vpop.permute.xlu1 %686  ;;  %1867 = vmatprep.subr.mxu0 %v732_v25  ;;  %v685_v3 = vpop.permute.xlu0 %684  ;;  %4755 = vst [vmem:[#allocation43_spill] sm:$0xff] %v3631_v38 }
  0xc8   : > { %v3588_v4 = vsel %vm688_vm13, %v687_v40, %v681_v60  ;;  %v3592_v17 = vsel %vm688_vm13, %v685_v3, %v687_v40  ;;  %v3596_v25 = vsel %vm688_vm13, %v683_v54, %v685_v3  ;;  %v3607_v40 = vrot.slane %v1688_v16, %v3425_v26 }
  0xc9   : > { %4753 = vst [vmem:[#allocation41_spill] sm:$0xff] %v3592_v17  ;;  %v731_v59 = vmul.f32 %v3565_v39, %v3588_v4  ;;  %v734_v20 = vmul.f32 %v3568_v53, %v3592_v17  ;;  %v733_v60 = vmul.f32 %v3571_v28, %v3596_v25  ;;  %v584_v3 = vrot.slane %v3142_v21, %v3400_v23 }
  0xca   : > { %v3624_v16 = vrot.slane %v1696_v45, %v3425_v26  ;;  %v318_v45 = vmul.f32 %v3052_v14, %v3460_v27  ;;  %v319_v53 = vmul.f32 %v3069_v19, %v3500_v5  ;;  %v3655_v28 = vmul.f32 %v3460_v27, %v3142_v21 }
  0xcb   : > { %v624_v63 = vpop.permute.xlu1 %623  ;;  %1868 = vmatpush1.msra.mxu0 %v731_v59  ;;  %1938 = vmatprep.subr.mxu1 %v734_v20  ;;  %v622_v54 = vpop.permute.xlu0 %621  ;;  %v1642_v59 = vrot.slane %v3052_v14, %v3425_v26  ;;  %v3634_v20 = vrot.slane %v651_v0, %v3425_v26  ;;  %v580_v0 = vrot.slane %v3142_v21, %v3425_v26 }
  0xcc   : > { %v3619_v44 = vsel %vm629_vm14, %v622_v54, %v624_v63  ;;  %1939 = vmatpush1.msra.mxu1 %v733_v60  ;;  %v3637_v60 = vrot.slane %v647_v7, %v3425_v26  ;;  %v3649_v7 = vrot.slane %v584_v3, %v3425_v26  ;;  %v588_v3 = vrot.slane %v3145_v22, %v3425_v26 }
  0xcd   : > { %4754 = vst [vmem:[#allocation42_spill] sm:$0xff] %v3619_v44  ;;  %v673_v51 = vmul.f32 %v3581_v52, %v3619_v44  ;;  %4756 = vst [vmem:[#allocation44_spill] sm:$0xff] %v3634_v20  ;;  %v1598_v15 = vrot.slane %v318_v45, %v3425_v26  ;;  %v3707_v43 = vrot.slane %v580_v0, %v3425_v26 }
  0xce   : > { %4757 = vst [vmem:[#allocation45_spill] sm:$0xff] %v3637_v60  ;;  %4758 = vst [vmem:[#allocation46_spill] sm:$0xff] %v3649_v7  ;;  %v3710_v62 = vrot.slane %v588_v3, %v3425_v26  ;;  %v523_v3 = vrot.slane %v3655_v28, %v3425_v26 }
  0xcf   : > { %v628_v56 = vpop.permute.xlu1 %627  ;;  %1869 = vmatprep.subr.mxu0 %v673_v51  ;;  %v626_v39 = vpop.permute.xlu0 %625  ;;  %4762 = vst [vmem:[#allocation50_spill] sm:$0xff] %v3707_v43  ;;  %v3754_v44 = vrot.slane %v1598_v15, %v3425_v26 }
  0xd0   : > { %v3659_v58 = vsel %vm629_vm14, %v628_v56, %v622_v54  ;;  %v3663_v51 = vsel %vm629_vm14, %v626_v39, %v628_v56  ;;  %v3667_v52 = vsel %vm629_vm14, %v624_v63, %v626_v39  ;;  %v592_v56 = vrot.slane %v3145_v22, %v3400_v23  ;;  %4763 = vst [vmem:[#allocation51_spill] sm:$0xff] %v3710_v62 }
  0xd1   : > { %4759 = vst [vmem:[#allocation47_spill] sm:$0xff] %v3659_v58  ;;  %4760 = vst [vmem:[#allocation48_spill] sm:$0xff] %v3663_v51  ;;  %v672_v48 = vmul.f32 %v3631_v38, %v3659_v58  ;;  %v675_v21 = vmul.f32 %v3634_v20, %v3663_v51  ;;  %v674_v54 = vmul.f32 %v3637_v60, %v3667_v52 }
  0xd2   : > { %v3683_v63 = vrot.slane %v1642_v59, %v3425_v26  ;;  %v3686_v39 = vrot.slane %v1654_v41, %v3425_v26  ;;  %v316_v38 = vmul.f32 %v3048_v13, %v3024_v6  ;;  %v527_v60 = vrot.slane %v3655_v28, %v3400_v23 }
  0xd3   : > { %v567_v50 = vpop.permute.xlu1 %566  ;;  %1870 = vmatpush1.msra.mxu0 %v672_v48  ;;  %1940 = vmatprep.subr.mxu1 %v675_v21  ;;  %v565_v20 = vpop.permute.xlu0 %564  ;;  %v291_v41 = vmul.f32 %v3500_v5, %v3145_v22  ;;  %v1602_v48 = vrot.slane %v318_v45, %v3400_v23  ;;  %v1610_v21 = vrot.slane %v319_v53, %v3400_v23 }
  0xd4   : > { %v3698_v59 = vsel %vm572_vm15, %v565_v20, %v567_v50  ;;  %1941 = vmatpush1.msra.mxu1 %v674_v54  ;;  %v3713_v35 = vrot.slane %v592_v56, %v3425_v26  ;;  %v1556_v54 = vrot.slane %v316_v38, %v3400_v23  ;;  %v1606_v22 = vrot.slane %v319_v53, %v3425_v26 }
  0xd5   : > { %4761 = vst [vmem:[#allocation49_spill] sm:$0xff] %v3698_v59  ;;  %v614_v12 = vmul.f32 %v3649_v7, %v3698_v59  ;;  %v1552_v45 = vrot.slane %v316_v38, %v3425_v26  ;;  %v3722_v0 = vrot.slane %v527_v60, %v3425_v26  ;;  %v3728_v56 = vmul.f32 %v3048_v13, %v3366_v49 }
  0xd6   : > { %4764 = vst [vmem:[#allocation52_spill] sm:$0xff] %v3713_v35  ;;  %v531_v60 = vrot.slane %v291_v41, %v3425_v26  ;;  %v535_v58 = vrot.slane %v291_v41, %v3400_v23 }
  0xd7   : > { %v571_v51 = vpop.permute.xlu1 %570  ;;  %1871 = vmatprep.subr.mxu0 %v614_v12  ;;  %v569_v7 = vpop.permute.xlu0 %568  ;;  %4765 = vst [vmem:[#allocation53_spill] sm:$0xff] %v3722_v0  ;;  %v3765_v41 = vrot.slane %v1552_v45, %v3425_v26  ;;  %v3781_v45 = vrot.slane %v523_v3, %v3425_v26  ;;  %v315_v3 = vmul.f32 %v3500_v5, %v3038_v9 }
  0xd8   : > { %v3732_v53 = vsel %vm572_vm15, %v571_v51, %v565_v20  ;;  %v3736_v12 = vsel %vm572_vm15, %v569_v7, %v571_v51  ;;  %v3740_v38 = vsel %vm572_vm15, %v567_v50, %v569_v7  ;;  %v3751_v51 = vrot.slane %v1602_v48, %v3425_v26 }
  0xd9   : > { %4766 = vst [vmem:[#allocation54_spill] sm:$0xff] %v3732_v53  ;;  %4767 = vst [vmem:[#allocation55_spill] sm:$0xff] %v3736_v12  ;;  %v613_v28 = vmul.f32 %v3707_v43, %v3732_v53  ;;  %v615_v59 = vmul.f32 %v3710_v62, %v3740_v38  ;;  %v616_v20 = vmul.f32 %v3713_v35, %v3736_v12 }
  0xda   : > { %4768 = vst [vmem:[#allocation56_spill] sm:$0xff] %v3740_v38  ;;  %4769 = vst [vmem:[#allocation57_spill] sm:$0xff] %v3751_v51  ;;  %v3757_v50 = vrot.slane %v1610_v21, %v3425_v26  ;;  %v3760_v7 = vrot.slane %v1606_v22, %v3425_v26  ;;  %v468_v35 = vrot.slane %v3728_v56, %v3400_v23 }
  0xdb   : > { %v508_v43 = vpop.permute.xlu1 %507  ;;  %1872 = vmatpush1.msra.mxu0 %v613_v28  ;;  %1942 = vmatprep.subr.mxu1 %v616_v20  ;;  %v506_v62 = vpop.permute.xlu0 %505  ;;  %4772 = vst [vmem:[#allocation60_spill] sm:$0xff] %v3765_v41  ;;  %v1564_v48 = vrot.slane %v317_v55, %v3400_v23  ;;  %v289_v21 = vmul.f32 %v3065_v18, %v3387_v61  ;;  %4775 = vst [vmem:[#allocation63_spill] sm:$0xff] %v3781_v45 }
  0xdc   : > { %4770 = vst [vmem:[#allocation58_spill] sm:$0xff] %v3757_v50  ;;  %4771 = vst [vmem:[#allocation59_spill] sm:$0xff] %v3760_v7  ;;  %v3770_v15 = vsel %vm513_vm0, %v506_v62, %v508_v43  ;;  %1943 = vmatpush1.msra.mxu1 %v615_v59  ;;  %v3775_v22 = vrot.slane %v1556_v54, %v3425_v26  ;;  %v1560_v28 = vrot.slane %v317_v55, %v3425_v26 }
  0xdd   : > { %4773 = vst [vmem:[#allocation61_spill] sm:$0xff] %v3770_v15  ;;  %v557_v20 = vmul.f32 %v3722_v0, %v3770_v15  ;;  %v3784_v12 = vrot.slane %v531_v60, %v3425_v26  ;;  %v3787_v53 = vrot.slane %v535_v58, %v3425_v26  ;;  %v1506_v59 = vrot.slane %v3024_v6, %v3425_v26 }
  0xde   : > { %4774 = vst [vmem:[#allocation62_spill] sm:$0xff] %v3775_v22  ;;  %v1518_v54 = vrot.slane %v3038_v9, %v3400_v23  ;;  %v1510_v55 = vrot.slane %v3024_v6, %v3400_v23  ;;  %v314_v0 = vmul.f32 %v3460_v27, %v3024_v6  ;;  %v3801_v58 = vrot.slane %v468_v35, %v3425_v26 }
  0xdf   : > { %4776 = vst [vmem:[#allocation64_spill] sm:$0xff] %v3784_v12  ;;  %4777 = vst [vmem:[#allocation65_spill] sm:$0xff] %v3787_v53  ;;  %v512_v60 = vpop.permute.xlu1 %511  ;;  %1873 = vmatprep.subr.mxu0 %v557_v20  ;;  %v510_v15 = vpop.permute.xlu0 %509  ;;  %v464_v38 = vrot.slane %v3728_v56, %v3425_v26  ;;  %v472_v17 = vrot.slane %v289_v21, %v3425_v26  ;;  %v476_v22 = vrot.slane %v289_v21, %v3400_v23 }
  0xe0   : > { %4778 = vst [vmem:[#allocation66_spill] sm:$0xff] %v3801_v58  ;;  %v3807_v41 = vsel %vm513_vm0, %v512_v60, %v506_v62  ;;  %v3811_v7 = vsel %vm513_vm0, %v510_v15, %v512_v60  ;;  %v3815_v20 = vsel %vm513_vm0, %v508_v43, %v510_v15  ;;  %v3826_v60 = vrot.slane %v1506_v59, %v3425_v26 }
  0xe1   : > { %4779 = vst [vmem:[#allocation67_spill] sm:$0xff] %v3807_v41  ;;  %4780 = vst [vmem:[#allocation68_spill] sm:$0xff] %v3811_v7  ;;  %v556_v35 = vmul.f32 %v3781_v45, %v3807_v41  ;;  %v558_v56 = vmul.f32 %v3784_v12, %v3815_v20  ;;  %v559_v62 = vmul.f32 %v3787_v53, %v3811_v7 }
  0xe2   : > { %4781 = vst [vmem:[#allocation69_spill] sm:$0xff] %v3815_v20  ;;  %4782 = vst [vmem:[#allocation70_spill] sm:$0xff] %v3826_v60  ;;  %v3830_v43 = vmul.f32 %v3165_v29, %v3048_v13  ;;  %v3833_v15 = vrot.slane %v1564_v48, %v3425_v26  ;;  %v3836_v45 = vrot.slane %v1560_v28, %v3425_v26 }
  0xe3   : > { %v3839_v12 = vrot.slane %v1518_v54, %v3425_v26  ;;  %v1514_v53 = vrot.slane %v3038_v9, %v3425_v26  ;;  %v449_v21 = vpop.permute.xlu1 %448  ;;  %1874 = vmatpush1.msra.mxu0 %v556_v35  ;;  %1944 = vmatprep.subr.mxu1 %v559_v62  ;;  %v447_v59 = vpop.permute.xlu0 %446  ;;  %v409_v13 = vrot.slane %v3366_v49, %v3400_v23 }
  0xe4   : > { %4783 = vst [vmem:[#allocation71_spill] sm:$0xff] %v3836_v45  ;;  %v3846_v7 = vrot.slane %v1510_v55, %v3425_v26  ;;  %v1462_v48 = vrot.slane %v314_v0, %v3425_v26  ;;  %v1474_v28 = vrot.slane %v315_v3, %v3400_v23  ;;  %v3852_v54 = vsel %vm454_vm1, %v447_v59, %v449_v21 }
  0xe5   : > { %4784 = vst [vmem:[#allocation72_spill] sm:$0xff] %v3839_v12  ;;  %4786 = vst [vmem:[#allocation74_spill] sm:$0xff] %v3852_v54  ;;  %1945 = vmatpush1.msra.mxu1 %v558_v56  ;;  %v498_v35 = vmul.f32 %v3801_v58, %v3852_v54  ;;  %v3857_v62 = vrot.slane %v464_v38, %v3425_v26  ;;  %v3860_v41 = vrot.slane %v472_v17, %v3425_v26 }
  0xe6   : > { %4785 = vst [vmem:[#allocation73_spill] sm:$0xff] %v3846_v7  ;;  %v3863_v55 = vrot.slane %v476_v22, %v3425_v26  ;;  %v1466_v20 = vrot.slane %v314_v0, %v3400_v23  ;;  %v1470_v12 = vrot.slane %v315_v3, %v3425_v26  ;;  %v1416_v60 = vrot.slane %v3830_v43, %v3425_v26 }
  0xe7   : > { %4787 = vst [vmem:[#allocation75_spill] sm:$0xff] %v3857_v62  ;;  %4788 = vst [vmem:[#allocation76_spill] sm:$0xff] %v3860_v41  ;;  %v313_v56 = vmul.f32 %v3179_v32, %v3065_v18  ;;  %v453_v58 = vpop.permute.xlu1 %452  ;;  %1875 = vmatprep.subr.mxu0 %v498_v35  ;;  %v451_v38 = vpop.permute.xlu0 %450  ;;  %v3873_v17 = vrot.slane %v409_v13, %v3425_v26  ;;  %v405_v22 = vrot.slane %v3366_v49, %v3425_v26 }
  0xe8   : > { %4789 = vst [vmem:[#allocation77_spill] sm:$0xff] %v3863_v55  ;;  %v3879_v0 = vmul.f32 %v3460_v27, %v3366_v49  ;;  %v3883_v3 = vsel %vm454_vm1, %v453_v58, %v447_v59  ;;  %v3887_v18 = vsel %vm454_vm1, %v451_v38, %v453_v58  ;;  %v3891_v35 = vsel %vm454_vm1, %v449_v21, %v451_v38 }
  0xe9   : > { %4790 = vst [vmem:[#allocation78_spill] sm:$0xff] %v3873_v17  ;;  %4791 = vst [vmem:[#allocation79_spill] sm:$0xff] %v3883_v3  ;;  %v413_v13 = vrot.slane %v3387_v61, %v3425_v26  ;;  %v497_v54 = vmul.f32 %v3857_v62, %v3883_v3  ;;  %v499_v49 = vmul.f32 %v3860_v41, %v3891_v35 }
  0xea   : > { %4792 = vst [vmem:[#allocation80_spill] sm:$0xff] %v3887_v18  ;;  %4793 = vst [vmem:[#allocation81_spill] sm:$0xff] %v3891_v35  ;;  %v500_v59 = vmul.f32 %v3863_v55, %v3887_v18  ;;  %v417_v58 = vrot.slane %v3387_v61, %v3400_v23  ;;  %v3904_v45 = vrot.slane %v1514_v53, %v3425_v26 }
  0xeb   : > { %v3907_v21 = vrot.slane %v1462_v48, %v3425_v26  ;;  %v3910_v38 = vrot.slane %v1474_v28, %v3425_v26  ;;  %v3913_v62 = vrot.slane %v1466_v20, %v3425_v26  ;;  %v3916_v41 = vrot.slane %v1470_v12, %v3425_v26  ;;  %v390_v18 = vpop.permute.xlu1 %389  ;;  %1876 = vmatpush1.msra.mxu0 %v497_v54  ;;  %v388_v53 = vpop.permute.xlu0 %387 }
  0xec   : > { %4794 = vst [vmem:[#allocation82_spill] sm:$0xff] %v3904_v45  ;;  %v3919_v55 = vrot.slane %v1416_v60, %v3425_v26  ;;  %1946 = vmatprep.subr.mxu1 %v500_v59  ;;  %v350_v48 = vrot.slane %v3879_v0, %v3400_v23  ;;  %v1428_v35 = vrot.slane %v313_v56, %v3400_v23 }
  0xed   : > { %4795 = vst [vmem:[#allocation83_spill] sm:$0xff] %v3910_v38  ;;  %4796 = vst [vmem:[#allocation84_spill] sm:$0xff] %v3913_v62  ;;  %v1420_v28 = vrot.slane %v3830_v43, %v3400_v23  ;;  %v3928_v20 = vsel %vm395_vm2, %v388_v53, %v390_v18  ;;  %1947 = vmatpush1.msra.mxu1 %v499_v49  ;;  %v279_v12 = vmul.f32 %v3500_v5, %v3387_v61 }
  0xee   : > { %4797 = vst [vmem:[#allocation85_spill] sm:$0xff] %v3916_v41  ;;  %4798 = vst [vmem:[#allocation86_spill] sm:$0xff] %v3919_v55  ;;  %v439_v60 = vmul.f32 %v3873_v17, %v3928_v20  ;;  %v3935_v54 = vrot.slane %v405_v22, %v3425_v26  ;;  %v3938_v59 = vrot.slane %v413_v13, %v3425_v26 }
  0xef   : > { %4799 = vst [vmem:[#allocation87_spill] sm:$0xff] %v3928_v20  ;;  %v3941_v3 = vrot.slane %v417_v58, %v3425_v26  ;;  %v1424_v43 = vrot.slane %v313_v56, %v3425_v26  ;;  %v1370_v49 = vrot.slane %v3165_v29, %v3425_v26  ;;  %v1382_v61 = vrot.slane %v3179_v32, %v3400_v23  ;;  %v394_v20 = vpop.permute.xlu1 %393  ;;  %v392_v22 = vpop.permute.xlu0 %391 }
  0xf0   : > { %4800 = vst [vmem:[#allocation88_spill] sm:$0xff] %v3935_v54  ;;  %4801 = vst [vmem:[#allocation89_spill] sm:$0xff] %v3938_v59  ;;  %v310_v17 = vmul.f32 %v3165_v29, %v3460_v27  ;;  %1877 = vmatprep.subr.mxu0 %v439_v60  ;;  %v3952_v13 = vrot.slane %v350_v48, %v3425_v26  ;;  %v311_v56 = vmul.f32 %v3179_v32, %v3500_v5 }
  0xf1   : > { %4802 = vst [vmem:[#allocation90_spill] sm:$0xff] %v3941_v3  ;;  %v346_v58 = vrot.slane %v3879_v0, %v3425_v26  ;;  %v3960_v55 = vsel %vm395_vm2, %v394_v20, %v388_v53  ;;  %v3964_v27 = vsel %vm395_vm2, %v392_v22, %v394_v20  ;;  %v3968_v60 = vsel %vm395_vm2, %v390_v18, %v392_v22 }
  0xf2   : > { %4803 = vst [vmem:[#allocation91_spill] sm:$0xff] %v3952_v13  ;;  %4804 = vst [vmem:[#allocation92_spill] sm:$0xff] %v3964_v27  ;;  %v354_v48 = vrot.slane %v279_v12, %v3425_v26  ;;  %v438_v5 = vmul.f32 %v3935_v54, %v3960_v55  ;;  %v440_v0 = vmul.f32 %v3938_v59, %v3968_v60 }
  0xf3   : > { %4805 = vst [vmem:[#allocation93_spill] sm:$0xff] %v3968_v60  ;;  %v441_v53 = vmul.f32 %v3941_v3, %v3964_v27  ;;  %v358_v41 = vrot.slane %v279_v12, %v3400_v23  ;;  %v3979_v20 = vrot.slane %v1428_v35, %v3425_v26  ;;  %v3982_v38 = vrot.slane %v1420_v28, %v3425_v26  ;;  %v329_v59 = vpop.permute.xlu1 %328  ;;  %v327_v3 = vpop.permute.xlu0 %326 }
  0xf4   : > { %v3985_v18 = vrot.slane %v1424_v43, %v3425_v26  ;;  %v1374_v22 = vrot.slane %v3165_v29, %v3400_v23  ;;  %v1378_v54 = vrot.slane %v3179_v32, %v3425_v26  ;;  %1878 = vmatpush1.msra.mxu0 %v438_v5  ;;  %v1326_v12 = vrot.slane %v310_v17, %v3425_v26 }
  0xf5   : > { %1948 = vmatprep.subr.mxu1 %v441_v53  ;;  %v1338_v35 = vrot.slane %v311_v56, %v3400_v23  ;;  %v3994_v28 = vrot.slane %v1370_v49, %v3425_v26  ;;  %v3997_v43 = vrot.slane %v1382_v61, %v3425_v26  ;;  %v4001_v29 = vsel %vm336_vm3, %v327_v3, %v329_v59 }
  0xf6   : > { %1949 = vmatpush1.msra.mxu1 %v440_v0  ;;  %v1330_v32 = vrot.slane %v310_v17, %v3400_v23  ;;  %v380_v5 = vmul.f32 %v3952_v13, %v4001_v29  ;;  %v4007_v53 = vrot.slane %v346_v58, %v3425_v26  ;;  %v4010_v27 = vrot.slane %v354_v48, %v3425_v26 }
  0xf7   : > { %v4013_v49 = vrot.slane %v358_v41, %v3425_v26  ;;  %v4016_v61 = vrot.slane %v1374_v22, %v3425_v26  ;;  %v1334_v60 = vrot.slane %v311_v56, %v3425_v26  ;;  %v1280_v23 = vrot.slane %v3052_v14, %v3175_v31  ;;  %v333_v0 = vpop.permute.xlu1 %332  ;;  %v331_v22 = vpop.permute.xlu0 %330 }
  0xf8   : > { %4806 = vst [vmem:[#allocation94_spill] sm:$0xff] %v4007_v53  ;;  %4807 = vst [vmem:[#allocation95_spill] sm:$0xff] %v4010_v27  ;;  %v1292_v17 = vrot.slane %v3069_v19, %v3168_v30  ;;  %v4024_v58 = vrot.slane %v1378_v54, %v3425_v26  ;;  %v4027_v48 = vrot.slane %v1326_v12, %v3425_v26  ;;  %1879 = vmatprep.subr.mxu0 %v380_v5 }
  0xf9   : > { %4808 = vst [vmem:[#allocation96_spill] sm:$0xff] %v4013_v49  ;;  %v4030_v41 = vrot.slane %v1338_v35, %v3425_v26  ;;  %v1284_v56 = vrot.slane %v3052_v14, %v3168_v30  ;;  %v4036_v13 = vsel %vm336_vm3, %v333_v0, %v327_v3  ;;  %v4040_v54 = vsel %vm336_vm3, %v331_v22, %v333_v0 }
  0xfa   : > { %v4044_v12 = vsel %vm336_vm3, %v329_v59, %v331_v22  ;;  %v1288_v35 = vrot.slane %v3069_v19, %v3175_v31  ;;  %v379_v5 = vmul.f32 %v4007_v53, %v4036_v13  ;;  %v4051_v14 = vrot.slane %v1330_v32, %v3425_v26 }
  0xfb   : > { %4809 = vst [vmem:[#allocation97_spill] sm:$0xff] %v4030_v41  ;;  %v381_v3 = vmul.f32 %v4010_v27, %v4044_v12  ;;  %v382_v0 = vmul.f32 %v4013_v49, %v4040_v54  ;;  %v4058_v41 = vrot.slane %v1334_v60, %v3425_v26  ;;  %v1722_v59 = vmul.f32 %v3612_v8, %v3498_v2  ;;  %v4068_v32 = vpop.permute.xlu1 %1264  ;;  %v4821_v27 = vld [vmem:[#allocation54_spill] sm:$0xff] }
  0xfc   : > { %v4063_v19 = vrot.slane %v1280_v23, %v3175_v31  ;;  %v4066_v22 = vrot.slane %v1292_v17, %v3175_v31  ;;  %1880 = vmatpush1.msra.mxu0 %v379_v5  ;;  %v1721_v53 = vmul.f32 %v3607_v40, %v3464_v57  ;;  %v1724_v26 = vmul.f32 %v3615_v42, %v3490_v36  ;;  %v4081_v17 = vpop.permute.xlu0 %1262 }
  0xfd   : > { %1950 = vmatprep.subr.mxu1 %v382_v0  ;;  %v4075_v60 = vrot.slane %v1284_v56, %v3175_v31  ;;  %1891 = vmatprep.subr.mxu0 %v1722_v59  ;;  %v1676_v2 = vmul.f32 %v3680_v1, %v3545_v47  ;;  %v1723_v23 = vmul.f32 %v3624_v16, %v3494_v34  ;;  %v4811_v0 = vld [vmem:[#allocation41_spill] sm:$0xff]  ;;  %v4812_v59 = vld [vmem:[#allocation59_spill] sm:$0xff] }
  0xfe   : > { %1951 = vmatpush1.msra.mxu1 %v381_v3  ;;  %v4084_v5 = vrot.slane %v1288_v35, %v3175_v31  ;;  %1892 = vmatpush2.msra.mxu0 %v1721_v53  ;;  %v1675_v57 = vmul.f32 %v3683_v63, %v3513_v24  ;;  %v1678_v36 = vmul.f32 %v3686_v39, %v3537_v11 }
  0xff   : > { %1962 = vmatprep.subr.mxu1 %v1724_v26  ;;  %v1221_v56 = vrot.slane %v3024_v6, %v3175_v31  ;;  %1893 = vmatprep.subr.mxu0 %v1676_v2  ;;  %v1632_v34 = vmul.f32 %v3751_v51, %v3596_v25  ;;  %v1677_v47 = vmul.f32 %v3693_v37, %v3541_v10  ;;  %v4098_v24 = vpop.permute.xlu1 %1268  ;;  %v4810_v10 = vld [vmem:[#allocation62_spill] sm:$0xff] }
 0x100   : > { %1963 = vmatpush2.msra.mxu1 %v1723_v23  ;;  %v1233_v53 = vrot.slane %v3038_v9, %v3168_v30  ;;  %1894 = vmatpush2.msra.mxu0 %v1675_v57  ;;  %v1631_v11 = vmul.f32 %v3754_v44, %v3558_v46  ;;  %v1634_v35 = vmul.f32 %v3757_v50, %v3588_v4  ;;  %v1267_v2 = vpop.permute.xlu0 %1266  ;;  %v4813_v46 = vld [vmem:[#allocation42_spill] sm:$0xff]  ;;  %v4814_v57 = vld [vmem:[#allocation60_spill] sm:$0xff] }
 0x101   : > { %1964 = vmatprep.subr.mxu1 %v1678_v36  ;;  %v1225_v3 = vrot.slane %v3024_v6, %v3168_v30  ;;  %1895 = vmatprep.subr.mxu0 %v1632_v34  ;;  %v1586_v25 = vmul.f32 %v4810_v10, %v3667_v52  ;;  %v1633_v26 = vmul.f32 %v4812_v59, %v4811_v0  ;;  %v4815_v36 = vld [vmem:[#allocation47_spill] sm:$0xff]  ;;  %v4816_v34 = vld [vmem:[#allocation56_spill] sm:$0xff] }
 0x102   : > { %1965 = vmatpush2.msra.mxu1 %v1677_v47  ;;  %v1229_v23 = vrot.slane %v3038_v9, %v3175_v31  ;;  %1896 = vmatpush2.msra.mxu0 %v1631_v11  ;;  %v1585_v4 = vmul.f32 %v4814_v57, %v4813_v46  ;;  %v1588_v6 = vmul.f32 %v3833_v15, %v4815_v36  ;;  %v4817_v47 = vld [vmem:[#allocation48_spill] sm:$0xff]  ;;  %v4818_v0 = vld [vmem:[#allocation71_spill] sm:$0xff]  ;;  %v4819_v11 = vld [vmem:[#allocation49_spill] sm:$0xff] }
 0x103   : > { %1966 = vmatprep.subr.mxu1 %v1634_v35  ;;  %v4117_v30 = vrot.slane %v1221_v56, %v3175_v31  ;;  %v1540_v52 = vmul.f32 %v3846_v7, %v4816_v34  ;;  %1897 = vmatprep.subr.mxu0 %v1586_v25  ;;  %v1587_v49 = vmul.f32 %v4818_v0, %v4817_v47  ;;  %v4820_v35 = vld [vmem:[#allocation70_spill] sm:$0xff]  ;;  %v4822_v50 = vld [vmem:[#allocation72_spill] sm:$0xff]  ;;  %v1208_v56 = vpop.permute.xlu1 %1207  ;;  %v4823_v25 = vld [vmem:[#allocation55_spill] sm:$0xff] }
 0x104   : > { %1967 = vmatpush2.msra.mxu1 %v1633_v26  ;;  %v4124_v9 = vrot.slane %v1233_v53, %v3175_v31  ;;  %v1539_v46 = vmul.f32 %v4820_v35, %v4819_v11  ;;  %v1542_v36 = vmul.f32 %v4822_v50, %v4821_v27  ;;  %1898 = vmatpush2.msra.mxu0 %v1585_v4  ;;  %v4824_v34 = vld [vmem:[#allocation69_spill] sm:$0xff]  ;;  %v1206_v53 = vpop.permute.xlu0 %1205  ;;  %v4826_v4 = vld [vmem:[#allocation67_spill] sm:$0xff] }
 0x105   : > { %1968 = vmatprep.subr.mxu1 %v1588_v6  ;;  %v4131_v59 = vrot.slane %v1225_v3, %v3175_v31  ;;  %v1541_v26 = vmul.f32 %v3904_v45, %v4823_v25  ;;  %v1496_v47 = vmul.f32 %v3913_v62, %v4824_v34  ;;  %1899 = vmatprep.subr.mxu0 %v1540_v52  ;;  %v4825_v7 = vld [vmem:[#allocation61_spill] sm:$0xff]  ;;  %v4827_v6 = vld [vmem:[#allocation83_spill] sm:$0xff]  ;;  %v4828_v3 = vld [vmem:[#allocation68_spill] sm:$0xff] }
 0x106   : > { %1969 = vmatpush2.msra.mxu1 %v1587_v49  ;;  %v4138_v11 = vrot.slane %v1229_v23, %v3175_v31  ;;  %v1495_v27 = vmul.f32 %v3907_v21, %v4825_v7  ;;  %v1498_v50 = vmul.f32 %v4827_v6, %v4826_v4  ;;  %v4829_v35 = vld [vmem:[#allocation85_spill] sm:$0xff]  ;;  %1900 = vmatpush2.msra.mxu0 %v1539_v46  ;;  %v4830_v25 = vld [vmem:[#allocation74_spill] sm:$0xff]  ;;  %v4832_v52 = vld [vmem:[#allocation79_spill] sm:$0xff] }
 0x107   : > { %v1497_v51 = vmul.f32 %v4829_v35, %v4828_v3  ;;  %1970 = vmatprep.subr.mxu1 %v1542_v36  ;;  %v4831_v45 = vld [vmem:[#allocation86_spill] sm:$0xff]  ;;  %v1452_v49 = vmul.f32 %v3979_v20, %v4832_v52  ;;  %v4833_v62 = vld [vmem:[#allocation81_spill] sm:$0xff]  ;;  %1901 = vmatprep.subr.mxu0 %v1496_v47  ;;  %v4834_v7 = vld [vmem:[#allocation80_spill] sm:$0xff]  ;;  %v1406_v46 = vmul.f32 %v3997_v43, %v3960_v55 }
 0x108   : > { %v1449_v34 = vmul.f32 %v4831_v45, %v4830_v25  ;;  %v1450_v31 = vmul.f32 %v3982_v38, %v4833_v62  ;;  %1971 = vmatpush2.msra.mxu1 %v1541_v26  ;;  %v1451_v23 = vmul.f32 %v3985_v18, %v4834_v7  ;;  %v4835_v4 = vld [vmem:[#allocation87_spill] sm:$0xff]  ;;  %1902 = vmatpush2.msra.mxu0 %v1495_v27  ;;  %v4836_v36 = vld [vmem:[#allocation93_spill] sm:$0xff]  ;;  %v4837_v25 = vld [vmem:[#allocation92_spill] sm:$0xff]  ;;  %v1212_v27 = vpop.permute.xlu1 %1211 }
 0x109   : > { %v1403_v6 = vmul.f32 %v3994_v28, %v4835_v4  ;;  %1972 = vmatprep.subr.mxu1 %v1498_v50  ;;  %v1404_v3 = vmul.f32 %v4016_v61, %v4836_v36  ;;  %v1405_v62 = vmul.f32 %v4024_v58, %v4837_v25  ;;  %v1272_v26 = vsel %vm1270_vm7, %v4068_v32, %v1267_v2  ;;  %v4838_v55 = vld [vmem:[#allocation97_spill] sm:$0xff]  ;;  %v1210_v7 = vpop.permute.xlu0 %1209  ;;  %v2908_v4 = vld [vmem:[%s4614_s2] sm:$0xff] }
 0x10a   : > { %1903 = vmatprep.subr.mxu0 %v1450_v31  ;;  %1973 = vmatpush2.msra.mxu1 %v1497_v51  ;;  %v1359_v47 = vmul.f32 %v4027_v48, %v4001_v29  ;;  %v1362_v52 = vmul.f32 %v4838_v55, %v4036_v13  ;;  %v1360_v50 = vmul.f32 %v4051_v14, %v4044_v12 }
 0x10b   : > { %1904 = vmatpush2.msra.mxu0 %v1449_v34  ;;  %1974 = vmatprep.subr.mxu1 %v1452_v49  ;;  %v1273_v51 = vsel %vm1270_vm7, %v4081_v17, %v4068_v32  ;;  %v1274_v29 = vsel %vm1270_vm7, %v4098_v24, %v4081_v17  ;;  %v1215_v13 = vsel %vm1213_vm9, %v1208_v56, %v1210_v7 }
 0x10c   : > { %1905 = vmatprep.subr.mxu0 %v1404_v3  ;;  %1975 = vmatpush2.msra.mxu1 %v1451_v23  ;;  %v1361_v12 = vmul.f32 %v4058_v41, %v4040_v54  ;;  %v1271_v34 = vsel %vm1270_vm7, %v1267_v2, %v4098_v24  ;;  %v1314_v49 = vmul.f32 %v4075_v60, %v1272_v26 }
 0x10d   : > { %1906 = vmatpush2.msra.mxu0 %v1403_v6  ;;  %1976 = vmatprep.subr.mxu1 %v1406_v46  ;;  %v1216_v32 = vsel %vm1213_vm9, %v1206_v53, %v1208_v56  ;;  %v1217_v17 = vsel %vm1213_vm9, %v1212_v27, %v1206_v53  ;;  %v1255_v31 = vmul.f32 %v4131_v59, %v1215_v13  ;;  %v4839_v46 = vmov 0.0  }
 0x10e   : > { %1907 = vmatprep.subr.mxu0 %v1360_v50  ;;  %1977 = vmatpush2.msra.mxu1 %v1405_v62  ;;  %v1313_v54 = vmul.f32 %v4063_v19, %v1273_v51  ;;  %v1316_v23 = vmul.f32 %v4066_v22, %v1274_v29  ;;  %v1214_v24 = vsel %vm1213_vm9, %v1210_v7, %v1212_v27 }
 0x10f   : > { %1908 = vmatpush2.msra.mxu0 %v1359_v47  ;;  %1978 = vmatprep.subr.mxu1 %v1362_v52  ;;  %v1315_v2 = vmul.f32 %v4084_v5, %v1271_v34  ;;  %v1254_v56 = vmul.f32 %v4117_v30, %v1216_v32  ;;  %v1257_v53 = vmul.f32 %v4124_v9, %v1217_v17 }
 0x110   : > { %1909 = vmatprep.subr.mxu0 %v1314_v49  ;;  %1979 = vmatpush2.msra.mxu1 %v1361_v12  ;;  %v1256_v6 = vmul.f32 %v4138_v11, %v1214_v24 }
 0x111   : > { %1910 = vmatpush2.msra.mxu0 %v1313_v54  ;;  %1980 = vmatprep.subr.mxu1 %v1316_v23 }
 0x112   : > { %1911 = vmatprep.subr.mxu0 %v1255_v31  ;;  %1981 = vmatpush2.msra.mxu1 %v1315_v2 }
 0x113   : > { %1912 = vmatpush2.msra.mxu0 %v1254_v56  ;;  %1982 = vmatprep.subr.mxu1 %v1257_v53  ;;  %v4840_v56 = vld [vmem:[#allocation32_spill] sm:$0xff] }
 0x114   : > { %1914 = vmatmul.mubr.f32.vlgmr.msra.gmra.mxu0 %v2908_v4  ;;  %1983 = vmatpush2.msra.mxu1 %v1256_v6  ;;  %v4841_v6 = vld [vmem:[#allocation35_spill] sm:$0xff] }
 0x115   : > { %1985 = vmatmul.mubr.f32.vlgmr.msra.gmra.mxu1 %v2908_v4  ;;  %2711 = vmatprep.mubr.f32.mxu0 %v4839_v46 }
 0x116   : > { %2782 = vmatprep.mubr.f32.mxu1 %v4839_v46 }
 0x117   : > { %v1842_v36 = vpop.permute.xlu0 %1841 }
 0x1d4   : > { %v1915_v3 = vpop.f32.mrf.mxu0 }
 0x1d5   : > { %v1916_v25 = vadd.f32 %v1915_v3, %v1842_v36  ;;  %v1986_v62 = vpop.f32.mrf.mxu1 }
 0x1d6   : > { %v1987_v26 = vadd.f32 %v1986_v62, %v1842_v36  ;;  %v1917_v47 = vpop.f32.mrf.mxu0 }
 0x1d7   : > { %v4207_v52 = vmax.f32 %v1916_v25, 0.0  ;;  %v1918_v50 = vadd.f32 %v1917_v47, %v1842_v36  ;;  %v1988_v27 = vpop.f32.mrf.mxu1 }
 0x1d8   : > { %v4209_v7 = vmax.f32 %v1987_v26, 0.0  ;;  %v1989_v51 = vadd.f32 %v1988_v27, %v1842_v36 }
 0x1d9   : > { %v4211_v29 = vmax.f32 %v1918_v50, 0.0  ;;  %2171 = vrot.lane.b32.xlu1 %v4207_v52, %s2925_s14  ;;  %v2331_v13 = vrot.slane %v4207_v52, 4 }
 0x1da   : > { %v4216_v12 = vmax.f32 %v1989_v51, 0.0  ;;  %2175 = vrot.lane.b32.xlu0 %v4209_v7, %s2925_s14  ;;  %v2333_v34 = vrot.slane %v4209_v7, 4 }
 0x1db   : > { %v2332_v49 = vrot.slane %v4211_v29, 4  ;;  %2339 = vst [vmem:[#allocation3 + $0xe8] sm:$0xf0] %v2331_v13  ;;  %v4843_v13 = vld [vmem:[#allocation34_spill] sm:$0xff] }
 0x1dc   : > { %v2334_v32 = vrot.slane %v4216_v12, 4  ;;  %2341 = vst [vmem:[#allocation3 + $0x190] sm:$0xf0] %v2333_v34 }
 0x1dd   : > { %2173 = vrot.lane.b32.xlu1 %v4211_v29, %s2925_s14  ;;  %2340 = vst [vmem:[#allocation3 + $0xf8] sm:$0xf0] %v2332_v49 }
 0x1de   : > { %2203 = vrot.lane.b32.xlu0 %v4207_v52, %s2924_s13  ;;  %2342 = vst [vmem:[#allocation3 + $0xb8] sm:$0xf0] %v2334_v32 }
 0x1e1   : > { %2177 = vrot.lane.b32.xlu1 %v4216_v12, %s2925_s14 }
 0x1e2   : > { %2207 = vrot.lane.b32.xlu0 %v4209_v7, %s2924_s13 }
 0x1e5   : > { %2205 = vrot.lane.b32.xlu1 %v4211_v29, %s2924_s13 }
 0x1e6   : > { %2119 = vrot.lane.b32.xlu0 %v4207_v52, %s2927_s16 }
 0x1e9   : > { %2209 = vrot.lane.b32.xlu1 %v4216_v12, %s2924_s13 }
 0x1ea   : > { %2123 = vrot.lane.b32.xlu0 %v4209_v7, %s2927_s16 }
 0x1ed   : > { %2121 = vrot.lane.b32.xlu1 %v4211_v29, %s2927_s16 }
 0x1ee   : > { %2151 = vrot.lane.b32.xlu0 %v4207_v52, %s2926_s15 }
 0x1f1   : > { %2125 = vrot.lane.b32.xlu1 %v4216_v12, %s2927_s16 }
 0x1f2   : > { %2155 = vrot.lane.b32.xlu0 %v4209_v7, %s2926_s15 }
 0x1f5   : > { %2153 = vrot.lane.b32.xlu1 %v4211_v29, %s2926_s15 }
 0x1f6   : > { %2067 = vrot.lane.b32.xlu0 %v4207_v52, %s2929_s18 }
 0x1f9   : > { %2157 = vrot.lane.b32.xlu1 %v4216_v12, %s2926_s15 }
 0x1fa   : > { %2071 = vrot.lane.b32.xlu0 %v4209_v7, %s2929_s18 }
 0x1fd   : > { %2069 = vrot.lane.b32.xlu1 %v4211_v29, %s2929_s18 }
 0x1fe   : > { %2099 = vrot.lane.b32.xlu0 %v4207_v52, %s2928_s17 }
 0x201   : > { %2073 = vrot.lane.b32.xlu1 %v4216_v12, %s2929_s18 }
 0x202   : > { %2103 = vrot.lane.b32.xlu0 %v4209_v7, %s2928_s17 }
 0x205   : > { %2101 = vrot.lane.b32.xlu1 %v4211_v29, %s2928_s17 }
 0x206   : > { %2015 = vrot.lane.b32.xlu0 %v4207_v52, %s2931_s20 }
 0x209   : > { %2105 = vrot.lane.b32.xlu1 %v4216_v12, %s2928_s17 }
 0x20a   : > { %2019 = vrot.lane.b32.xlu0 %v4209_v7, %s2931_s20 }
 0x20d   : > { %2017 = vrot.lane.b32.xlu1 %v4211_v29, %s2931_s20 }
 0x20e   : > { %2047 = vrot.lane.b32.xlu0 %v4207_v52, %s2930_s19 }
 0x211   : > { %2021 = vrot.lane.b32.xlu1 %v4216_v12, %s2931_s20 }
 0x212   : > { %2051 = vrot.lane.b32.xlu0 %v4209_v7, %s2930_s19 }
 0x215   : > { %2049 = vrot.lane.b32.xlu1 %v4211_v29, %s2930_s19 }
 0x216   : > { %1995 = vrot.lane.b32.xlu0 %v4207_v52, %s2932_s23 }
 0x219   : > { %2053 = vrot.lane.b32.xlu1 %v4216_v12, %s2930_s19 }
 0x21a   : > { %1999 = vrot.lane.b32.xlu0 %v4209_v7, %s2932_s23 }
 0x21d   : > { %1997 = vrot.lane.b32.xlu1 %v4211_v29, %s2932_s23 }
 0x21e   : > { %2415 = vrot.lane.b32.xlu0 %v4207_v52, %s2933_s24 }
 0x221   : > { %2001 = vrot.lane.b32.xlu1 %v4216_v12, %s2932_s23 }
 0x222   : > { %2419 = vrot.lane.b32.xlu0 %v4209_v7, %s2933_s24 }
 0x225   : > { %2417 = vrot.lane.b32.xlu1 %v4211_v29, %s2933_s24 }
 0x226   : > { %2363 = vrot.lane.b32.xlu0 %v4207_v52, %s2917_s27 }
 0x229   : > { %2421 = vrot.lane.b32.xlu1 %v4216_v12, %s2933_s24 }
 0x22a   : > { %2367 = vrot.lane.b32.xlu0 %v4209_v7, %s2917_s27 }
 0x22d   : > { %2365 = vrot.lane.b32.xlu1 %v4211_v29, %s2917_s27 }
 0x22e   : > { %2395 = vrot.lane.b32.xlu0 %v4207_v52, %s2934_s30 }
 0x231   : > { %2369 = vrot.lane.b32.xlu1 %v4216_v12, %s2917_s27 }
 0x232   : > { %2399 = vrot.lane.b32.xlu0 %v4209_v7, %s2934_s30 }
 0x235   : > { %2397 = vrot.lane.b32.xlu1 %v4211_v29, %s2934_s30 }
 0x236   : > { %2343 = vrot.lane.b32.xlu0 %v4207_v52, %s2918_s28 }
 0x239   : > { %2401 = vrot.lane.b32.xlu1 %v4216_v12, %s2934_s30 }
 0x23a   : > { %2347 = vrot.lane.b32.xlu0 %v4209_v7, %s2918_s28 }
 0x23d   : > { %2345 = vrot.lane.b32.xlu1 %v4211_v29, %s2918_s28 }
 0x23e   : > { %2275 = vrot.lane.b32.xlu0 %v4207_v52, %s2921_s10 }
 0x241   : > { %2349 = vrot.lane.b32.xlu1 %v4216_v12, %s2918_s28 }
 0x242   : > { %2279 = vrot.lane.b32.xlu0 %v4209_v7, %s2921_s10 }
 0x245   : > { %2277 = vrot.lane.b32.xlu1 %v4211_v29, %s2921_s10 }
 0x246   : > { %2307 = vrot.lane.b32.xlu0 %v4207_v52, %s2919_s29 }
 0x249   : > { %2281 = vrot.lane.b32.xlu1 %v4216_v12, %s2921_s10 }
 0x24a   : > { %2311 = vrot.lane.b32.xlu0 %v4209_v7, %s2919_s29 }
 0x24b   : > { %v2172_v17 = vpop.permute.xlu1 %2171 }
 0x24c   : > { %v2176_v31 = vpop.permute.xlu0 %2175 }
 0x24d   : > { %2309 = vrot.lane.b32.xlu1 %v4211_v29, %s2919_s29 }
 0x24e   : > { %2223 = vrot.lane.b32.xlu0 %v4207_v52, %s2923_s12 }
 0x24f   : > { %v2174_v54 = vpop.permute.xlu1 %2173 }
 0x250   : > { %v2180_v23 = vsel %vm747_vm12, %v2174_v54, %v2176_v31  ;;  %v2181_v24 = vsel %vm747_vm12, %v2172_v17, %v2174_v54  ;;  %v2204_v2 = vpop.permute.xlu0 %2203 }
 0x251   : > { %v2184_v53 = vmul.f32 %v2181_v24, %v4840_v56  ;;  %v2185_v4 = vmul.f32 %v2180_v23, %v4841_v6  ;;  %v2539_v46 = vmul.f32 %v2181_v24, %v3683_v63  ;;  %v2540_v36 = vmul.f32 %v2180_v23, %v3680_v1  ;;  %2313 = vrot.lane.b32.xlu1 %v4216_v12, %s2919_s29  ;;  %v4842_v1 = vld [vmem:[#allocation33_spill] sm:$0xff] }
 0x252   : > { %2227 = vrot.lane.b32.xlu0 %v4209_v7, %s2923_s12 }
 0x253   : > { %v2192_v3 = vrot.slane %v2184_v53, 4  ;;  %v2193_v25 = vrot.slane %v2185_v4, 4  ;;  %v2547_v62 = vrot.slane %v2539_v46, 4  ;;  %v2548_v26 = vrot.slane %v2540_v36, 4  ;;  %v2178_v47 = vpop.permute.xlu1 %2177  ;;  %v4845_v4 = vld [vmem:[#allocation31_spill] sm:$0xff] }
 0x254   : > { %v2179_v50 = vsel %vm747_vm12, %v2176_v31, %v2178_v47  ;;  %v2182_v27 = vsel %vm747_vm12, %v2178_v47, %v2172_v17  ;;  %v2208_v63 = vpop.permute.xlu0 %2207 }
 0x255   : > { %2200 = vst [vmem:[#allocation3 + $0x150] sm:$0xf0] %v2192_v3  ;;  %2201 = vst [vmem:[#allocation3 + $0x108] sm:$0xf0] %v2193_v25  ;;  %v2183_v51 = vmul.f32 %v2182_v27, %v4842_v1  ;;  %v2186_v34 = vmul.f32 %v2179_v50, %v4843_v13  ;;  %v2541_v49 = vmul.f32 %v2179_v50, %v3693_v37  ;;  %2225 = vrot.lane.b32.xlu1 %v4211_v29, %s2923_s12  ;;  %v2624_v25 = vld [vmem:[%s4617_s5] sm:$0xf] }
 0x256   : > { %2555 = vst [vmem:[#allocation3 + $0x128] sm:$0xf0] %v2547_v62  ;;  %2556 = vst [vmem:[#allocation3 + $0x38] sm:$0xf0] %v2548_v26  ;;  %v2542_v32 = vmul.f32 %v2182_v27, %v3686_v39  ;;  %2255 = vrot.lane.b32.xlu0 %v4207_v52, %s2922_s11  ;;  %v4844_v39 = vld [vmem:[#allocation28_spill] sm:$0xff]  ;;  %v4846_v26 = vld [vmem:[#allocation29_spill] sm:$0xff] }
 0x257   : > { %v2191_v17 = vrot.slane %v2183_v51, 4  ;;  %v2194_v31 = vrot.slane %v2186_v34, 4  ;;  %v2549_v54 = vrot.slane %v2541_v49, 4  ;;  %v2206_v24 = vpop.permute.xlu1 %2205  ;;  %v4847_v50 = vld [vmem:[#allocation30_spill] sm:$0xff] }
 0x258   : > { %v2550_v23 = vrot.slane %v2542_v32, 4  ;;  %v2212_v56 = vsel %vm806_vm11, %v2206_v24, %v2208_v63  ;;  %v2213_v53 = vsel %vm806_vm11, %v2204_v2, %v2206_v24  ;;  %v2120_v37 = vpop.permute.xlu0 %2119 }
 0x259   : > { %2199 = vst [vmem:[#allocation3 + $0x120] sm:$0xf0] %v2191_v17  ;;  %2202 = vst [vmem:[#allocation3 + $0x60] sm:$0xf0] %v2194_v31  ;;  %v2216_v6 = vmul.f32 %v2213_v53, %v4844_v39  ;;  %v2217_v52 = vmul.f32 %v2212_v56, %v4845_v4  ;;  %v2559_v46 = vmul.f32 %v2213_v53, %v3607_v40  ;;  %2229 = vrot.lane.b32.xlu1 %v4216_v12, %s2923_s12  ;;  %v4851_v4 = vld [vmem:[#allocation44_spill] sm:$0xff] }
 0x25a   : > { %2557 = vst [vmem:[#allocation3 + $0x88] sm:$0xf0] %v2549_v54  ;;  %2558 = vst [vmem:[#allocation3 + $0x170] sm:$0xf0] %v2550_v23  ;;  %v2560_v36 = vmul.f32 %v2212_v56, %v3612_v8  ;;  %2259 = vrot.lane.b32.xlu0 %v4209_v7, %s2922_s11 }
 0x25b   : > { %2220 = vst [vmem:[#allocation3 + $0x188] sm:$0xf] %v2216_v6  ;;  %2221 = vst [vmem:[#allocation3 + $0x138] sm:$0xf] %v2217_v52  ;;  %v2210_v3 = vpop.permute.xlu1 %2209 }
 0x25c   : > { %2563 = vst [vmem:[#allocation3 + $0x58] sm:$0xf] %v2559_v46  ;;  %2564 = vst [vmem:[#allocation3 + $0xf0] sm:$0xf] %v2560_v36  ;;  %v2211_v40 = vsel %vm806_vm11, %v2208_v63, %v2210_v3  ;;  %v2214_v8 = vsel %vm806_vm11, %v2210_v3, %v2204_v2  ;;  %v2124_v62 = vpop.permute.xlu0 %2123  ;;  %vm2634_vm11 = vcmask 1043456  }
 0x25d   : > { %v2215_v47 = vmul.f32 %v2214_v8, %v4846_v26  ;;  %v2218_v7 = vmul.f32 %v2211_v40, %v4847_v50  ;;  %v2561_v27 = vmul.f32 %v2211_v40, %v3624_v16  ;;  %v2562_v1 = vmul.f32 %v2214_v8, %v3615_v42  ;;  %2257 = vrot.lane.b32.xlu1 %v4211_v29, %s2922_s11  ;;  %v4848_v16 = vld [vmem:[#allocation40_spill] sm:$0xff]  ;;  %v4849_v42 = vld [vmem:[#allocation45_spill] sm:$0xff] }
 0x25e   : > { %2627 = vperm.xlu0 %2906, %v2624_v25  }
 0x25f   : > { %2219 = vst [vmem:[#allocation3 + $0xe0] sm:$0xf] %v2215_v47  ;;  %2222 = vst [vmem:[#allocation3 + $0x140] sm:$0xf] %v2218_v7  ;;  %v2122_v63 = vpop.permute.xlu1 %2121 }
 0x260   : > { %2565 = vst [vmem:[#allocation3 + $0x30] sm:$0xf] %v2561_v27  ;;  %2566 = vst [vmem:[#allocation3 + $0x198] sm:$0xf] %v2562_v1  ;;  %v2128_v2 = vsel %vm629_vm14, %v2122_v63, %v2124_v62  ;;  %v2129_v51 = vsel %vm629_vm14, %v2120_v37, %v2122_v63  ;;  %v2152_v13 = vpop.permute.xlu0 %2151  ;;  %v4853_v27 = vld [vmem:[#allocation39_spill] sm:$0xff] }
 0x261   : > { %v2132_v34 = vmul.f32 %v2129_v51, %v4848_v16  ;;  %v2133_v49 = vmul.f32 %v2128_v2, %v4849_v42  ;;  %v2511_v29 = vmul.f32 %v2129_v51, %v4814_v57  ;;  %v2512_v32 = vmul.f32 %v2128_v2, %v4810_v10  ;;  %2261 = vrot.lane.b32.xlu1 %v4216_v12, %s2922_s11  ;;  %v4850_v10 = vld [vmem:[#allocation43_spill] sm:$0xff]  ;;  %v4854_v2 = vld [vmem:[#allocation57_spill] sm:$0xff]  ;;  %s2878_s11 = sshll.u32 %s4914_s22, 4 }
 0x262   : > { %s251_s14 = scalar_lea.vmem %s4618_s6, %s2878_s11 }
 0x263   : > { %v2621_v17 = vld [vmem:[#allocation3 + $0xf0] sm:$0xf]  ;;  %v2620_v31 = vld [vmem:[#allocation3 + $0x58] sm:$0xf]  ;;  %v2140_v54 = vrot.slane %v2132_v34, 4  ;;  %v2141_v23 = vrot.slane %v2133_v49, 4  ;;  %v2126_v53 = vpop.permute.xlu1 %2125 }
 0x264   : > { %v2519_v24 = vrot.slane %v2511_v29, 4  ;;  %v2520_v56 = vrot.slane %v2512_v32, 4  ;;  %2869 = vmatprep.subr.msk.mxu0 %vm2634_vm11, %v2621_v17  ;;  %v2127_v39 = vsel %vm629_vm14, %v2124_v62, %v2126_v53  ;;  %v2130_v57 = vsel %vm629_vm14, %v2126_v53, %v2120_v37  ;;  %v2156_v6 = vpop.permute.xlu0 %2155  ;;  %v4855_v29 = vld [vmem:[#allocation37_spill] sm:$0xff]  ;;  %v4856_v17 = vld [vmem:[#allocation38_spill] sm:$0xff] }
 0x265   : > { %2870 = vmatpush1.msk.msra.mxu0 %vm2634_vm11, %v2620_v31  ;;  %2148 = vst [vmem:[#allocation3 + $0x110] sm:$0xf0] %v2140_v54  ;;  %2149 = vst [vmem:[#allocation3 + $0x118] sm:$0xf0] %v2141_v23  ;;  %v2131_v12 = vmul.f32 %v2130_v57, %v4850_v10  ;;  %v2134_v52 = vmul.f32 %v2127_v39, %v4851_v4  ;;  %v2513_v46 = vmul.f32 %v2127_v39, %v4818_v0  ;;  %v4857_v54 = vld [vmem:[#allocation59_spill] sm:$0xff]  ;;  %v4858_v23 = vld [vmem:[#allocation58_spill] sm:$0xff] }
 0x266   : > { %2527 = vst [vmem:[#allocation3 + $0x70] sm:$0xf0] %v2519_v24  ;;  %2528 = vst [vmem:[#allocation3 + $0x78] sm:$0xf0] %v2520_v56  ;;  %v2514_v36 = vmul.f32 %v2130_v57, %v3833_v15  ;;  %v4852_v15 = vld [vmem:[#allocation36_spill] sm:$0xff]  ;;  %v4859_v57 = vld [vmem:[#allocation53_spill] sm:$0xff] }
 0x267   : > { %v2623_v3 = vld [vmem:[#allocation3 + $0x198] sm:$0xf]  ;;  %v2622_v25 = vld [vmem:[#allocation3 + $0x30] sm:$0xf]  ;;  %v2139_v40 = vrot.slane %v2131_v12, 4  ;;  %v2142_v8 = vrot.slane %v2134_v52, 4  ;;  %v2154_v26 = vpop.permute.xlu1 %2153 }
 0x268   : > { %v2521_v37 = vrot.slane %v2513_v46, 4  ;;  %v2522_v62 = vrot.slane %v2514_v36, 4  ;;  %2872 = vmatprep.subr.msk.mxu1 %vm2634_vm11, %v2623_v3  ;;  %v2160_v47 = vsel %vm688_vm13, %v2154_v26, %v2156_v6  ;;  %v2161_v50 = vsel %vm688_vm13, %v2152_v13, %v2154_v26  ;;  %v2068_v7 = vpop.permute.xlu0 %2067  ;;  %v4860_v10 = vld [vmem:[#allocation64_spill] sm:$0xff] }
 0x269   : > { %2873 = vmatpush1.msk.msra.mxu1 %vm2634_vm11, %v2622_v25  ;;  %2147 = vst [vmem:[#allocation3 + $0x180] sm:$0xf0] %v2139_v40  ;;  %2150 = vst [vmem:[#allocation3 + $0x98] sm:$0xf0] %v2142_v8  ;;  %v2164_v0 = vmul.f32 %v2161_v50, %v4852_v15  ;;  %v2165_v1 = vmul.f32 %v2160_v47, %v4853_v27  ;;  %v2531_v63 = vmul.f32 %v2161_v50, %v3754_v44  ;;  %v4861_v52 = vld [vmem:[#allocation84_spill] sm:$0xff] }
 0x26a   : > { %2529 = vst [vmem:[#allocation3 + $0xa0] sm:$0xf0] %v2521_v37  ;;  %2530 = vst [vmem:[#allocation3 + $0x158] sm:$0xf0] %v2522_v62  ;;  %v2532_v51 = vmul.f32 %v2160_v47, %v4854_v2 }
 0x26b   : > { %2168 = vst [vmem:[#allocation3 + $0x150] sm:$0xf] %v2164_v0  ;;  %2169 = vst [vmem:[#allocation3 + $0x108] sm:$0xf] %v2165_v1  ;;  %v2158_v16 = vpop.permute.xlu1 %2157  ;;  %v4863_v0 = vld [vmem:[#allocation65_spill] sm:$0xff] }
 0x26c   : > { %2535 = vst [vmem:[#allocation3 + $0x128] sm:$0xf] %v2531_v63  ;;  %2536 = vst [vmem:[#allocation3 + $0x38] sm:$0xf] %v2532_v51  ;;  %v2159_v34 = vsel %vm688_vm13, %v2156_v6, %v2158_v16  ;;  %v2162_v42 = vsel %vm688_vm13, %v2158_v16, %v2152_v13  ;;  %v2072_v49 = vpop.permute.xlu0 %2071  ;;  %v4864_v63 = vld [vmem:[#allocation83_spill] sm:$0xff] }
 0x26d   : > { %v2163_v32 = vmul.f32 %v2162_v42, %v4855_v29  ;;  %v2166_v31 = vmul.f32 %v2159_v34, %v4856_v17  ;;  %v2533_v44 = vmul.f32 %v2159_v34, %v4857_v54  ;;  %v2534_v24 = vmul.f32 %v2162_v42, %v4858_v23 }
 0x26f   : > { %2167 = vst [vmem:[#allocation3 + $0x120] sm:$0xf] %v2163_v32  ;;  %2170 = vst [vmem:[#allocation3 + $0x60] sm:$0xf] %v2166_v31  ;;  %v2070_v56 = vpop.permute.xlu1 %2069 }
 0x270   : > { %2537 = vst [vmem:[#allocation3 + $0x88] sm:$0xf] %v2533_v44  ;;  %2538 = vst [vmem:[#allocation3 + $0x170] sm:$0xf] %v2534_v24  ;;  %v2076_v53 = vsel %vm513_vm0, %v2070_v56, %v2072_v49  ;;  %v2077_v13 = vsel %vm513_vm0, %v2068_v7, %v2070_v56  ;;  %v2100_v39 = vpop.permute.xlu0 %2099  ;;  %v4866_v44 = vld [vmem:[#allocation51_spill] sm:$0xff]  ;;  %v4867_v24 = vld [vmem:[#allocation70_spill] sm:$0xff] }
 0x271   : > { %v2080_v6 = vmul.f32 %v2077_v13, %v4859_v57  ;;  %v2081_v12 = vmul.f32 %v2076_v53, %v4860_v10  ;;  %v2483_v4 = vmul.f32 %v2077_v13, %v3907_v21  ;;  %v2484_v46 = vmul.f32 %v2076_v53, %v4861_v52  ;;  %v4862_v21 = vld [vmem:[#allocation63_spill] sm:$0xff]  ;;  %v4868_v53 = vld [vmem:[#allocation73_spill] sm:$0xff] }
 0x273   : > { %v2617_v36 = vld [vmem:[#allocation3 + $0x38] sm:$0xff]  ;;  %v2616_v3 = vld [vmem:[#allocation3 + $0x128] sm:$0xff]  ;;  %v2088_v25 = vrot.slane %v2080_v6, 4  ;;  %v2089_v40 = vrot.slane %v2081_v12, 4  ;;  %v2491_v8 = vrot.slane %v2483_v4, 4  ;;  %v2492_v37 = vrot.slane %v2484_v46, 4  ;;  %v2074_v62 = vpop.permute.xlu1 %2073 }
 0x274   : > { %2653 = vmatprep.subr.mxu0 %v2617_v36  ;;  %v2075_v26 = vsel %vm513_vm0, %v2072_v49, %v2074_v62  ;;  %v2078_v47 = vsel %vm513_vm0, %v2074_v62, %v2068_v7  ;;  %v2104_v50 = vpop.permute.xlu0 %2103  ;;  %v4869_v4 = vld [vmem:[#allocation50_spill] sm:$0xff]  ;;  %v4870_v46 = vld [vmem:[#allocation52_spill] sm:$0xff] }
 0x275   : > { %2654 = vmatpush1.msra.mxu0 %v2616_v3  ;;  %2096 = vst [vmem:[#allocation3 + $0x168] sm:$0xf0] %v2088_v25  ;;  %2097 = vst [vmem:[#allocation3 + $0x130] sm:$0xf0] %v2089_v40  ;;  %v2079_v15 = vmul.f32 %v2078_v47, %v4862_v21  ;;  %v2082_v27 = vmul.f32 %v2075_v26, %v4863_v0  ;;  %v2485_v1 = vmul.f32 %v2075_v26, %v4829_v35  ;;  %v4865_v35 = vld [vmem:[#allocation46_spill] sm:$0xff]  ;;  %v4872_v40 = vld [vmem:[#allocation72_spill] sm:$0xff] }
 0x276   : > { %2499 = vst [vmem:[#allocation3 + $0x10] sm:$0xf0] %v2491_v8  ;;  %2500 = vst [vmem:[#allocation3 + $0x100] sm:$0xf0] %v2492_v37  ;;  %v2486_v2 = vmul.f32 %v2078_v47, %v4864_v63  ;;  %v4871_v3 = vld [vmem:[#allocation82_spill] sm:$0xff]  ;;  %v4874_v21 = vld [vmem:[#allocation89_spill] sm:$0xff] }
 0x277   : > { %v2619_v51 = vld [vmem:[#allocation3 + $0x170] sm:$0xff]  ;;  %v2618_v16 = vld [vmem:[#allocation3 + $0x88] sm:$0xff]  ;;  %v2087_v34 = vrot.slane %v2079_v15, 4  ;;  %v2090_v42 = vrot.slane %v2082_v27, 4  ;;  %v2493_v49 = vrot.slane %v2485_v1, 4  ;;  %v2102_v29 = vpop.permute.xlu1 %2101 }
 0x278   : > { %v2494_v7 = vrot.slane %v2486_v2, 4  ;;  %2724 = vmatprep.subr.mxu1 %v2619_v51  ;;  %v2108_v32 = vsel %vm572_vm15, %v2102_v29, %v2104_v50  ;;  %v2109_v17 = vsel %vm572_vm15, %v2100_v39, %v2102_v29  ;;  %v2016_v31 = vpop.permute.xlu0 %2015  ;;  %v4873_v47 = vld [vmem:[#allocation78_spill] sm:$0xff] }
 0x279   : > { %2725 = vmatpush1.msra.mxu1 %v2618_v16  ;;  %2095 = vst [vmem:[#allocation3 + $0x50] sm:$0xf0] %v2087_v34  ;;  %2098 = vst [vmem:[#allocation3 + $0x48] sm:$0xf0] %v2090_v42  ;;  %v2112_v54 = vmul.f32 %v2109_v17, %v4865_v35  ;;  %v2113_v23 = vmul.f32 %v2108_v32, %v4866_v44  ;;  %v2503_v56 = vmul.f32 %v2109_v17, %v4867_v24 }
 0x27a   : > { %2501 = vst [vmem:[#allocation3 + $0x160] sm:$0xf0] %v2493_v49  ;;  %2502 = vst [vmem:[#allocation3 + $0x20] sm:$0xf0] %v2494_v7  ;;  %v2504_v13 = vmul.f32 %v2108_v32, %v4868_v53  ;;  %v4876_v32 = vld [vmem:[#allocation90_spill] sm:$0xff] }
 0x27b   : > { %2116 = vst [vmem:[#allocation3 + $0x110] sm:$0xf] %v2112_v54  ;;  %2117 = vst [vmem:[#allocation3 + $0x118] sm:$0xf] %v2113_v23  ;;  %v2106_v57 = vpop.permute.xlu1 %2105 }
 0x27c   : > { %2507 = vst [vmem:[#allocation3 + $0x70] sm:$0xf] %v2503_v56  ;;  %2508 = vst [vmem:[#allocation3 + $0x78] sm:$0xf] %v2504_v13  ;;  %v2107_v6 = vsel %vm572_vm15, %v2104_v50, %v2106_v57  ;;  %v2110_v10 = vsel %vm572_vm15, %v2106_v57, %v2100_v39  ;;  %v2020_v12 = vpop.permute.xlu0 %2019 }
 0x27d   : > { %v2111_v52 = vmul.f32 %v2110_v10, %v4869_v4  ;;  %v2114_v36 = vmul.f32 %v2107_v6, %v4870_v46  ;;  %v2505_v25 = vmul.f32 %v2107_v6, %v4871_v3  ;;  %v2506_v8 = vmul.f32 %v2110_v10, %v4872_v40 }
 0x27f   : > { %2115 = vst [vmem:[#allocation3 + $0x180] sm:$0xf] %v2111_v52  ;;  %2118 = vst [vmem:[#allocation3 + $0x98] sm:$0xf] %v2114_v36  ;;  %v2018_v37 = vpop.permute.xlu1 %2017 }
 0x280   : > { %2509 = vst [vmem:[#allocation3 + $0xa0] sm:$0xf] %v2505_v25  ;;  %2510 = vst [vmem:[#allocation3 + $0x158] sm:$0xf] %v2506_v8  ;;  %v2024_v62 = vsel %vm395_vm2, %v2018_v37, %v2020_v12  ;;  %v2025_v39 = vsel %vm395_vm2, %v2016_v31, %v2018_v37  ;;  %v2048_v26 = vpop.permute.xlu0 %2047  ;;  %v4879_v8 = vld [vmem:[#allocation75_spill] sm:$0xff] }
 0x281   : > { %v2028_v50 = vmul.f32 %v2025_v39, %v4873_v47  ;;  %v2029_v15 = vmul.f32 %v2024_v62, %v4874_v21  ;;  %v2455_v0 = vmul.f32 %v2025_v39, %v3994_v28  ;;  %v2456_v27 = vmul.f32 %v2024_v62, %v4016_v61  ;;  %v4875_v28 = vld [vmem:[#allocation88_spill] sm:$0xff]  ;;  %v4880_v62 = vld [vmem:[#allocation77_spill] sm:$0xff] }
 0x283   : > { %v2613_v1 = vld [vmem:[#allocation3 + $0x78] sm:$0xff]  ;;  %v2612_v63 = vld [vmem:[#allocation3 + $0x70] sm:$0xff]  ;;  %v2036_v2 = vrot.slane %v2028_v50, 4  ;;  %v2037_v51 = vrot.slane %v2029_v15, 4  ;;  %v2463_v16 = vrot.slane %v2455_v0, 4  ;;  %v2464_v34 = vrot.slane %v2456_v27, 4  ;;  %v2022_v42 = vpop.permute.xlu1 %2021 }
 0x284   : > { %2655 = vmatprep.subr.mxu0 %v2613_v1  ;;  %v2023_v49 = vsel %vm395_vm2, %v2020_v12, %v2022_v42  ;;  %v2026_v7 = vsel %vm395_vm2, %v2022_v42, %v2016_v31  ;;  %v2052_v29 = vpop.permute.xlu0 %2051  ;;  %v4878_v12 = vld [vmem:[#allocation76_spill] sm:$0xff]  ;;  %v4881_v15 = vld [vmem:[#allocation91_spill] sm:$0xff] }
 0x285   : > { %2656 = vmatpush1.msra.mxu0 %v2612_v63  ;;  %2044 = vst [vmem:[#allocation3 + $0x1b0] sm:$0xf0] %v2036_v2  ;;  %2045 = vst [vmem:[#allocation3 + $0xd8] sm:$0xf0] %v2037_v51  ;;  %v2027_v61 = vmul.f32 %v2026_v7, %v4875_v28  ;;  %v2030_v17 = vmul.f32 %v2023_v49, %v4876_v32  ;;  %v2457_v35 = vmul.f32 %v2023_v49, %v4024_v58  ;;  %v4882_v27 = vld [vmem:[#allocation95_spill] sm:$0xff]  ;;  %v4883_v49 = vld [vmem:[#allocation94_spill] sm:$0xff] }
 0x286   : > { %2471 = vst [vmem:[#allocation3 + $0x40] sm:$0xf0] %v2463_v16  ;;  %2472 = vst [vmem:[#allocation3 + $0xa8] sm:$0xf0] %v2464_v34  ;;  %v2458_v54 = vmul.f32 %v2026_v7, %v3997_v43  ;;  %v4877_v43 = vld [vmem:[#allocation66_spill] sm:$0xff]  ;;  %v4884_v7 = vld [vmem:[#allocation96_spill] sm:$0xff] }
 0x287   : > { %v2615_v44 = vld [vmem:[#allocation3 + $0x158] sm:$0xff]  ;;  %v2614_v23 = vld [vmem:[#allocation3 + $0xa0] sm:$0xff]  ;;  %v2035_v24 = vrot.slane %v2027_v61, 4  ;;  %v2038_v56 = vrot.slane %v2030_v17, 4  ;;  %v2465_v53 = vrot.slane %v2457_v35, 4  ;;  %v2050_v13 = vpop.permute.xlu1 %2049 }
 0x288   : > { %v2466_v31 = vrot.slane %v2458_v54, 4  ;;  %2726 = vmatprep.subr.mxu1 %v2615_v44  ;;  %v2056_v57 = vsel %vm454_vm1, %v2050_v13, %v2052_v29  ;;  %v2057_v6 = vsel %vm454_vm1, %v2048_v26, %v2050_v13  ;;  %v1996_v10 = vpop.permute.xlu0 %1995 }
 0x289   : > { %2727 = vmatpush1.msra.mxu1 %v2614_v23  ;;  %2043 = vst [vmem:[#allocation3 + $0xb0] sm:$0xf0] %v2035_v24  ;;  %2046 = vst [vmem:[#allocation3 + $0x18] sm:$0xf0] %v2038_v56  ;;  %v2060_v58 = vmul.f32 %v2057_v6, %v4877_v43  ;;  %v2061_v4 = vmul.f32 %v2056_v57, %v4878_v12  ;;  %v2475_v52 = vmul.f32 %v2057_v6, %v4831_v45 }
 0x28a   : > { %2473 = vst [vmem:[#allocation3 + $0xd0] sm:$0xf0] %v2465_v53  ;;  %2474 = vst [vmem:[#allocation3 + $0x1a0] sm:$0xf0] %v2466_v31  ;;  %v2476_v46 = vmul.f32 %v2056_v57, %v3982_v38 }
 0x28b   : > { %2064 = vst [vmem:[#allocation3 + $0x168] sm:$0xf] %v2060_v58  ;;  %2065 = vst [vmem:[#allocation3 + $0x130] sm:$0xf] %v2061_v4  ;;  %v2054_v36 = vpop.permute.xlu1 %2053 }
 0x28c   : > { %2479 = vst [vmem:[#allocation3 + $0x10] sm:$0xf] %v2475_v52  ;;  %2480 = vst [vmem:[#allocation3 + $0x100] sm:$0xf] %v2476_v46  ;;  %v2055_v3 = vsel %vm454_vm1, %v2052_v29, %v2054_v36  ;;  %v2058_v25 = vsel %vm454_vm1, %v2054_v36, %v2048_v26  ;;  %v2000_v40 = vpop.permute.xlu0 %1999 }
 0x28d   : > { %v2059_v37 = vmul.f32 %v2058_v25, %v4879_v8  ;;  %v2062_v39 = vmul.f32 %v2055_v3, %v4880_v62  ;;  %v2477_v45 = vmul.f32 %v2055_v3, %v3985_v18  ;;  %v2478_v38 = vmul.f32 %v2058_v25, %v3979_v20  ;;  %v4885_v3 = vld [vmem:[#allocation6_spill] sm:$0xff]  ;;  %v4886_v25 = vld [vmem:[#allocation4_spill] sm:$0xff] }
 0x28f   : > { %2063 = vst [vmem:[#allocation3 + $0x50] sm:$0xf] %v2059_v37  ;;  %2066 = vst [vmem:[#allocation3 + $0x48] sm:$0xf] %v2062_v39  ;;  %v1998_v47 = vpop.permute.xlu1 %1997 }
 0x290   : > { %2481 = vst [vmem:[#allocation3 + $0x160] sm:$0xf] %v2477_v45  ;;  %2482 = vst [vmem:[#allocation3 + $0x20] sm:$0xf] %v2478_v38  ;;  %v2004_v50 = vsel %vm336_vm3, %v1998_v47, %v2000_v40  ;;  %v2005_v26 = vsel %vm336_vm3, %v1996_v10, %v1998_v47  ;;  %v2416_v21 = vpop.permute.xlu0 %2415  ;;  %v4887_v38 = vld [vmem:[#allocation7_spill] sm:$0xff] }
 0x291   : > { %v2008_v0 = vmul.f32 %v2005_v26, %v4881_v15  ;;  %v2009_v1 = vmul.f32 %v2004_v50, %v4882_v27  ;;  %v2447_v18 = vmul.f32 %v2005_v26, %v4027_v48  ;;  %v2448_v20 = vmul.f32 %v2004_v50, %v4051_v14  ;;  %v4888_v50 = vld [vmem:[#allocation5_spill] sm:$0xff] }
 0x293   : > { %v2609_v63 = vld [vmem:[#allocation3 + $0x100] sm:$0xff]  ;;  %v2608_v2 = vld [vmem:[#allocation3 + $0x10] sm:$0xff]  ;;  %2012 = vst [vmem:[#allocation3 + $0x1b0] sm:$0xf] %v2008_v0  ;;  %2013 = vst [vmem:[#allocation3 + $0xd8] sm:$0xf] %v2009_v1  ;;  %v2002_v51 = vpop.permute.xlu1 %2001 }
 0x294   : > { %2451 = vst [vmem:[#allocation3 + $0x40] sm:$0xf] %v2447_v18  ;;  %2452 = vst [vmem:[#allocation3 + $0xa8] sm:$0xf] %v2448_v20  ;;  %2657 = vmatprep.subr.mxu0 %v2609_v63  ;;  %v2003_v16 = vsel %vm336_vm3, %v2000_v40, %v2002_v51  ;;  %v2006_v34 = vsel %vm336_vm3, %v2002_v51, %v1996_v10  ;;  %v2420_v42 = vpop.permute.xlu0 %2419 }
 0x295   : > { %2658 = vmatpush1.msra.mxu0 %v2608_v2  ;;  %v2007_v48 = vmul.f32 %v2006_v34, %v4883_v49  ;;  %v2010_v14 = vmul.f32 %v2003_v16, %v4884_v7  ;;  %v2449_v29 = vmul.f32 %v2003_v16, %v4058_v41  ;;  %v2450_v28 = vmul.f32 %v2006_v34, %v4838_v55 }
 0x297   : > { %v2611_v61 = vld [vmem:[#allocation3 + $0x20] sm:$0xff]  ;;  %2011 = vst [vmem:[#allocation3 + $0xb0] sm:$0xf] %v2007_v48  ;;  %2014 = vst [vmem:[#allocation3 + $0x18] sm:$0xf] %v2010_v14  ;;  %v2418_v17 = vpop.permute.xlu1 %2417  ;;  %v4889_v14 = vld [vmem:[#allocation11_spill] sm:$0xff] }
 0x298   : > { %v2610_v32 = vld [vmem:[#allocation3 + $0x160] sm:$0xff]  ;;  %2453 = vst [vmem:[#allocation3 + $0xd0] sm:$0xf] %v2449_v29  ;;  %2454 = vst [vmem:[#allocation3 + $0x1a0] sm:$0xf] %v2450_v28  ;;  %2728 = vmatprep.subr.mxu1 %v2611_v61  ;;  %v2424_v35 = vsel %vm1270_vm7, %v2418_v17, %v2420_v42  ;;  %v2425_v54 = vsel %vm1270_vm7, %v2416_v21, %v2418_v17  ;;  %v2364_v44 = vpop.permute.xlu0 %2363 }
 0x299   : > { %2729 = vmatpush1.msra.mxu1 %v2610_v32  ;;  %v2427_v41 = vmul.f32 %v2425_v54, %v4063_v19  ;;  %v2428_v55 = vmul.f32 %v2424_v35, %v4075_v60  ;;  %v4890_v28 = vld [vmem:[#allocation8_spill] sm:$0xff] }
 0x29b   : > { %v2605_v23 = vld [vmem:[#allocation3 + $0xa8] sm:$0xff]  ;;  %v2604_v24 = vld [vmem:[#allocation3 + $0x40] sm:$0xff]  ;;  %v2435_v56 = vrot.slane %v2427_v41, 4  ;;  %v2436_v53 = vrot.slane %v2428_v55, 4  ;;  %v2422_v31 = vpop.permute.xlu1 %2421 }
 0x29c   : > { %2659 = vmatprep.subr.mxu0 %v2605_v23  ;;  %v2423_v13 = vsel %vm1270_vm7, %v2420_v42, %v2422_v31  ;;  %v2426_v57 = vsel %vm1270_vm7, %v2422_v31, %v2416_v21  ;;  %v2368_v6 = vpop.permute.xlu0 %2367  ;;  %v4892_v55 = vld [vmem:[#allocation9_spill] sm:$0xff] }
 0x29d   : > { %2660 = vmatpush1.msra.mxu0 %v2604_v24  ;;  %2443 = vst [vmem:[#allocation3] sm:$0xf0] %v2435_v56  ;;  %2444 = vst [vmem:[#allocation3 + $0x68] sm:$0xf0] %v2436_v53  ;;  %v2429_v19 = vmul.f32 %v2423_v13, %v4084_v5  ;;  %v2430_v60 = vmul.f32 %v2426_v57, %v4066_v22 }
 0x29f   : > { %v2607_v10 = vld [vmem:[#allocation3 + $0x1a0] sm:$0xff]  ;;  %v2606_v43 = vld [vmem:[#allocation3 + $0xd0] sm:$0xff]  ;;  %v2437_v58 = vrot.slane %v2429_v19, 4  ;;  %v2438_v12 = vrot.slane %v2430_v60, 4  ;;  %v2366_v4 = vpop.permute.xlu1 %2365  ;;  %v4894_v60 = vld [vmem:[#allocation19_spill] sm:$0xff] }
 0x2a0   : > { %2730 = vmatprep.subr.mxu1 %v2607_v10  ;;  %v2372_v52 = vsel %vm1154_vm4, %v2366_v4, %v2368_v6  ;;  %v2373_v46 = vsel %vm1154_vm4, %v2364_v44, %v2366_v4  ;;  %v2396_v36 = vpop.permute.xlu0 %2395 }
 0x2a1   : > { %2731 = vmatpush1.msra.mxu1 %v2606_v43  ;;  %2445 = vst [vmem:[#allocation3 + $0x148] sm:$0xf0] %v2437_v58  ;;  %2446 = vst [vmem:[#allocation3 + $0x8] sm:$0xf0] %v2438_v12  ;;  %v2375_v5 = vmul.f32 %v2373_v46, %v4885_v3  ;;  %v2376_v22 = vmul.f32 %v2372_v52, %v4886_v25 }
 0x2a3   : > { %v2383_v40 = vrot.slane %v2375_v5, 4  ;;  %v2384_v8 = vrot.slane %v2376_v22, 4  ;;  %v2370_v37 = vpop.permute.xlu1 %2369  ;;  %v4895_v5 = vld [vmem:[#allocation17_spill] sm:$0xff]  ;;  %v4896_v22 = vld [vmem:[#allocation18_spill] sm:$0xff] }
 0x2a4   : > { %v2371_v62 = vsel %vm1154_vm4, %v2368_v6, %v2370_v37  ;;  %v2374_v39 = vsel %vm1154_vm4, %v2370_v37, %v2364_v44  ;;  %v2400_v45 = vpop.permute.xlu0 %2399  ;;  %v4891_v44 = vld [vmem:[#allocation10_spill] sm:$0xff]  ;;  %v4893_v6 = vld [vmem:[#allocation16_spill] sm:$0xff]  ;;  %vm4905_vm4 = vcmp.lt.s32.totalorder %v3181_v33, 8 }
 0x2a5   : > { %2391 = vst [vmem:[#allocation3 + $0x90] sm:$0xf0] %v2383_v40  ;;  %2392 = vst [vmem:[#allocation3 + $0xc0] sm:$0xf0] %v2384_v8  ;;  %v2377_v47 = vmul.f32 %v2371_v62, %v4887_v38  ;;  %v2378_v26 = vmul.f32 %v2374_v39, %v4888_v50  ;;  %v2581_v33 = vld [vmem:[#allocation3 + $0x150] sm:$0xff] }
 0x2a7   : > { %v2385_v21 = vrot.slane %v2377_v47, 4  ;;  %v2386_v15 = vrot.slane %v2378_v26, 4  ;;  %v2398_v0 = vpop.permute.xlu1 %2397  ;;  %v4897_v26 = vld [vmem:[#allocation12_spill] sm:$0xff] }
 0x2a8   : > { %v2404_v27 = vsel %vm1213_vm9, %v2398_v0, %v2400_v45  ;;  %v2405_v1 = vsel %vm1213_vm9, %v2396_v36, %v2398_v0  ;;  %v2344_v18 = vpop.permute.xlu0 %2343 }
 0x2a9   : > { %2393 = vst [vmem:[#allocation3 + $0x178] sm:$0xf0] %v2385_v21  ;;  %2394 = vst [vmem:[#allocation3 + $0xc8] sm:$0xf0] %v2386_v15  ;;  %v2407_v20 = vmul.f32 %v2405_v1, %v4117_v30  ;;  %v2408_v63 = vmul.f32 %v2404_v27, %v4131_v59  ;;  %v4898_v15 = vld [vmem:[#allocation15_spill] sm:$0xff] }
 0x2ab   : > { %2411 = vst [vmem:[#allocation3] sm:$0xf] %v2407_v20  ;;  %2412 = vst [vmem:[#allocation3 + $0x68] sm:$0xf] %v2408_v63  ;;  %v2402_v2 = vpop.permute.xlu1 %2401  ;;  %v4899_v63 = vld [vmem:[#allocation13_spill] sm:$0xff] }
 0x2ac   : > { %v2403_v51 = vsel %vm1213_vm9, %v2400_v45, %v2402_v2  ;;  %v2406_v16 = vsel %vm1213_vm9, %v2402_v2, %v2396_v36  ;;  %v2348_v34 = vpop.permute.xlu0 %2347  ;;  %vm2630_vm9 = vcmask 883712  }
 0x2ad   : > { %v2409_v42 = vmul.f32 %v2403_v51, %v4138_v11  ;;  %v2410_v49 = vmul.f32 %v2406_v16, %v4124_v9  ;;  %v4900_v51 = vld [vmem:[#allocation14_spill] sm:$0xff] }
 0x2af   : > { %2413 = vst [vmem:[#allocation3 + $0x148] sm:$0xf] %v2409_v42  ;;  %2414 = vst [vmem:[#allocation3 + $0x8] sm:$0xf] %v2410_v49  ;;  %v2346_v48 = vpop.permute.xlu1 %2345 }
 0x2b0   : > { %v2352_v59 = vsel %vm1097_vm5, %v2346_v48, %v2348_v34  ;;  %v2353_v30 = vsel %vm1097_vm5, %v2344_v18, %v2346_v48  ;;  %v2276_v7 = vpop.permute.xlu0 %2275  ;;  %v4901_v48 = vld [vmem:[#allocation24_spill] sm:$0xff] }
 0x2b1   : > { %v2355_v29 = vmul.f32 %v2353_v30, %v4889_v14  ;;  %v2356_v61 = vmul.f32 %v2352_v59, %v4890_v28  ;;  %v4902_v30 = vld [vmem:[#allocation27_spill] sm:$0xff] }
 0x2b2   : > { %v2601_v32 = vld [vmem:[#allocation3 + $0x68] sm:$0xff]  ;;  %v2600_v17 = vld [vmem:[#allocation3] sm:$0xff] }
 0x2b3   : > { %2359 = vst [vmem:[#allocation3 + $0x90] sm:$0xf] %v2355_v29  ;;  %2360 = vst [vmem:[#allocation3 + $0xc0] sm:$0xf] %v2356_v61  ;;  %2661 = vmatprep.subr.mxu0 %v2601_v32  ;;  %v2350_v9 = vpop.permute.xlu1 %2349 }
 0x2b4   : > { %v2351_v11 = vsel %vm1097_vm5, %v2348_v34, %v2350_v9  ;;  %v2354_v35 = vsel %vm1097_vm5, %v2350_v9, %v2344_v18  ;;  %v2280_v54 = vpop.permute.xlu0 %2279  ;;  %2662 = vmatpush1.msra.mxu0 %v2600_v17  ;;  %vm4906_vm5 = vmmov %vm4905_vm4 }
 0x2b5   : > { %v2357_v41 = vmul.f32 %v2351_v11, %v4891_v44  ;;  %v2358_v23 = vmul.f32 %v2354_v35, %v4892_v55  ;;  %v4903_v11 = vld [vmem:[#allocation25_spill] sm:$0xff] }
 0x2b6   : > { %v2603_v24 = vld [vmem:[#allocation3 + $0x8] sm:$0xff] }
 0x2b7   : > { %v2602_v56 = vld [vmem:[#allocation3 + $0x148] sm:$0xff]  ;;  %2361 = vst [vmem:[#allocation3 + $0x178] sm:$0xf] %v2357_v41  ;;  %2362 = vst [vmem:[#allocation3 + $0xc8] sm:$0xf] %v2358_v23  ;;  %2732 = vmatprep.subr.mxu1 %v2603_v24  ;;  %v2278_v53 = vpop.permute.xlu1 %2277 }
 0x2b8   : > { %v2284_v31 = vsel %vm979_vm8, %v2278_v53, %v2280_v54  ;;  %v2285_v13 = vsel %vm979_vm8, %v2276_v7, %v2278_v53  ;;  %v2308_v57 = vpop.permute.xlu0 %2307  ;;  %2733 = vmatpush1.msra.mxu1 %v2602_v56 }
 0x2b9   : > { %v2288_v19 = vmul.f32 %v2285_v13, %v4893_v6  ;;  %v2289_v10 = vmul.f32 %v2284_v31, %v4894_v60  ;;  %v4907_v6 = vld [vmem:[#allocation20_spill] sm:$0xff]  ;;  %v4908_v60 = vld [vmem:[#allocation23_spill] sm:$0xff] }
 0x2ba   : > { %v2597_v43 = vld [vmem:[#allocation3 + $0xc0] sm:$0xff]  ;;  %v2596_v58 = vld [vmem:[#allocation3 + $0x90] sm:$0xff] }
 0x2bb   : > { %v2296_v12 = vrot.slane %v2288_v19, 4  ;;  %v2297_v4 = vrot.slane %v2289_v10, 4  ;;  %2663 = vmatprep.subr.mxu0 %v2597_v43  ;;  %v2282_v52 = vpop.permute.xlu1 %2281 }
 0x2bc   : > { %v2283_v46 = vsel %vm979_vm8, %v2280_v54, %v2282_v52  ;;  %v2286_v36 = vsel %vm979_vm8, %v2282_v52, %v2276_v7  ;;  %v2312_v3 = vpop.permute.xlu0 %2311  ;;  %2664 = vmatpush1.msra.mxu0 %v2596_v58  ;;  %v4904_v54 = vld [vmem:[#allocation26_spill] sm:$0xff]  ;;  %vm4910_vm8 = vmmov %vm4905_vm4 }
 0x2bd   : > { %2304 = vst [vmem:[#allocation3 + $0x1a8] sm:$0xf0] %v2296_v12  ;;  %2305 = vst [vmem:[#allocation3 + $0x1b8] sm:$0xf0] %v2297_v4  ;;  %v2287_v25 = vmul.f32 %v2286_v36, %v4895_v5  ;;  %v2290_v40 = vmul.f32 %v2283_v46, %v4896_v22  ;;  %v4911_v4 = vld [vmem:[#allocation21_spill] sm:$0xff]  ;;  %v4912_v46 = vld [vmem:[#allocation22_spill] sm:$0xff] }
 0x2be   : > { %v2599_v8 = vld [vmem:[#allocation3 + $0xc8] sm:$0xff]  ;;  %v2598_v37 = vld [vmem:[#allocation3 + $0x178] sm:$0xff] }
 0x2bf   : > { %v2295_v62 = vrot.slane %v2287_v25, 4  ;;  %v2298_v39 = vrot.slane %v2290_v40, 4  ;;  %2734 = vmatprep.subr.mxu1 %v2599_v8  ;;  %v2310_v45 = vpop.permute.xlu1 %2309 }
 0x2c0   : > { %v2316_v38 = vsel %vm1036_vm6, %v2310_v45, %v2312_v3  ;;  %v2317_v47 = vsel %vm1036_vm6, %v2308_v57, %v2310_v45  ;;  %v2224_v50 = vpop.permute.xlu0 %2223  ;;  %2735 = vmatpush1.msra.mxu1 %v2598_v37  ;;  %v2583_v45 = vld [vmem:[#allocation3 + $0x60] sm:$0xff] }
 0x2c1   : > { %2303 = vst [vmem:[#allocation3 + $0x80] sm:$0xf0] %v2295_v62  ;;  %2306 = vst [vmem:[#allocation3 + $0x28] sm:$0xf0] %v2298_v39  ;;  %v2320_v21 = vmul.f32 %v2317_v47, %v4897_v26  ;;  %v2321_v0 = vmul.f32 %v2316_v38, %v4898_v15  ;;  %v2580_v39 = vld [vmem:[#allocation3 + $0x120] sm:$0xff]  ;;  %v2577_v38 = vld [vmem:[#allocation3 + $0x110] sm:$0xff] }
 0x2c2   : > { %v2582_v47 = vld [vmem:[#allocation3 + $0x108] sm:$0xff]  ;;  %v2579_v26 = vld [vmem:[#allocation3 + $0x98] sm:$0xff] }
 0x2c3   : > { %2324 = vst [vmem:[#allocation3 + $0xf8] sm:$0xf] %v2320_v21  ;;  %2325 = vst [vmem:[#allocation3 + $0x190] sm:$0xf] %v2321_v0  ;;  %v2314_v27 = vpop.permute.xlu1 %2313  ;;  %v2573_v21 = vld [vmem:[#allocation3 + $0x168] sm:$0xff]  ;;  %v2578_v15 = vld [vmem:[#allocation3 + $0x118] sm:$0xff] }
 0x2c4   : > { %v2315_v1 = vsel %vm1036_vm6, %v2312_v3, %v2314_v27  ;;  %v2318_v18 = vsel %vm1036_vm6, %v2314_v27, %v2308_v57  ;;  %v2228_v20 = vpop.permute.xlu0 %2227  ;;  %vm4909_vm6 = vmmov %vm4905_vm4  ;;  %v2572_v0 = vld [vmem:[#allocation3 + $0x50] sm:$0xff]  ;;  %v2575_v27 = vld [vmem:[#allocation3 + $0x48] sm:$0xff] }
 0x2c5   : > { %v2319_v2 = vmul.f32 %v2318_v18, %v4899_v63  ;;  %v2322_v16 = vmul.f32 %v2315_v1, %v4900_v51  ;;  %v2569_v1 = vld [vmem:[#allocation3 + $0x1b0] sm:$0xff]  ;;  %v2570_v51 = vld [vmem:[#allocation3 + $0xd8] sm:$0xff] }
 0x2c6   : > { %v2574_v18 = vld [vmem:[#allocation3 + $0x130] sm:$0xff] }
 0x2c7   : > { %2323 = vst [vmem:[#allocation3 + $0xe8] sm:$0xf] %v2319_v2  ;;  %2326 = vst [vmem:[#allocation3 + $0xb8] sm:$0xf] %v2322_v16  ;;  %v2226_v34 = vpop.permute.xlu1 %2225  ;;  %v2568_v63 = vld [vmem:[#allocation3 + $0xb0] sm:$0xff]  ;;  %v2571_v2 = vld [vmem:[#allocation3 + $0x18] sm:$0xff] }
 0x2c8   : > { %v2232_v42 = vsel %vm865_vm10, %v2226_v34, %v2228_v20  ;;  %v2233_v49 = vsel %vm865_vm10, %v2224_v50, %v2226_v34  ;;  %v2256_v14 = vpop.permute.xlu0 %2255 }
 0x2c9   : > { %v2236_v59 = vmul.f32 %v2233_v49, %v4901_v48  ;;  %v2237_v7 = vmul.f32 %v2232_v42, %v4902_v30 }
 0x2ca   : > { %v2593_v29 = vld [vmem:[#allocation3 + $0xf8] sm:$0xff]  ;;  %v2594_v31 = vld [vmem:[#allocation3 + $0x190] sm:$0xff] }
 0x2cb   : > { %v2244_v28 = vrot.slane %v2236_v59, 4  ;;  %v2245_v61 = vrot.slane %v2237_v7, 4  ;;  %2665 = vmatprep.subr.mxu0 %v2593_v29  ;;  %v2230_v32 = vpop.permute.xlu1 %2229 }
 0x2cc   : > { %v2231_v17 = vsel %vm865_vm10, %v2228_v20, %v2230_v32  ;;  %v2234_v9 = vsel %vm865_vm10, %v2230_v32, %v2224_v50  ;;  %v2260_v56 = vpop.permute.xlu0 %2259  ;;  %v2576_v50 = vld [vmem:[#allocation3 + $0x180] sm:$0xff] }
 0x2cd   : > { %2252 = vst [vmem:[#allocation3 + $0x188] sm:$0xf0] %v2244_v28  ;;  %2253 = vst [vmem:[#allocation3 + $0x138] sm:$0xf0] %v2245_v61  ;;  %v2235_v35 = vmul.f32 %v2234_v9, %v4903_v11  ;;  %v2238_v44 = vmul.f32 %v2231_v17, %v4904_v54  ;;  %v2567_v20 = vld [vmem:[%s4616_s4] sm:$0xf] }
 0x2ce   : > { %v2595_v41 = vld [vmem:[#allocation3 + $0xb8] sm:$0xff]  ;;  %v2592_v55 = vld [vmem:[#allocation3 + $0xe8] sm:$0xff] }
 0x2cf   : > { %v2243_v23 = vrot.slane %v2235_v35, 4  ;;  %v2246_v24 = vrot.slane %v2238_v44, 4  ;;  %2736 = vmatprep.subr.mxu1 %v2595_v41  ;;  %v2258_v53 = vpop.permute.xlu1 %2257  ;;  %2666 = vmatpush1.msra.mxu0 %v2592_v55 }
 0x2d0   : > { %v2264_v13 = vsel %vm4905_vm4, %v2258_v53, %v2260_v56  ;;  %v2265_v57 = vsel %vm4906_vm5, %v2256_v14, %v2258_v53  ;;  %2737 = vmatpush1.msra.mxu1 %v2594_v31 }
 0x2d1   : > { %2251 = vst [vmem:[#allocation3 + $0xe0] sm:$0xf0] %v2243_v23  ;;  %2254 = vst [vmem:[#allocation3 + $0x140] sm:$0xf0] %v2246_v24  ;;  %v2268_v19 = vmul.f32 %v2265_v57, %v4907_v6  ;;  %v2269_v10 = vmul.f32 %v2264_v13, %v4908_v60 }
 0x2d3   : > { %2272 = vst [vmem:[#allocation3 + $0x1a8] sm:$0xf] %v2268_v19  ;;  %2273 = vst [vmem:[#allocation3 + $0x1b8] sm:$0xf] %v2269_v10  ;;  %v2262_v43 = vpop.permute.xlu1 %2261 }
 0x2d4   : > { %v2263_v58 = vsel %vm4909_vm6, %v2260_v56, %v2262_v43  ;;  %v2266_v12 = vsel %vm4910_vm8, %v2262_v43, %v2256_v14  ;;  %v2585_v22 = vld [vmem:[#allocation3 + $0x188] sm:$0xff]  ;;  %v2586_v62 = vld [vmem:[#allocation3 + $0x138] sm:$0xff] }
 0x2d5   : > { %v2267_v52 = vmul.f32 %v2266_v12, %v4911_v4  ;;  %v2270_v36 = vmul.f32 %v2263_v58, %v4912_v46 }
 0x2d7   : > { %2271 = vst [vmem:[#allocation3 + $0x80] sm:$0xf] %v2267_v52  ;;  %2274 = vst [vmem:[#allocation3 + $0x28] sm:$0xf] %v2270_v36 }
 0x2d8   : > { %v2584_v8 = vld [vmem:[#allocation3 + $0xe0] sm:$0xff] }
 0x2d9   : > { %v2587_v37 = vld [vmem:[#allocation3 + $0x140] sm:$0xff]  ;;  %v2628_v16 = vpop.permute.xlu0 %2627 }
 0x2da   : > { %v2589_v3 = vld [vmem:[#allocation3 + $0x1a8] sm:$0xff]  ;;  %v2590_v40 = vld [vmem:[#allocation3 + $0x1b8] sm:$0xff] }
 0x2db   : > { %2667 = vmatprep.subr.mxu0 %v2589_v3 }
 0x2de   : > { %v2588_v5 = vld [vmem:[#allocation3 + $0x80] sm:$0xff]  ;;  %v2591_v25 = vld [vmem:[#allocation3 + $0x28] sm:$0xff] }
 0x2df   : > { %2668 = vmatpush1.msra.mxu0 %v2588_v5  ;;  %2738 = vmatprep.subr.mxu1 %v2591_v25 }
 0x2e0   : > { %2669 = vmatprep.subr.mxu0 %v2585_v22  ;;  %2739 = vmatpush1.msra.mxu1 %v2590_v40 }
 0x2e1   : > { %2670 = vmatpush1.msra.mxu0 %v2584_v8  ;;  %2740 = vmatprep.subr.mxu1 %v2587_v37 }
 0x2e2   : > { %2671 = vmatprep.subr.mxu0 %v2581_v33  ;;  %2741 = vmatpush1.msra.mxu1 %v2586_v62 }
 0x2e3   : > { %2672 = vmatpush1.msra.mxu0 %v2580_v39  ;;  %2742 = vmatprep.subr.mxu1 %v2583_v45 }
 0x2e4   : > { %2673 = vmatprep.subr.mxu0 %v2577_v38  ;;  %2743 = vmatpush1.msra.mxu1 %v2582_v47 }
 0x2e5   : > { %2674 = vmatpush1.msra.mxu0 %v2576_v50  ;;  %2744 = vmatprep.subr.mxu1 %v2579_v26 }
 0x2e6   : > { %2675 = vmatprep.subr.mxu0 %v2573_v21  ;;  %2745 = vmatpush1.msra.mxu1 %v2578_v15 }
 0x2e7   : > { %2676 = vmatpush1.msra.mxu0 %v2572_v0  ;;  %2746 = vmatprep.subr.mxu1 %v2575_v27 }
 0x2e8   : > { %2677 = vmatprep.subr.mxu0 %v2569_v1  ;;  %2747 = vmatpush1.msra.mxu1 %v2574_v18 }
 0x2e9   : > { %2678 = vmatpush1.msra.mxu0 %v2568_v63  ;;  %2748 = vmatprep.subr.mxu1 %v2571_v2 }
 0x2ea   : > { %2871 = vmatmul.mubr.msk.f32.vlgmr.msra.gmra.mxu0 %vm2630_vm9, %v2567_v20  ;;  %2749 = vmatpush1.msra.mxu1 %v2570_v51 }
 0x2eb   : > { %2874 = vmatmul.mubr.msk.f32.vlgmr.msra.gmra.mxu1 %vm2630_vm9, %v2567_v20 }
 0x3aa   : > { %v2713_v34 = vpop.f32.mrf.mxu0 }
 0x3ab   : > { %v2714_v42 = vadd.f32 %v2713_v34, %v2628_v16  ;;  %v2784_v49 = vpop.f32.mrf.mxu1 }
 0x3ac   : > { %v2785_v48 = vadd.f32 %v2784_v49, %v2628_v16  ;;  %v2715_v59 = vpop.f32.mrf.mxu0 }
 0x3ad   : > { %v2716_v30 = vadd.f32 %v2715_v59, %v2628_v16  ;;  %v2786_v7 = vpop.f32.mrf.mxu1  ;;  %v2789_v29 = vmax.f32 %v2714_v42, 0.0 }
 0x3ae   : > { %v2787_v14 = vadd.f32 %v2786_v7, %v2628_v16  ;;  %v2791_v61 = vmax.f32 %v2785_v48, 0.0 }
 0x3af   : > { %v2790_v28 = vmax.f32 %v2716_v30, 0.0 }
 0x3b0   : > { %v2792_v32 = vmax.f32 %v2787_v14, 0.0 }
 0x3b1   : > { %v2797_v17 = vcombine.low %v2789_v29, %v2790_v28 }
 0x3b2   : > { %v2798_v9 = vcombine.low %v2791_v61, %v2792_v32 }
 0x3b3   : > { %2801 = vst [vmem:[%s251_s14] sm:$0xff] %v2797_v17 }
 0x3b4   : > { %2802 = vst [vmem:[%s251_s14 + $0x8] sm:$0xff] %v2798_v9 }
 0x3b5 PF: > { %s16_s21 = sadd.s32 1, %s2915_s21  }
 0x3b6   : > { %p13_p4 = scmp.ge.s32.totalorder %s16_s21, 4  }
 0x3b8   :  { %15 = sbr.rel (!%p13_p4) target bundleno = 1 (0x1), region = 74 }

</bundles_post_ra>
